<compile_context>
chip_gen: v6e
topology: v6e:2x2x1
jax: 0.10.0
libtpu: 0.0.40
codegen_flags: <defaults>
</compile_context>

<pallas_src>
import functools

import jax
import jax.numpy as jnp
from jax.experimental import pallas as pl
from jax.experimental.pallas import tpu as pltpu


def _upsample_conv_kernel(x_ref, s_ref, w_ref, b_ref, o_ref, upf_ref, xcol_ref, *,
                          Cin, Cout, H0, W0, K, pad, Wp, OFF, NW, G):
    # x_ref   : (1, Cin*H0, W0)      original-resolution input (one batch element)
    # s_ref   : (W0, Wp)             0/1 matrix: 2x column upsample + zero pad to Wp
    # w_ref   : (Cout, K*K*Cin)      stacked conv weights (tap-major, cin-minor)
    # b_ref   : (Cout, 1)            bias (lane-broadcast)
    # o_ref   : (1, Cout, NW)        NW = H*Wp, lane-dense flattened (row, padded col)
    # upf_ref : VMEM (Cin, G)        flat zero-padded 2x-upsampled image with margins
    # xcol_ref: VMEM (K*K*Cin, NW)   stacked tap views (im2col-style RHS)
    H = 2 * H0

    # Zero only the margin regions; the interior rows [OFF+pad*Wp, OFF+(pad+H)*Wp)
    # (incl. their zero pad columns, which come from the S matmul) are fully
    # overwritten below every grid step.
    top = OFF + pad * Wp
    bot = OFF + (pad + H) * Wp
    upf_ref[:, 0:top] = jnp.zeros((Cin, top), jnp.float32)
    upf_ref[:, bot:G] = jnp.zeros((Cin, G - bot), jnp.float32)

    # ---- fused nearest-neighbour 2x upsample (cat x4 + DepthToSpace(2)) ---------
    # Columns: one small MXU matmul repeats each column twice and zero-pads out to
    # the 128-aligned row stride Wp, keeping the width dim lane-dense.
    xs = jnp.dot(x_ref[0].astype(jnp.float32), s_ref[...],
                 preferred_element_type=jnp.float32)          # (Cin*H0, Wp)
    # Free layout split when H0 % 8 == 0 (true here); otherwise perf-only relayout.
    xs = xs.reshape(Cin, H0, Wp)

    # Rows: each original row fills two consecutive padded rows, via two aligned,
    # unmasked Wp-wide stores (starts are multiples of 128; no concat temp).
    for i in range(H0):
        row = xs[:, i, :]                                     # (Cin, Wp)
        start = OFF + (2 * i + pad) * Wp
        upf_ref[:, start:start + Wp] = row
        upf_ref[:, start + Wp:start + 2 * Wp] = row

    # ---- 3x3 "same" conv as ONE depth-(K*K*Cin) MXU matmul ----------------------
    # Stack the K*K lane-shifted tap views on consecutive sublane groups: kh shifts
    # are exact 128-lane (vreg) offsets, kw shifts are +/-1 lane.
    base = OFF + pad * Wp                                     # flat idx of out row 0, col 0
    for t in range(K * K):
        kh, kw = t // K, t % K
        start = base + (kh - pad) * Wp + (kw - pad)
        xcol_ref[t * Cin:(t + 1) * Cin, :] = upf_ref[:, start:start + NW]

    acc = jnp.dot(w_ref[...], xcol_ref[...],
                  preferred_element_type=jnp.float32)         # (Cout, NW), depth K*K*Cin
    o_ref[0] = (acc + b_ref[...]).astype(o_ref.dtype)         # aligned lane-dense store


def upsample_conv(x_nchw, w_oihw, bias, *, batch_core_parallel=False):
    """UpSampleConv forward: (B, Cin, H0, W0) -> (B, Cout, 2*H0, 2*W0), NCHW in/out."""
    B, Cin, H0, W0 = x_nchw.shape
    Cout, Cin_w, K, K_w = w_oihw.shape
    assert Cin_w == Cin and K_w == K

    pad = (K - 1) // 2
    H, W = 2 * H0, 2 * W0
    Wp = ((W + 2 * pad + 127) // 128) * 128   # 128-lane-aligned padded row stride
    Hp = H + 2 * pad
    NW = H * Wp                               # flattened (valid out rows) x (padded cols)
    OFF = Wp                                  # margin; multiple of Wp keeps kh taps aligned
    G = Hp * Wp + 2 * OFF                     # scratch length per channel
    KKC = K * K * Cin

    # 0/1 matrix performing the 2x column upsample + zero pad to Wp: (W0, Wp).
    j = jnp.arange(W0)
    s = jnp.zeros((W0, Wp), jnp.float32)
    s = s.at[j, 2 * j + pad].set(1.0)
    s = s.at[j, 2 * j + 1 + pad].set(1.0)

    # Stacked LHS (Cout, K*K*Cin): row order = tap-major (kh*K+kw), cin-minor, matching
    # the X_col sublane order built in the kernel.  Bias -> (Cout, 1).
    w_stk = jnp.transpose(w_oihw, (0, 2, 3, 1)).reshape(Cout, KKC).astype(jnp.float32)
    b2 = bias.reshape(Cout, 1).astype(jnp.float32)

    # Free metadata reshape on contiguous NCHW: taller sublane extent for the input DMA.
    x_in = x_nchw.reshape(B, Cin * H0, W0)

    kernel = functools.partial(
        _upsample_conv_kernel, Cin=Cin, Cout=Cout, H0=H0, W0=W0, K=K,
        pad=pad, Wp=Wp, OFF=OFF, NW=NW, G=G)

    # v7x: CORE_PARALLEL actually shards the batch axis across the two TensorCores;
    # plain "parallel" does not change codegen.  Default off for single-TC v5e/v6e.
    dim_sem = (pltpu.CORE_PARALLEL,) if batch_core_parallel else ("parallel",)

    # TODO(synk): for production H/W, tile H into row strips (+K-1 halo) with a second
    # grid axis so the pipeline has >=3 steps; size strips for v7x's 64 MiB VMEM
    # (~half of what fits v6e) and set vmem_limit_bytes explicitly.
    # TODO(synk): for large outputs keep the padded (Cout, H, Wp) layout in the consumer
    # (or store compact rows) instead of the wrapper's post-hoc column slice, which is
    # an extra HBM read+write of the output.
    out_flat = pl.pallas_call(
        kernel,
        out_shape=jax.ShapeDtypeStruct((B, Cout, NW), x_nchw.dtype),
        grid=(B,),
        in_specs=[
            pl.BlockSpec((1, Cin * H0, W0), lambda b: (b, 0, 0)),
            pl.BlockSpec((W0, Wp), lambda b: (0, 0)),
            pl.BlockSpec((Cout, KKC), lambda b: (0, 0)),
            pl.BlockSpec((Cout, 1), lambda b: (0, 0)),
        ],
        out_specs=pl.BlockSpec((1, Cout, NW), lambda b: (b, 0, 0)),
        scratch_shapes=[
            pltpu.VMEM((Cin, G), jnp.float32),      # flat padded upsampled image
            pltpu.VMEM((KKC, NW), jnp.float32),     # stacked tap views (im2col RHS)
        ],
        compiler_params=pltpu.CompilerParams(dimension_semantics=dim_sem),
    )(x_in, s, w_stk, b2)

    # (B, Cout, H*Wp) -> (B, Cout, H, Wp) is a free reshape; drop the pad/alignment cols.
    return out_flat.reshape(B, Cout, H, Wp)[:, :, :, pad:pad + W]


if __name__ == "__main__":
    input_dim, output_dim, kernel_size = 4, 8, 3
    B, H0, W0 = 2, 16, 16

    key = jax.random.PRNGKey(0)
    kx, kw, kb = jax.random.split(key, 3)

    x = jax.random.normal(kx, (B, input_dim, H0, W0), dtype=jnp.float32)

    # Deterministic Conv2d-style init (uniform(-bound, bound), bound = 1/sqrt(fan_in)).
    fan_in = input_dim * kernel_size * kernel_size
    bound = 1.0 / (fan_in ** 0.5)
    w_oihw = jax.random.uniform(
        kw, (output_dim, input_dim, kernel_size, kernel_size),
        minval=-bound, maxval=bound, dtype=jnp.float32)
    bias = jax.random.uniform(
        kb, (output_dim,), minval=-bound, maxval=bound, dtype=jnp.float32)

    out = jax.block_until_ready(upsample_conv(x, w_oihw, bias))
    assert out.shape == (B, output_dim, 2 * H0, 2 * W0), out.shape

    # Reference: cat x4 + DepthToSpace(2) == nearest-neighbour 2x upsample here.
    up_ref = jnp.repeat(jnp.repeat(x, 2, axis=2), 2, axis=3)
    ref = jax.lax.conv_general_dilated(
        up_ref, w_oihw, window_strides=(1, 1), padding="SAME",
        dimension_numbers=("NCHW", "OIHW", "NCHW")) + bias[None, :, None, None]
    err = float(jnp.max(jnp.abs(out - ref)))
    assert jnp.allclose(out, ref, rtol=1e-5, atol=1e-5), err

    print("KERNEL_OK")
</pallas_src>

<mosaic_0001>
module attributes {stable_mosaic.version = 11 : i64} {
  func.func @_upsample_conv_kernel(%arg0: i32, %arg1: memref<1x64x16xf32, #tpu.memory_space<vmem>>, %arg2: memref<16x128xf32, #tpu.memory_space<vmem>>, %arg3: memref<8x36xf32, #tpu.memory_space<vmem>>, %arg4: memref<8x1xf32, #tpu.memory_space<vmem>>, %arg5: memref<1x8x4096xf32, #tpu.memory_space<vmem>>, %arg6: memref<4x4608xf32, #tpu.memory_space<vmem>>, %arg7: memref<36x4096xf32, #tpu.memory_space<vmem>>) attributes {dimension_semantics = [#tpu.dimension_semantics<parallel>], iteration_bounds = array<i64: 2>, scalar_prefetch = 0 : i64, scratch_operands = 2 : i64, tpu.core_type = #tpu.core_type<tc>, window_params = [{transform_indices = @transform_0, window_bounds = array<i64: 1, 64, 16>}, {pipeline_mode = #tpu.pipeline_mode<synchronous>, transform_indices = @transform_1, window_bounds = array<i64: 16, 128>}, {pipeline_mode = #tpu.pipeline_mode<synchronous>, transform_indices = @transform_2, window_bounds = array<i64: 8, 36>}, {pipeline_mode = #tpu.pipeline_mode<synchronous>, transform_indices = @transform_3, window_bounds = array<i64: 8, 1>}, {transform_indices = @transform_4, window_bounds = array<i64: 1, 8, 4096>}]} {
    %cst = arith.constant 0.000000e+00 : f32
    %0 = vector.broadcast %cst : f32 to vector<4x256xf32>
    %c0 = arith.constant 0 : index
    %c0_0 = arith.constant 0 : index
    %1 = vector.load %arg6[%c0, %c0_0] : memref<4x4608xf32, #tpu.memory_space<vmem>>, vector<4x256xf32>
    tpu.vector_store %arg6[%c0, %c0_0], %0 {strides = array<i32>} : memref<4x4608xf32, #tpu.memory_space<vmem>>, vector<4x256xf32>,
    %cst_1 = arith.constant 0.000000e+00 : f32
    %2 = vector.broadcast %cst_1 : f32 to vector<4x256xf32>
    %c0_2 = arith.constant 0 : index
    %c4352 = arith.constant 4352 : index
    %3 = vector.load %arg6[%c0_2, %c4352] : memref<4x4608xf32, #tpu.memory_space<vmem>>, vector<4x256xf32>
    tpu.vector_store %arg6[%c0_2, %c4352], %2 {strides = array<i32>} : memref<4x4608xf32, #tpu.memory_space<vmem>>, vector<4x256xf32>,
    %c0_3 = arith.constant 0 : index
    %c0_4 = arith.constant 0 : index
    %c0_5 = arith.constant 0 : index
    %4 = vector.load %arg1[%c0_3, %c0_4, %c0_5] : memref<1x64x16xf32, #tpu.memory_space<vmem>>, vector<1x64x16xf32>
    %5 = vector.shape_cast %4 : vector<1x64x16xf32> to vector<64x16xf32>
    %c0_6 = arith.constant 0 : index
    %c0_7 = arith.constant 0 : index
    %6 = vector.load %arg2[%c0_6, %c0_7] : memref<16x128xf32, #tpu.memory_space<vmem>>, vector<16x128xf32>
    %cst_8 = arith.constant dense<0.000000e+00> : vector<64x128xf32>
    %7 = tpu.matmul %5, %6, %cst_8 {dimension_numbers = #tpu.dot_dimension_numbers<[1], [0], [0], [1], [0, 0, 1, 1], [], []>} : vector<64x16xf32>, vector<16x128xf32>, vector<64x128xf32> -> vector<64x128xf32>
    %8 = vector.shape_cast %7 : vector<64x128xf32> to vector<4x16x128xf32>
    %9 = vector.extract_strided_slice %8 {offsets = [0, 0, 0], sizes = [4, 1, 128], strides = [1, 1, 1]} : vector<4x16x128xf32> to vector<4x1x128xf32>
    %10 = vector.shape_cast %9 : vector<4x1x128xf32> to vector<4x128xf32>
    %c0_9 = arith.constant 0 : index
    %c256 = arith.constant 256 : index
    %11 = vector.load %arg6[%c0_9, %c256] : memref<4x4608xf32, #tpu.memory_space<vmem>>, vector<4x128xf32>
    tpu.vector_store %arg6[%c0_9, %c256], %10 {strides = array<i32>} : memref<4x4608xf32, #tpu.memory_space<vmem>>, vector<4x128xf32>,
    %c0_10 = arith.constant 0 : index
    %c384 = arith.constant 384 : index
    %12 = vector.load %arg6[%c0_10, %c384] : memref<4x4608xf32, #tpu.memory_space<vmem>>, vector<4x128xf32>
    tpu.vector_store %arg6[%c0_10, %c384], %10 {strides = array<i32>} : memref<4x4608xf32, #tpu.memory_space<vmem>>, vector<4x128xf32>,
    %13 = vector.extract_strided_slice %8 {offsets = [0, 1, 0], sizes = [4, 1, 128], strides = [1, 1, 1]} : vector<4x16x128xf32> to vector<4x1x128xf32>
    %14 = vector.shape_cast %13 : vector<4x1x128xf32> to vector<4x128xf32>
    %c0_11 = arith.constant 0 : index
    %c512 = arith.constant 512 : index
    %15 = vector.load %arg6[%c0_11, %c512] : memref<4x4608xf32, #tpu.memory_space<vmem>>, vector<4x128xf32>
    tpu.vector_store %arg6[%c0_11, %c512], %14 {strides = array<i32>} : memref<4x4608xf32, #tpu.memory_space<vmem>>, vector<4x128xf32>,
    %c0_12 = arith.constant 0 : index
    %c640 = arith.constant 640 : index
    %16 = vector.load %arg6[%c0_12, %c640] : memref<4x4608xf32, #tpu.memory_space<vmem>>, vector<4x128xf32>
    tpu.vector_store %arg6[%c0_12, %c640], %14 {strides = array<i32>} : memref<4x4608xf32, #tpu.memory_space<vmem>>, vector<4x128xf32>,
    %17 = vector.extract_strided_slice %8 {offsets = [0, 2, 0], sizes = [4, 1, 128], strides = [1, 1, 1]} : vector<4x16x128xf32> to vector<4x1x128xf32>
    %18 = vector.shape_cast %17 : vector<4x1x128xf32> to vector<4x128xf32>
    %c0_13 = arith.constant 0 : index
    %c768 = arith.constant 768 : index
    %19 = vector.load %arg6[%c0_13, %c768] : memref<4x4608xf32, #tpu.memory_space<vmem>>, vector<4x128xf32>
    tpu.vector_store %arg6[%c0_13, %c768], %18 {strides = array<i32>} : memref<4x4608xf32, #tpu.memory_space<vmem>>, vector<4x128xf32>,
    %c0_14 = arith.constant 0 : index
    %c896 = arith.constant 896 : index
    %20 = vector.load %arg6[%c0_14, %c896] : memref<4x4608xf32, #tpu.memory_space<vmem>>, vector<4x128xf32>
    tpu.vector_store %arg6[%c0_14, %c896], %18 {strides = array<i32>} : memref<4x4608xf32, #tpu.memory_space<vmem>>, vector<4x128xf32>,
    %21 = vector.extract_strided_slice %8 {offsets = [0, 3, 0], sizes = [4, 1, 128], strides = [1, 1, 1]} : vector<4x16x128xf32> to vector<4x1x128xf32>
    %22 = vector.shape_cast %21 : vector<4x1x128xf32> to vector<4x128xf32>
    %c0_15 = arith.constant 0 : index
    %c1024 = arith.constant 1024 : index
    %23 = vector.load %arg6[%c0_15, %c1024] : memref<4x4608xf32, #tpu.memory_space<vmem>>, vector<4x128xf32>
    tpu.vector_store %arg6[%c0_15, %c1024], %22 {strides = array<i32>} : memref<4x4608xf32, #tpu.memory_space<vmem>>, vector<4x128xf32>,
    %c0_16 = arith.constant 0 : index
    %c1152 = arith.constant 1152 : index
    %24 = vector.load %arg6[%c0_16, %c1152] : memref<4x4608xf32, #tpu.memory_space<vmem>>, vector<4x128xf32>
    tpu.vector_store %arg6[%c0_16, %c1152], %22 {strides = array<i32>} : memref<4x4608xf32, #tpu.memory_space<vmem>>, vector<4x128xf32>,
    %25 = vector.extract_strided_slice %8 {offsets = [0, 4, 0], sizes = [4, 1, 128], strides = [1, 1, 1]} : vector<4x16x128xf32> to vector<4x1x128xf32>
    %26 = vector.shape_cast %25 : vector<4x1x128xf32> to vector<4x128xf32>
    %c0_17 = arith.constant 0 : index
    %c1280 = arith.constant 1280 : index
    %27 = vector.load %arg6[%c0_17, %c1280] : memref<4x4608xf32, #tpu.memory_space<vmem>>, vector<4x128xf32>
    tpu.vector_store %arg6[%c0_17, %c1280], %26 {strides = array<i32>} : memref<4x4608xf32, #tpu.memory_space<vmem>>, vector<4x128xf32>,
    %c0_18 = arith.constant 0 : index
    %c1408 = arith.constant 1408 : index
    %28 = vector.load %arg6[%c0_18, %c1408] : memref<4x4608xf32, #tpu.memory_space<vmem>>, vector<4x128xf32>
    tpu.vector_store %arg6[%c0_18, %c1408], %26 {strides = array<i32>} : memref<4x4608xf32, #tpu.memory_space<vmem>>, vector<4x128xf32>,
    %29 = vector.extract_strided_slice %8 {offsets = [0, 5, 0], sizes = [4, 1, 128], strides = [1, 1, 1]} : vector<4x16x128xf32> to vector<4x1x128xf32>
    %30 = vector.shape_cast %29 : vector<4x1x128xf32> to vector<4x128xf32>
    %c0_19 = arith.constant 0 : index
    %c1536 = arith.constant 1536 : index
    %31 = vector.load %arg6[%c0_19, %c1536] : memref<4x4608xf32, #tpu.memory_space<vmem>>, vector<4x128xf32>
    tpu.vector_store %arg6[%c0_19, %c1536], %30 {strides = array<i32>} : memref<4x4608xf32, #tpu.memory_space<vmem>>, vector<4x128xf32>,
    %c0_20 = arith.constant 0 : index
    %c1664 = arith.constant 1664 : index
    %32 = vector.load %arg6[%c0_20, %c1664] : memref<4x4608xf32, #tpu.memory_space<vmem>>, vector<4x128xf32>
    tpu.vector_store %arg6[%c0_20, %c1664], %30 {strides = array<i32>} : memref<4x4608xf32, #tpu.memory_space<vmem>>, vector<4x128xf32>,
    %33 = vector.extract_strided_slice %8 {offsets = [0, 6, 0], sizes = [4, 1, 128], strides = [1, 1, 1]} : vector<4x16x128xf32> to vector<4x1x128xf32>
    %34 = vector.shape_cast %33 : vector<4x1x128xf32> to vector<4x128xf32>
    %c0_21 = arith.constant 0 : index
    %c1792 = arith.constant 1792 : index
    %35 = vector.load %arg6[%c0_21, %c1792] : memref<4x4608xf32, #tpu.memory_space<vmem>>, vector<4x128xf32>
    tpu.vector_store %arg6[%c0_21, %c1792], %34 {strides = array<i32>} : memref<4x4608xf32, #tpu.memory_space<vmem>>, vector<4x128xf32>,
    %c0_22 = arith.constant 0 : index
    %c1920 = arith.constant 1920 : index
    %36 = vector.load %arg6[%c0_22, %c1920] : memref<4x4608xf32, #tpu.memory_space<vmem>>, vector<4x128xf32>
    tpu.vector_store %arg6[%c0_22, %c1920], %34 {strides = array<i32>} : memref<4x4608xf32, #tpu.memory_space<vmem>>, vector<4x128xf32>,
    %37 = vector.extract_strided_slice %8 {offsets = [0, 7, 0], sizes = [4, 1, 128], strides = [1, 1, 1]} : vector<4x16x128xf32> to vector<4x1x128xf32>
    %38 = vector.shape_cast %37 : vector<4x1x128xf32> to vector<4x128xf32>
    %c0_23 = arith.constant 0 : index
    %c2048 = arith.constant 2048 : index
    %39 = vector.load %arg6[%c0_23, %c2048] : memref<4x4608xf32, #tpu.memory_space<vmem>>, vector<4x128xf32>
    tpu.vector_store %arg6[%c0_23, %c2048], %38 {strides = array<i32>} : memref<4x4608xf32, #tpu.memory_space<vmem>>, vector<4x128xf32>,
    %c0_24 = arith.constant 0 : index
    %c2176 = arith.constant 2176 : index
    %40 = vector.load %arg6[%c0_24, %c2176] : memref<4x4608xf32, #tpu.memory_space<vmem>>, vector<4x128xf32>
    tpu.vector_store %arg6[%c0_24, %c2176], %38 {strides = array<i32>} : memref<4x4608xf32, #tpu.memory_space<vmem>>, vector<4x128xf32>,
    %41 = vector.extract_strided_slice %8 {offsets = [0, 8, 0], sizes = [4, 1, 128], strides = [1, 1, 1]} : vector<4x16x128xf32> to vector<4x1x128xf32>
    %42 = vector.shape_cast %41 : vector<4x1x128xf32> to vector<4x128xf32>
    %c0_25 = arith.constant 0 : index
    %c2304 = arith.constant 2304 : index
    %43 = vector.load %arg6[%c0_25, %c2304] : memref<4x4608xf32, #tpu.memory_space<vmem>>, vector<4x128xf32>
    tpu.vector_store %arg6[%c0_25, %c2304], %42 {strides = array<i32>} : memref<4x4608xf32, #tpu.memory_space<vmem>>, vector<4x128xf32>,
    %c0_26 = arith.constant 0 : index
    %c2432 = arith.constant 2432 : index
    %44 = vector.load %arg6[%c0_26, %c2432] : memref<4x4608xf32, #tpu.memory_space<vmem>>, vector<4x128xf32>
    tpu.vector_store %arg6[%c0_26, %c2432], %42 {strides = array<i32>} : memref<4x4608xf32, #tpu.memory_space<vmem>>, vector<4x128xf32>,
    %45 = vector.extract_strided_slice %8 {offsets = [0, 9, 0], sizes = [4, 1, 128], strides = [1, 1, 1]} : vector<4x16x128xf32> to vector<4x1x128xf32>
    %46 = vector.shape_cast %45 : vector<4x1x128xf32> to vector<4x128xf32>
    %c0_27 = arith.constant 0 : index
    %c2560 = arith.constant 2560 : index
    %47 = vector.load %arg6[%c0_27, %c2560] : memref<4x4608xf32, #tpu.memory_space<vmem>>, vector<4x128xf32>
    tpu.vector_store %arg6[%c0_27, %c2560], %46 {strides = array<i32>} : memref<4x4608xf32, #tpu.memory_space<vmem>>, vector<4x128xf32>,
    %c0_28 = arith.constant 0 : index
    %c2688 = arith.constant 2688 : index
    %48 = vector.load %arg6[%c0_28, %c2688] : memref<4x4608xf32, #tpu.memory_space<vmem>>, vector<4x128xf32>
    tpu.vector_store %arg6[%c0_28, %c2688], %46 {strides = array<i32>} : memref<4x4608xf32, #tpu.memory_space<vmem>>, vector<4x128xf32>,
    %49 = vector.extract_strided_slice %8 {offsets = [0, 10, 0], sizes = [4, 1, 128], strides = [1, 1, 1]} : vector<4x16x128xf32> to vector<4x1x128xf32>
    %50 = vector.shape_cast %49 : vector<4x1x128xf32> to vector<4x128xf32>
    %c0_29 = arith.constant 0 : index
    %c2816 = arith.constant 2816 : index
    %51 = vector.load %arg6[%c0_29, %c2816] : memref<4x4608xf32, #tpu.memory_space<vmem>>, vector<4x128xf32>
    tpu.vector_store %arg6[%c0_29, %c2816], %50 {strides = array<i32>} : memref<4x4608xf32, #tpu.memory_space<vmem>>, vector<4x128xf32>,
    %c0_30 = arith.constant 0 : index
    %c2944 = arith.constant 2944 : index
    %52 = vector.load %arg6[%c0_30, %c2944] : memref<4x4608xf32, #tpu.memory_space<vmem>>, vector<4x128xf32>
    tpu.vector_store %arg6[%c0_30, %c2944], %50 {strides = array<i32>} : memref<4x4608xf32, #tpu.memory_space<vmem>>, vector<4x128xf32>,
    %53 = vector.extract_strided_slice %8 {offsets = [0, 11, 0], sizes = [4, 1, 128], strides = [1, 1, 1]} : vector<4x16x128xf32> to vector<4x1x128xf32>
    %54 = vector.shape_cast %53 : vector<4x1x128xf32> to vector<4x128xf32>
    %c0_31 = arith.constant 0 : index
    %c3072 = arith.constant 3072 : index
    %55 = vector.load %arg6[%c0_31, %c3072] : memref<4x4608xf32, #tpu.memory_space<vmem>>, vector<4x128xf32>
    tpu.vector_store %arg6[%c0_31, %c3072], %54 {strides = array<i32>} : memref<4x4608xf32, #tpu.memory_space<vmem>>, vector<4x128xf32>,
    %c0_32 = arith.constant 0 : index
    %c3200 = arith.constant 3200 : index
    %56 = vector.load %arg6[%c0_32, %c3200] : memref<4x4608xf32, #tpu.memory_space<vmem>>, vector<4x128xf32>
    tpu.vector_store %arg6[%c0_32, %c3200], %54 {strides = array<i32>} : memref<4x4608xf32, #tpu.memory_space<vmem>>, vector<4x128xf32>,
    %57 = vector.extract_strided_slice %8 {offsets = [0, 12, 0], sizes = [4, 1, 128], strides = [1, 1, 1]} : vector<4x16x128xf32> to vector<4x1x128xf32>
    %58 = vector.shape_cast %57 : vector<4x1x128xf32> to vector<4x128xf32>
    %c0_33 = arith.constant 0 : index
    %c3328 = arith.constant 3328 : index
    %59 = vector.load %arg6[%c0_33, %c3328] : memref<4x4608xf32, #tpu.memory_space<vmem>>, vector<4x128xf32>
    tpu.vector_store %arg6[%c0_33, %c3328], %58 {strides = array<i32>} : memref<4x4608xf32, #tpu.memory_space<vmem>>, vector<4x128xf32>,
    %c0_34 = arith.constant 0 : index
    %c3456 = arith.constant 3456 : index
    %60 = vector.load %arg6[%c0_34, %c3456] : memref<4x4608xf32, #tpu.memory_space<vmem>>, vector<4x128xf32>
    tpu.vector_store %arg6[%c0_34, %c3456], %58 {strides = array<i32>} : memref<4x4608xf32, #tpu.memory_space<vmem>>, vector<4x128xf32>,
    %61 = vector.extract_strided_slice %8 {offsets = [0, 13, 0], sizes = [4, 1, 128], strides = [1, 1, 1]} : vector<4x16x128xf32> to vector<4x1x128xf32>
    %62 = vector.shape_cast %61 : vector<4x1x128xf32> to vector<4x128xf32>
    %c0_35 = arith.constant 0 : index
    %c3584 = arith.constant 3584 : index
    %63 = vector.load %arg6[%c0_35, %c3584] : memref<4x4608xf32, #tpu.memory_space<vmem>>, vector<4x128xf32>
    tpu.vector_store %arg6[%c0_35, %c3584], %62 {strides = array<i32>} : memref<4x4608xf32, #tpu.memory_space<vmem>>, vector<4x128xf32>,
    %c0_36 = arith.constant 0 : index
    %c3712 = arith.constant 3712 : index
    %64 = vector.load %arg6[%c0_36, %c3712] : memref<4x4608xf32, #tpu.memory_space<vmem>>, vector<4x128xf32>
    tpu.vector_store %arg6[%c0_36, %c3712], %62 {strides = array<i32>} : memref<4x4608xf32, #tpu.memory_space<vmem>>, vector<4x128xf32>,
    %65 = vector.extract_strided_slice %8 {offsets = [0, 14, 0], sizes = [4, 1, 128], strides = [1, 1, 1]} : vector<4x16x128xf32> to vector<4x1x128xf32>
    %66 = vector.shape_cast %65 : vector<4x1x128xf32> to vector<4x128xf32>
    %c0_37 = arith.constant 0 : index
    %c3840 = arith.constant 3840 : index
    %67 = vector.load %arg6[%c0_37, %c3840] : memref<4x4608xf32, #tpu.memory_space<vmem>>, vector<4x128xf32>
    tpu.vector_store %arg6[%c0_37, %c3840], %66 {strides = array<i32>} : memref<4x4608xf32, #tpu.memory_space<vmem>>, vector<4x128xf32>,
    %c0_38 = arith.constant 0 : index
    %c3968 = arith.constant 3968 : index
    %68 = vector.load %arg6[%c0_38, %c3968] : memref<4x4608xf32, #tpu.memory_space<vmem>>, vector<4x128xf32>
    tpu.vector_store %arg6[%c0_38, %c3968], %66 {strides = array<i32>} : memref<4x4608xf32, #tpu.memory_space<vmem>>, vector<4x128xf32>,
    %69 = vector.extract_strided_slice %8 {offsets = [0, 15, 0], sizes = [4, 1, 128], strides = [1, 1, 1]} : vector<4x16x128xf32> to vector<4x1x128xf32>
    %70 = vector.shape_cast %69 : vector<4x1x128xf32> to vector<4x128xf32>
    %c0_39 = arith.constant 0 : index
    %c4096 = arith.constant 4096 : index
    %71 = vector.load %arg6[%c0_39, %c4096] : memref<4x4608xf32, #tpu.memory_space<vmem>>, vector<4x128xf32>
    tpu.vector_store %arg6[%c0_39, %c4096], %70 {strides = array<i32>} : memref<4x4608xf32, #tpu.memory_space<vmem>>, vector<4x128xf32>,
    %c0_40 = arith.constant 0 : index
    %c4224 = arith.constant 4224 : index
    %72 = vector.load %arg6[%c0_40, %c4224] : memref<4x4608xf32, #tpu.memory_space<vmem>>, vector<4x128xf32>
    tpu.vector_store %arg6[%c0_40, %c4224], %70 {strides = array<i32>} : memref<4x4608xf32, #tpu.memory_space<vmem>>, vector<4x128xf32>,
    %c0_41 = arith.constant 0 : index
    %c127 = arith.constant 127 : index
    %73 = vector.load %arg6[%c0_41, %c127] : memref<4x4608xf32, #tpu.memory_space<vmem>>, vector<4x4096xf32>
    %c0_42 = arith.constant 0 : index
    %c0_43 = arith.constant 0 : index
    %74 = vector.load %arg7[%c0_42, %c0_43] : memref<36x4096xf32, #tpu.memory_space<vmem>>, vector<4x4096xf32>
    tpu.vector_store %arg7[%c0_42, %c0_43], %73 {strides = array<i32>} : memref<36x4096xf32, #tpu.memory_space<vmem>>, vector<4x4096xf32>,
    %c0_44 = arith.constant 0 : index
    %c128 = arith.constant 128 : index
    %75 = vector.load %arg6[%c0_44, %c128] : memref<4x4608xf32, #tpu.memory_space<vmem>>, vector<4x4096xf32>
    %c4 = arith.constant 4 : index
    %c0_45 = arith.constant 0 : index
    %76 = vector.load %arg7[%c4, %c0_45] : memref<36x4096xf32, #tpu.memory_space<vmem>>, vector<4x4096xf32>
    tpu.vector_store %arg7[%c4, %c0_45], %75 {strides = array<i32>} : memref<36x4096xf32, #tpu.memory_space<vmem>>, vector<4x4096xf32>,
    %c0_46 = arith.constant 0 : index
    %c129 = arith.constant 129 : index
    %77 = vector.load %arg6[%c0_46, %c129] : memref<4x4608xf32, #tpu.memory_space<vmem>>, vector<4x4096xf32>
    %c8 = arith.constant 8 : index
    %c0_47 = arith.constant 0 : index
    %78 = vector.load %arg7[%c8, %c0_47] : memref<36x4096xf32, #tpu.memory_space<vmem>>, vector<4x4096xf32>
    tpu.vector_store %arg7[%c8, %c0_47], %77 {strides = array<i32>} : memref<36x4096xf32, #tpu.memory_space<vmem>>, vector<4x4096xf32>,
    %c0_48 = arith.constant 0 : index
    %c255 = arith.constant 255 : index
    %79 = vector.load %arg6[%c0_48, %c255] : memref<4x4608xf32, #tpu.memory_space<vmem>>, vector<4x4096xf32>
    %c12 = arith.constant 12 : index
    %c0_49 = arith.constant 0 : index
    %80 = vector.load %arg7[%c12, %c0_49] : memref<36x4096xf32, #tpu.memory_space<vmem>>, vector<4x4096xf32>
    tpu.vector_store %arg7[%c12, %c0_49], %79 {strides = array<i32>} : memref<36x4096xf32, #tpu.memory_space<vmem>>, vector<4x4096xf32>,
    %c0_50 = arith.constant 0 : index
    %c256_51 = arith.constant 256 : index
    %81 = vector.load %arg6[%c0_50, %c256_51] : memref<4x4608xf32, #tpu.memory_space<vmem>>, vector<4x4096xf32>
    %c16 = arith.constant 16 : index
    %c0_52 = arith.constant 0 : index
    %82 = vector.load %arg7[%c16, %c0_52] : memref<36x4096xf32, #tpu.memory_space<vmem>>, vector<4x4096xf32>
    tpu.vector_store %arg7[%c16, %c0_52], %81 {strides = array<i32>} : memref<36x4096xf32, #tpu.memory_space<vmem>>, vector<4x4096xf32>,
    %c0_53 = arith.constant 0 : index
    %c257 = arith.constant 257 : index
    %83 = vector.load %arg6[%c0_53, %c257] : memref<4x4608xf32, #tpu.memory_space<vmem>>, vector<4x4096xf32>
    %c20 = arith.constant 20 : index
    %c0_54 = arith.constant 0 : index
    %84 = vector.load %arg7[%c20, %c0_54] : memref<36x4096xf32, #tpu.memory_space<vmem>>, vector<4x4096xf32>
    tpu.vector_store %arg7[%c20, %c0_54], %83 {strides = array<i32>} : memref<36x4096xf32, #tpu.memory_space<vmem>>, vector<4x4096xf32>,
    %c0_55 = arith.constant 0 : index
    %c383 = arith.constant 383 : index
    %85 = vector.load %arg6[%c0_55, %c383] : memref<4x4608xf32, #tpu.memory_space<vmem>>, vector<4x4096xf32>
    %c24 = arith.constant 24 : index
    %c0_56 = arith.constant 0 : index
    %86 = vector.load %arg7[%c24, %c0_56] : memref<36x4096xf32, #tpu.memory_space<vmem>>, vector<4x4096xf32>
    tpu.vector_store %arg7[%c24, %c0_56], %85 {strides = array<i32>} : memref<36x4096xf32, #tpu.memory_space<vmem>>, vector<4x4096xf32>,
    %c0_57 = arith.constant 0 : index
    %c384_58 = arith.constant 384 : index
    %87 = vector.load %arg6[%c0_57, %c384_58] : memref<4x4608xf32, #tpu.memory_space<vmem>>, vector<4x4096xf32>
    %c28 = arith.constant 28 : index
    %c0_59 = arith.constant 0 : index
    %88 = vector.load %arg7[%c28, %c0_59] : memref<36x4096xf32, #tpu.memory_space<vmem>>, vector<4x4096xf32>
    tpu.vector_store %arg7[%c28, %c0_59], %87 {strides = array<i32>} : memref<36x4096xf32, #tpu.memory_space<vmem>>, vector<4x4096xf32>,
    %c0_60 = arith.constant 0 : index
    %c385 = arith.constant 385 : index
    %89 = vector.load %arg6[%c0_60, %c385] : memref<4x4608xf32, #tpu.memory_space<vmem>>, vector<4x4096xf32>
    %c32 = arith.constant 32 : index
    %c0_61 = arith.constant 0 : index
    %90 = vector.load %arg7[%c32, %c0_61] : memref<36x4096xf32, #tpu.memory_space<vmem>>, vector<4x4096xf32>
    tpu.vector_store %arg7[%c32, %c0_61], %89 {strides = array<i32>} : memref<36x4096xf32, #tpu.memory_space<vmem>>, vector<4x4096xf32>,
    %c0_62 = arith.constant 0 : index
    %c0_63 = arith.constant 0 : index
    %91 = vector.load %arg3[%c0_62, %c0_63] : memref<8x36xf32, #tpu.memory_space<vmem>>, vector<8x36xf32>
    %c0_64 = arith.constant 0 : index
    %c0_65 = arith.constant 0 : index
    %92 = vector.load %arg7[%c0_64, %c0_65] : memref<36x4096xf32, #tpu.memory_space<vmem>>, vector<36x4096xf32>
    %cst_66 = arith.constant dense<0.000000e+00> : vector<8x4096xf32>
    %93 = tpu.matmul %91, %92, %cst_66 {dimension_numbers = #tpu.dot_dimension_numbers<[1], [0], [0], [1], [0, 0, 1, 1], [], []>} : vector<8x36xf32>, vector<36x4096xf32>, vector<8x4096xf32> -> vector<8x4096xf32>
    %c0_67 = arith.constant 0 : index
    %c0_68 = arith.constant 0 : index
    %94 = vector.load %arg4[%c0_67, %c0_68] : memref<8x1xf32, #tpu.memory_space<vmem>>, vector<8x1xf32>
    %95 = vector.broadcast %94 : vector<8x1xf32> to vector<8x4096xf32>
    %96 = arith.addf %93, %95 : vector<8x4096xf32>
    %c0_69 = arith.constant 0 : index
    %c0_70 = arith.constant 0 : index
    %c0_71 = arith.constant 0 : index
    %97 = vector.load %arg5[%c0_69, %c0_70, %c0_71] : memref<1x8x4096xf32, #tpu.memory_space<vmem>>, vector<1x8x4096xf32>
    %98 = vector.shape_cast %97 : vector<1x8x4096xf32> to vector<8x4096xf32>
    %99 = vector.shape_cast %96 : vector<8x4096xf32> to vector<1x8x4096xf32>
    tpu.vector_store %arg5[%c0_69, %c0_70, %c0_71], %99 {strides = array<i32>} : memref<1x8x4096xf32, #tpu.memory_space<vmem>>, vector<1x8x4096xf32>,
    return
  }
  func.func @transform_0(%arg0: i32) -> (i32, i32, i32) {
    %c0_i32 = arith.constant 0 : i32
    %c0_i32_0 = arith.constant 0 : i32
    %c0_i32_1 = arith.constant 0 : i32
    return %arg0, %c0_i32, %c0_i32_0 : i32, i32, i32
  }
  func.func @transform_1(%arg0: i32) -> (i32, i32) {
    %c0_i32 = arith.constant 0 : i32
    %c0_i32_0 = arith.constant 0 : i32
    %c0_i32_1 = arith.constant 0 : i32
    return %c0_i32, %c0_i32_0 : i32, i32
  }
  func.func @transform_2(%arg0: i32) -> (i32, i32) {
    %c0_i32 = arith.constant 0 : i32
    %c0_i32_0 = arith.constant 0 : i32
    %c0_i32_1 = arith.constant 0 : i32
    return %c0_i32, %c0_i32_0 : i32, i32
  }
  func.func @transform_3(%arg0: i32) -> (i32, i32) {
    %c0_i32 = arith.constant 0 : i32
    %c0_i32_0 = arith.constant 0 : i32
    %c0_i32_1 = arith.constant 0 : i32
    return %c0_i32, %c0_i32_0 : i32, i32
  }
  func.func @transform_4(%arg0: i32) -> (i32, i32, i32) {
    %c0_i32 = arith.constant 0 : i32
    %c0_i32_0 = arith.constant 0 : i32
    %c0_i32_1 = arith.constant 0 : i32
    return %arg0, %c0_i32, %c0_i32_0 : i32, i32, i32
  }
}

</mosaic_0001>

<bundles_post_ra>
// kernel: tpu_custom_call.1
= control target key start
LH: loop header
LB: loop body
LE: loop exit
PB: predicated region body
PF: predicated region fallthrough
CT: control target
= control target key end

     0   :  { %9 = vsyncpa [#allocation5], 0  ;;  %s5674_s0 = inlined_call_operand.vmem [shape: f32[2,64,16], index: 0, kind: input, shape index: {}]   ;;  %s5675_s1 = inlined_call_operand.vmem [shape: f32[16,128], index: 1, kind: input, shape index: {}]   ;;  %s5676_s2 = inlined_call_operand.vmem [shape: f32[8,36], index: 2, kind: input, shape index: {}]   ;;  %s5677_s3 = inlined_call_operand.vmem [shape: f32[8,1], index: 3, kind: input, shape index: {}]   ;;  %s5678_s4 = inlined_call_operand.hbm [shape: f32[2,8,4096], index: 4, kind: output, shape index: {}]  }
   0x1   :  { %11 = vsyncpa [#allocation5 + $0x1], 0  ;;  %s3963_s15 = smov 0   ;;  %s3965_s16 = smov 0  }
   0x2   :  { %s3967_s17 = smov 0   ;;  %s3969_s18 = smov 0  }
   0x3 LB: > { %s3984_s19 = sadd.s32 4294967295, %s3931_s18   ;;  %s3626_s20 = sadd.s32 4294967294, %s3931_s18   ;;  %s3931_s18 = sphi %s3969_s18, %s5684_s18   ;;  %s3927_s17 = sphi %s3967_s17, %s5683_s17   ;;  %s3923_s16 = sphi %s3965_s16, %s5682_s16   ;;  %s3919_s15 = sphi %s3963_s15, %s5681_s15  }
   0x4   : > { %s3988_s21 = sadd.s32 1, %s3931_s18   ;;  %s113_s22 = sadd.s32 1, %s3927_s17 }
   0x5   : > { %s110_s23 = ssub.s32 %s3931_s18, %s3988_s21  ;;  %p123_p0 = scmp.ne.s32.totalorder %s3927_s17, %s3923_s16 }
   0x6   : > { %p111_p1 = scmp.eq.s32.totalorder %s110_s23, 0  ;;  %p124_p2 = scmp.eq.s32.totalorder %s3984_s19, 1 }
   0x7   : > { %p129_p3 = scmp.ne.s32.totalorder %s3923_s16, %s3919_s15  ;;  %p130_p4 = scmp.eq.s32.totalorder %s3626_s20, 1 }
   0x8   : > { %s3999_s24 = scalar_select %p111_p1, %s3927_s17, %s113_s22  }
   0x9   : > { %p4001_p5 = por %p124_p2, %p123_p0  ;;  %p4005_p6 = por %p130_p4, %p129_p3 }
   0xa   : > { %p3629_p7 = scmp.ge.s32.totalorder %s3931_s18, 1  ;;  %p165_p8 = scmp.lt.s32.totalorder %s3931_s18, 3 }
   0xc   : > { %p166_p9 = pnand %p3629_p7, %p165_p8 }
   0xd   : > { %p191_p10 = scmp.lt.s32.totalorder (!%p166_p9), %s3984_s19, 1  ;;  %s3934_s10 = smov (!%p166_p9), 1  }
   0xe   : > { %169 = sbr.rel (%p166_p9) target bundleno = 992 (0x3e0), region = 36  ;;  %s3935_s11 = smov (!%p166_p9), 127  }
   0xf   : > { %s188_s27 = sand.u32 (!%p166_p9), 1, %s3923_s16   ;;  %s3695_s30 = sshll.u32 (!%p166_p9), %s3984_s19, 12 }
  0x10   : > { %s3630_s28 = sshll.u32 (!%p166_p9), %s188_s27, 8  ;;  %s3565_s8 = scalar_lea.hbm (!%p166_p9), %s5678_s4, %s3695_s30 }
  0x11   : > { %s5577_s29 = scalar_lea.vmem (!%p166_p9), [#allocation4], %s3630_s28 }
  0x13   : > { %v207_v0 = vld [vmem:[%s5675_s1 + $0x8] sm:$0xff]  ;;  %v206_v1 = vld [vmem:[%s5675_s1] sm:$0xff]  ;;  %v3933_v2 = vmov 0.0   ;;  %s192_s5 = scalar_select %p191_p10, %s3984_s19, 1  ;;  %vm208_vm0 = vcmask 130048   ;;  %vm668_vm1 = vcmask 7168  }
  0x14   : > { %3706 = vmatprep.subr.mxu0 %v207_v0  ;;  %3722 = vmatprep.subr.mxu1 %v207_v0  ;;  %196 = vst [vmem:[#allocation2] sm:$0xff] %v3933_v2  ;;  %197 = vst [vmem:[#allocation2 + $0x88] sm:$0xff] %v3933_v2  ;;  %v586_v6 = vcombine.high %v3933_v2, %v3933_v2  ;;  %vm343_vm2 = vcmask 1041409   ;;  %vm345_vm3 = vcmask 1045509   ;;  %vm348_vm4 = vcmask 1042434   ;;  %s3937_s19 = smov [#allocation4]  }
  0x15   : > { %3707 = vmatpush3.msra.mxu0 %v207_v0  ;;  %3724 = vmatpush3.msra.mxu1 %v207_v0  ;;  %s3694_s6 = sshll.u32 %s192_s5, 6  ;;  %vm350_vm5 = vcmask 1046534   ;;  %vm353_vm6 = vcmask 1043459   ;;  %vm355_vm7 = vcmask 1047559   ;;  %vm977_vm8 = vcmask 1039360   ;;  %s3567_s5 = sshll.u32 %s5577_s29, 4  ;;  %s3568_s5 = int_to_ptr.vmem [resolvable:$true] %s3567_s5 }
  0x16   : > { %3708 = vmatprep.subr.mxu0 %v206_v1  ;;  %3723 = vmatprep.subr.mxu1 %v206_v1  ;;  %s195_s9 = scalar_lea.vmem %s5674_s0, %s3694_s6  ;;  %vm2287_vm9 = vcmask 1043456   ;;  %vm2283_vm10 = vcmask 293888  }
  0x17   : > { %3709 = vmatpush3.msra.mxu0 %v206_v1  ;;  %3725 = vmatpush3.msra.mxu1 %v206_v1  ;;  %v198_v3 = vld [vmem:[%s195_s9] sm:$0xff]  ;;  %v199_v4 = vld [vmem:[%s195_s9 + $0x8] sm:$0xff]  ;;  %v200_v5 = vld [vmem:[%s195_s9 + $0x10] sm:$0xff] }
  0x18   : > { %602 = vrot.lane.b32.xlu0 %v3933_v2, %s3934_s10  ;;  %3710 = vmatprep.mubr.msk.f32.mxu0 %vm208_vm0, %v198_v3  ;;  %v204_v7 = vld [vmem:[%s195_s9 + $0x30] sm:$0xff]  ;;  %v205_v8 = vld [vmem:[%s195_s9 + $0x38] sm:$0xff]  ;;  %v202_v10 = vld [vmem:[%s195_s9 + $0x20] sm:$0xff] }
  0x19   : > { %3711 = vmatmul.mubr.msk.f32.vlgmr.msra.gmra.mxu0 %vm208_vm0, %v199_v4  ;;  %3719 = vmatprep.mubr.msk.f32.mxu1 %vm208_vm0, %v204_v7  ;;  %v201_v9 = vld [vmem:[%s195_s9 + $0x18] sm:$0xff]  ;;  %v203_v11 = vld [vmem:[%s195_s9 + $0x28] sm:$0xff]  ;;  %s3553_s9 = scalar_lea.sflag [#allocation5], %s188_s27 }
  0x1a   : > { %3713 = vmatprep.mubr.msk.f32.mxu0 %vm208_vm0, %v200_v5  ;;  %3720 = vmatmul.mubr.msk.f32.vlgmr.msra.gmra.mxu1 %vm208_vm0, %v205_v8 }
  0x1b   : > { %2448 = vmatprep.mubr.f32.mxu1 %v3933_v2 }
  0x1c   : > { %604 = vrot.lane.b32.xlu0 %v586_v6, %s3934_s10 }
  0x1d   : > { %3714 = vmatmul.mubr.msk.f32.gmra.mxu0 %vm208_vm0, %v201_v9 }
  0x1e   : > { %3716 = vmatprep.mubr.msk.f32.mxu0 %vm208_vm0, %v202_v10 }
  0x21   : > { %3717 = vmatmul.mubr.msk.f32.gmra.mxu0 %vm208_vm0, %v203_v11 }
  0x22   : > { %2519 = vmatprep.mubr.f32.mxu0 %v3933_v2 }
  0x8a   : > { %v603_v12 = vpop.permute.xlu0 %602 }
  0x8e   : > { %v4032_v13 = vpop.permute.xlu0 %604 }
  0x8f   : > { %v669_v14 = vsel %vm668_vm1, %v603_v12, %v4032_v13 }
  0x90   : > { %733 = vst [vmem:[#allocation3 + $0x2b0] sm:$0xf] %v669_v14 }
  0xd9   : > { %v4036_v15 = vpop.f32.mrf.mxu0 }
  0xda   : > { %v464_v16 = vrot.slane %v4036_v15, 1  ;;  %v476_v17 = vrot.slane %v4036_v15, 2  ;;  %v488_v18 = vrot.slane %v4036_v15, 3  ;;  %v4043_v19 = vcombine.high %v4036_v15, %v4036_v15  ;;  %v4045_v20 = vpop.f32.mrf.mxu1 }
  0xdb   : > { %v4047_v21 = vpop.f32.mrf.mxu0  ;;  %v458_v22 = vrot.slane %v4045_v20, 5  ;;  %v470_v23 = vrot.slane %v4045_v20, 6  ;;  %v482_v24 = vrot.slane %v4045_v20, 7  ;;  %v4054_v25 = vcombine.high %v4045_v20, %v4045_v20 }
  0xdc   : > { %v516_v26 = vrot.slane %v4043_v19, 1  ;;  %v528_v27 = vrot.slane %v4043_v19, 2  ;;  %v540_v28 = vrot.slane %v4043_v19, 3  ;;  %v360_v29 = vrot.slane %v4047_v21, 1 }
  0xdd   : > { %v372_v30 = vrot.slane %v4047_v21, 2  ;;  %v384_v31 = vrot.slane %v4047_v21, 3  ;;  %v4064_v32 = vcombine.high %v4047_v21, %v4047_v21  ;;  %v3715_v33 = vpop.f32.mrf.mxu0  ;;  %v510_v34 = vrot.slane %v4054_v25, 5 }
  0xde   : > { %v452_v35 = vrot.slane %v3715_v33, 7  ;;  %v465_v36 = vsel %vm343_vm2, %v3715_v33, %v464_v16  ;;  %v477_v37 = vrot.slane %v3715_v33, 1  ;;  %v489_v38 = vrot.slane %v3715_v33, 2 }
  0xdf   : > { %v412_v39 = vrot.slane %v4064_v32, 1  ;;  %v424_v40 = vrot.slane %v4064_v32, 2  ;;  %v436_v41 = vrot.slane %v4064_v32, 3  ;;  %v466_v42 = vsel %vm345_vm3, %v3715_v33, %v465_v36  ;;  %v4072_v43 = vpop.f32.mrf.mxu0 }
  0xe0   : > { %v453_v44 = vsel %vm343_vm2, %v452_v35, %v4036_v15  ;;  %v490_v45 = vsel %vm343_vm2, %v489_v38, %v488_v18  ;;  %v4077_v46 = vcombine.high %v3715_v33, %v3715_v33  ;;  %v342_v47 = vrot.slane %v4072_v43, 7 }
  0xe1   : > { %v454_v48 = vsel %vm345_vm3, %v452_v35, %v453_v44  ;;  %v491_v49 = vsel %vm345_vm3, %v489_v38, %v490_v45  ;;  %v361_v50 = vsel %vm343_vm2, %v4072_v43, %v360_v29  ;;  %v373_v51 = vrot.slane %v4072_v43, 1  ;;  %v3718_v0 = vpop.f32.mrf.mxu0 }
  0xe2   : > { %v504_v52 = vrot.slane %v4077_v46, 7  ;;  %v517_v53 = vsel %vm343_vm2, %v4077_v46, %v516_v26  ;;  %v529_v54 = vrot.slane %v4077_v46, 1  ;;  %v541_v55 = vrot.slane %v4077_v46, 2 }
  0xe3   : > { %v4092_v56 = vsel %vm345_vm3, %v4077_v46, %v517_v53  ;;  %v344_v57 = vsel %vm343_vm2, %v342_v47, %v4047_v21  ;;  %v4098_v58 = vsel %vm345_vm3, %v4072_v43, %v361_v50  ;;  %v385_v59 = vrot.slane %v4072_v43, 2  ;;  %v4171_v53 = vpop.f32.mrf.mxu0 }
  0xe4   : > { %v505_v60 = vsel %vm343_vm2, %v504_v52, %v4043_v19  ;;  %v542_v61 = vsel %vm343_vm2, %v541_v55, %v540_v28  ;;  %v4105_v62 = vsel %vm345_vm3, %v342_v47, %v344_v57  ;;  %v4109_v63 = vcombine.high %v4072_v43, %v4072_v43 }
  0xe5   : > { %v506_v1 = vsel %vm345_vm3, %v504_v52, %v505_v60  ;;  %v543_v2 = vsel %vm345_vm3, %v541_v55, %v542_v61  ;;  %v386_v3 = vsel %vm343_vm2, %v385_v59, %v384_v31  ;;  %v522_v4 = vrot.slane %v4054_v25, 6 }
  0xe6   : > { %v4116_v5 = vsel %vm345_vm3, %v385_v59, %v386_v3  ;;  %v400_v6 = vrot.slane %v4109_v63, 7  ;;  %v413_v7 = vsel %vm343_vm2, %v4109_v63, %v412_v39  ;;  %v425_v8 = vrot.slane %v4109_v63, 1 }
  0xe7   : > { %v4124_v9 = vsel %vm345_vm3, %v4109_v63, %v413_v7  ;;  %v437_v10 = vrot.slane %v4109_v63, 2  ;;  %v534_v11 = vrot.slane %v4054_v25, 7  ;;  %v455_v12 = vrot.slane %v3718_v0, 6 }
  0xe8   : > { %v401_v14 = vsel %vm343_vm2, %v400_v6, %v4064_v32  ;;  %v467_v16 = vrot.slane %v3718_v0, 7  ;;  %v478_v18 = vsel %vm343_vm2, %v477_v37, %v476_v17  ;;  %v492_v26 = vrot.slane %v3718_v0, 1 }
  0xe9   : > { %v4134_v28 = vsel %vm345_vm3, %v400_v6, %v401_v14  ;;  %v438_v29 = vsel %vm343_vm2, %v437_v10, %v436_v41  ;;  %v456_v31 = vsel %vm348_vm4, %v455_v12, %v454_v48  ;;  %v479_v33 = vsel %vm345_vm3, %v477_v37, %v478_v18  ;;  %v4151_v37 = vpop.f32.mrf.mxu1 }
  0xea   : > { %v4140_v35 = vsel %vm345_vm3, %v437_v10, %v438_v29  ;;  %v457_v36 = vsel %vm350_vm5, %v455_v12, %v456_v31  ;;  %v468_v38 = vsel %vm348_vm4, %v467_v16, %v466_v42  ;;  %v480_v15 = vsel %vm348_vm4, %v3718_v0, %v479_v33 }
  0xeb   : > { %v459_v17 = vsel %vm353_vm6, %v458_v22, %v457_v36  ;;  %v469_v39 = vsel %vm350_vm5, %v467_v16, %v468_v38  ;;  %v481_v41 = vsel %vm350_vm5, %v3718_v0, %v480_v15  ;;  %v493_v44 = vsel %vm348_vm4, %v492_v26, %v491_v49 }
  0xec   : > { %v460_v45 = vsel %vm355_vm7, %v458_v22, %v459_v17  ;;  %v471_v42 = vsel %vm353_vm6, %v470_v23, %v469_v39  ;;  %v483_v47 = vsel %vm353_vm6, %v482_v24, %v481_v41  ;;  %v494_v48 = vsel %vm350_vm5, %v492_v26, %v493_v44 }
  0xed   : > { %462 = vst [vmem:[#allocation2 + $0x48] sm:$0xf] %v460_v45  ;;  %463 = vst [vmem:[#allocation2 + $0x4c] sm:$0xf] %v460_v45  ;;  %v472_v49 = vsel %vm355_vm7, %v470_v23, %v471_v42  ;;  %v484_v22 = vsel %vm355_vm7, %v482_v24, %v483_v47  ;;  %v495_v50 = vsel %vm353_vm6, %v4045_v20, %v494_v48  ;;  %v352_v24 = vrot.slane %v4151_v37, 5 }
  0xee   : > { %v502_v52 = vcombine.high %v3718_v0, %v3718_v0  ;;  %474 = vst [vmem:[#allocation2 + $0x50] sm:$0xf] %v472_v49  ;;  %475 = vst [vmem:[#allocation2 + $0x54] sm:$0xf] %v472_v49  ;;  %v496_v55 = vsel %vm355_vm7, %v4045_v20, %v495_v50  ;;  %v530_v23 = vsel %vm343_vm2, %v529_v54, %v528_v27  ;;  %v366_v57 = vrot.slane %v4151_v37, 6 }
  0xef   : > { %486 = vst [vmem:[#allocation2 + $0x58] sm:$0xf] %v484_v22  ;;  %487 = vst [vmem:[#allocation2 + $0x5c] sm:$0xf] %v484_v22  ;;  %v531_v61 = vsel %vm345_vm3, %v529_v54, %v530_v23  ;;  %v378_v19 = vrot.slane %v4151_v37, 7  ;;  %v4189_v27 = vcombine.high %v4151_v37, %v4151_v37  ;;  %v347_v3 = vrot.slane %v4171_v53, 6 }
  0xf0   : > { %498 = vst [vmem:[#allocation2 + $0x60] sm:$0xf] %v496_v55  ;;  %499 = vst [vmem:[#allocation2 + $0x64] sm:$0xf] %v496_v55  ;;  %v507_v59 = vrot.slane %v502_v52, 6  ;;  %v519_v60 = vrot.slane %v502_v52, 7  ;;  %v532_v20 = vsel %vm348_vm4, %v502_v52, %v531_v61  ;;  %v374_v17 = vsel %vm343_vm2, %v373_v51, %v372_v30 }
  0xf1   : > { %v544_v0 = vrot.slane %v502_v52, 1  ;;  %v533_v46 = vsel %vm350_vm5, %v502_v52, %v532_v20  ;;  %v406_v33 = vrot.slane %v4189_v27, 5  ;;  %v363_v38 = vrot.slane %v4171_v53, 7 }
  0xf2   : > { %v508_v6 = vsel %vm348_vm4, %v507_v59, %v506_v1  ;;  %v520_v7 = vsel %vm348_vm4, %v519_v60, %v4092_v56  ;;  %v535_v14 = vsel %vm353_vm6, %v534_v11, %v533_v46  ;;  %v388_v39 = vrot.slane %v4171_v53, 1 }
  0xf3   : > { %v545_v54 = vsel %vm348_vm4, %v544_v0, %v543_v2  ;;  %v509_v10 = vsel %vm350_vm5, %v507_v59, %v508_v6  ;;  %v521_v12 = vsel %vm350_vm5, %v519_v60, %v520_v7  ;;  %v536_v1 = vsel %vm355_vm7, %v534_v11, %v535_v14 }
  0xf4   : > { %v546_v16 = vsel %vm350_vm5, %v544_v0, %v545_v54  ;;  %v511_v18 = vsel %vm353_vm6, %v510_v34, %v509_v10  ;;  %v523_v56 = vsel %vm353_vm6, %v522_v4, %v521_v12  ;;  %538 = vst [vmem:[#allocation2 + $0x78] sm:$0xf] %v536_v1  ;;  %539 = vst [vmem:[#allocation2 + $0x7c] sm:$0xf] %v536_v1  ;;  %v4219_v36 = vld [vmem:[#allocation2 + $0x48] sm:$0xff]  ;;  %v430_v11 = vrot.slane %v4189_v27, 7 }
  0xf5   : > { %v547_v2 = vsel %vm353_vm6, %v4054_v25, %v546_v16  ;;  %v512_v26 = vsel %vm355_vm7, %v510_v34, %v511_v18  ;;  %v524_v29 = vsel %vm355_vm7, %v522_v4, %v523_v56  ;;  %v418_v34 = vrot.slane %v4189_v27, 6  ;;  %1367 = vst [vmem:[#allocation3 + $0x418] sm:$0xf] %v4219_v36  ;;  %v4250_v45 = vld [vmem:[#allocation2 + $0x4c] sm:$0xff] }
  0xf6   : > { %v548_v31 = vsel %vm355_vm7, %v4054_v25, %v547_v2  ;;  %526 = vst [vmem:[#allocation2 + $0x70] sm:$0xf] %v524_v29  ;;  %527 = vst [vmem:[#allocation2 + $0x74] sm:$0xf] %v524_v29  ;;  %v349_v4 = vsel %vm348_vm4, %v347_v3, %v4105_v62  ;;  %v563_v25 = vld [vmem:[#allocation2 + $0x58] sm:$0xff]  ;;  %v4236_v41 = vcombine.high %v4171_v53, %v4171_v53  ;;  %v4262_v32 = vld [vmem:[#allocation2 + $0x50] sm:$0xff] }
  0xf7   : > { %550 = vst [vmem:[#allocation2 + $0x80] sm:$0xf] %v548_v31  ;;  %551 = vst [vmem:[#allocation2 + $0x84] sm:$0xf] %v548_v31  ;;  %v351_v15 = vsel %vm350_vm5, %v347_v3, %v349_v4  ;;  %646 = vrot.lane.b32.xlu0 %v563_v25, %s3934_s10  ;;  %v364_v44 = vsel %vm348_vm4, %v363_v38, %v4098_v58  ;;  %v375_v21 = vsel %vm345_vm3, %v373_v51, %v374_v17  ;;  %v4252_v42 = vld [vmem:[#allocation2 + $0x54] sm:$0xff]  ;;  %v4280_v52 = vld [vmem:[#allocation2 + $0x60] sm:$0xff] }
  0xf8   : > { %514 = vst [vmem:[#allocation2 + $0x68] sm:$0xf] %v512_v26  ;;  %515 = vst [vmem:[#allocation2 + $0x6c] sm:$0xf] %v512_v26  ;;  %v354_v62 = vsel %vm353_vm6, %v352_v24, %v351_v15  ;;  %v426_v30 = vsel %vm343_vm2, %v425_v8, %v424_v40  ;;  %v365_v48 = vsel %vm350_vm5, %v363_v38, %v364_v44  ;;  %v4265_v40 = vld [vmem:[#allocation2 + $0x5c] sm:$0xff]  ;;  %v403_v50 = vrot.slane %v4236_v41, 6 }
  0xf9   : > { %v356_v47 = vsel %vm355_vm7, %v352_v24, %v354_v62  ;;  %v376_v58 = vsel %vm348_vm4, %v4171_v53, %v375_v21  ;;  %v389_v43 = vsel %vm348_vm4, %v388_v39, %v4116_v5  ;;  %1889 = vst [vmem:[#allocation3 + $0x330] sm:$0xf0] %v4250_v45  ;;  %1891 = vst [vmem:[#allocation3 + $0x490] sm:$0xf0] %v4252_v42  ;;  %v4267_v51 = vld [vmem:[#allocation2 + $0x58] sm:$0xff]  ;;  %v415_v24 = vrot.slane %v4236_v41, 7 }
  0xfa   : > { %848 = vst [vmem:[#allocation3 + $0x220] sm:$0xf0] %v4250_v45  ;;  %850 = vst [vmem:[#allocation3 + $0x360] sm:$0xf0] %v4252_v42  ;;  %v367_v5 = vsel %vm353_vm6, %v366_v57, %v365_v48  ;;  %v377_v49 = vsel %vm350_vm5, %v4171_v53, %v376_v58  ;;  %v390_v22 = vsel %vm350_vm5, %v388_v39, %v389_v43  ;;  %v4422_v48 = vld [vmem:[#allocation2 + $0x48] sm:$0xff] }
  0xfb   : > { %358 = vst [vmem:[#allocation2 + $0x8] sm:$0xf] %v356_v47  ;;  %359 = vst [vmem:[#allocation2 + $0xc] sm:$0xf] %v356_v47  ;;  %v368_v55 = vsel %vm355_vm7, %v366_v57, %v367_v5  ;;  %v379_v53 = vsel %vm353_vm6, %v378_v19, %v377_v49  ;;  %v391_v23 = vsel %vm353_vm6, %v4151_v37, %v390_v22  ;;  %v4303_v0 = vld [vmem:[#allocation2 + $0x78] sm:$0xff]  ;;  %v4434_v49 = vld [vmem:[#allocation2 + $0x50] sm:$0xff] }
  0xfc   : > { %1369 = vst [vmem:[#allocation3 + $0x358] sm:$0xf] %v4262_v32  ;;  %1893 = vst [vmem:[#allocation3 + $0x120] sm:$0xf0] %v4265_v40  ;;  %v380_v59 = vsel %vm355_vm7, %v378_v19, %v379_v53  ;;  %v392_v57 = vsel %vm355_vm7, %v4151_v37, %v391_v23  ;;  %v404_v60 = vsel %vm348_vm4, %v403_v50, %v4134_v28  ;;  %v440_v28 = vrot.slane %v4236_v41, 1 }
  0xfd   : > { %1371 = vst [vmem:[#allocation3 + $0x88] sm:$0xf] %v4267_v51  ;;  %852 = vst [vmem:[#allocation3 + $0x380] sm:$0xf0] %v4265_v40  ;;  %v427_v61 = vsel %vm345_vm3, %v425_v8, %v426_v30  ;;  %v405_v20 = vsel %vm350_vm5, %v403_v50, %v404_v60  ;;  %v416_v19 = vsel %vm348_vm4, %v415_v24, %v4124_v9  ;;  %v4362_v31 = vld [vmem:[#allocation2 + $0x74] sm:$0xff] }
  0xfe   : > { %1373 = vst [vmem:[#allocation3] sm:$0xf] %v4280_v52  ;;  %370 = vst [vmem:[#allocation2 + $0x10] sm:$0xf] %v368_v55  ;;  %v428_v37 = vsel %vm348_vm4, %v4236_v41, %v427_v61  ;;  %v407_v63 = vsel %vm353_vm6, %v406_v33, %v405_v20  ;;  %v417_v8 = vsel %vm350_vm5, %v415_v24, %v416_v19  ;;  %v4413_v21 = vld [vmem:[#allocation2 + $0x70] sm:$0xff]  ;;  %v4446_v20 = vld [vmem:[#allocation2 + $0x80] sm:$0xff] }
  0xff   : > { %371 = vst [vmem:[#allocation2 + $0x14] sm:$0xf] %v368_v55  ;;  %382 = vst [vmem:[#allocation2 + $0x18] sm:$0xf] %v380_v59  ;;  %v429_v3 = vsel %vm350_vm5, %v4236_v41, %v428_v37  ;;  %v4318_v6 = vcombine.high %v563_v25, %v563_v25  ;;  %v408_v9 = vsel %vm355_vm7, %v406_v33, %v407_v63  ;;  %v4358_v26 = vld [vmem:[#allocation2 + $0x64] sm:$0xff]  ;;  %v4360_v29 = vld [vmem:[#allocation2 + $0x6c] sm:$0xff] }
 0x100   : > { %383 = vst [vmem:[#allocation2 + $0x1c] sm:$0xf] %v380_v59  ;;  %394 = vst [vmem:[#allocation2 + $0x20] sm:$0xf] %v392_v57  ;;  %v419_v7 = vsel %vm353_vm6, %v418_v34, %v417_v8  ;;  %v431_v46 = vsel %vm353_vm6, %v430_v11, %v429_v3  ;;  %v441_v54 = vsel %vm348_vm4, %v440_v28, %v4140_v35  ;;  %v4440_v59 = vld [vmem:[#allocation2 + $0x7c] sm:$0xff] }
 0x101   : > { %395 = vst [vmem:[#allocation2 + $0x24] sm:$0xf] %v392_v57  ;;  %1379 = vst [vmem:[#allocation3 + $0x438] sm:$0xf] %v4303_v0  ;;  %v420_v10 = vsel %vm355_vm7, %v418_v34, %v419_v7  ;;  %v432_v12 = vsel %vm355_vm7, %v430_v11, %v431_v46  ;;  %v442_v14 = vsel %vm350_vm5, %v440_v28, %v441_v54  ;;  %648 = vrot.lane.b32.xlu1 %v4318_v6, %s3934_s10  ;;  %v4371_v34 = vld [vmem:[#allocation2 + $0x68] sm:$0xff]  ;;  %v564_v37 = vld [vmem:[#allocation2 + $0x60] sm:$0xff] }
 0x102   : > { %410 = vst [vmem:[#allocation2 + $0x28] sm:$0xf] %v408_v9  ;;  %411 = vst [vmem:[#allocation2 + $0x2c] sm:$0xf] %v408_v9  ;;  %v443_v35 = vsel %vm353_vm6, %v4189_v27, %v442_v14  ;;  %v4342_v16 = vld [vmem:[#allocation2 + $0x8] sm:$0xff]  ;;  %v4451_v19 = vcombine.high %v4422_v48, %v4422_v48  ;;  %v4463_v46 = vcombine.high %v4434_v49, %v4434_v49 }
 0x103   : > { %434 = vst [vmem:[#allocation2 + $0x38] sm:$0xf] %v432_v12  ;;  %435 = vst [vmem:[#allocation2 + $0x3c] sm:$0xf] %v432_v12  ;;  %v4344_v18 = vld [vmem:[#allocation2 + $0x4] sm:$0xff]  ;;  %v444_v56 = vsel %vm355_vm7, %v4189_v27, %v443_v35  ;;  %v4350_v1 = vcombine.high %v4342_v16, %v4342_v16 }
 0x104   : > { %422 = vst [vmem:[#allocation2 + $0x30] sm:$0xf] %v420_v10  ;;  %423 = vst [vmem:[#allocation2 + $0x34] sm:$0xf] %v420_v10  ;;  %v4354_v2 = vcombine.low %v4344_v18, %v4344_v18  ;;  %v4442_v57 = vld [vmem:[#allocation2 + $0x84] sm:$0xff] }
 0x105   : > { %1351 = vst [vmem:[#allocation3 + $0x318] sm:$0xf] %v4342_v16  ;;  %830 = vst [vmem:[#allocation3 + $0x3b0] sm:$0xf0] %v4344_v18  ;;  %v4366_v33 = vld [vmem:[#allocation2 + $0xc] sm:$0xff] }
 0x106   : > { %446 = vst [vmem:[#allocation2 + $0x40] sm:$0xf] %v444_v56  ;;  %447 = vst [vmem:[#allocation2 + $0x44] sm:$0xf] %v444_v56  ;;  %v4364_v27 = vld [vmem:[#allocation2 + $0x10] sm:$0xff]  ;;  %v4388_v15 = vcombine.low %v4366_v33, %v4366_v33  ;;  %v1848_v56 = vcombine.low %v4250_v45, %v4250_v45  ;;  %v1851_v45 = vcombine.low %v4358_v26, %v4358_v26 }
 0x107   : > { %1895 = vst [vmem:[#allocation3 + $0x208] sm:$0xf0] %v4358_v26  ;;  %1897 = vst [vmem:[#allocation3 + $0x428] sm:$0xf0] %v4360_v29  ;;  %v4376_v11 = vld [vmem:[#allocation2 + $0x18] sm:$0xff]  ;;  %v4384_v25 = vcombine.high %v4364_v27, %v4364_v27 }
 0x108   : > { %1899 = vst [vmem:[#allocation3 + $0x180] sm:$0xf0] %v4362_v31  ;;  %854 = vst [vmem:[#allocation3 + $0x4a0] sm:$0xf0] %v4358_v26  ;;  %v4378_v4 = vld [vmem:[#allocation2 + $0x14] sm:$0xff]  ;;  %v4380_v38 = vld [vmem:[#allocation2 + $0x1c] sm:$0xff]  ;;  %614 = vrot.lane.b32.xlu0 %v4376_v11, %s3934_s10  ;;  %1444 = vrot.lane.b32.xlu1 %v4376_v11, %s3935_s11  ;;  %v4432_v5 = vcombine.high %v4376_v11, %v4376_v11  ;;  %v1855_v26 = vcombine.low %v4442_v57, %v4442_v57 }
 0x109   : > { %856 = vst [vmem:[#allocation3 + $0xb8] sm:$0xf0] %v4360_v29  ;;  %858 = vst [vmem:[#allocation3 + $0x480] sm:$0xf0] %v4362_v31  ;;  %v1289_v17 = vld [vmem:[#allocation2 + $0x18] sm:$0xff]  ;;  %v4404_v41 = vcombine.low %v4378_v4, %v4378_v4  ;;  %v4409_v62 = vld [vmem:[#allocation2 + $0x20] sm:$0xff]  ;;  %v4417_v30 = vcombine.low %v4380_v38, %v4380_v38 }
 0x10a   : > { %1873 = vst [vmem:[#allocation3 + $0x2f8] sm:$0xf0] %v4366_v33  ;;  %1353 = vst [vmem:[#allocation3 + $0x80] sm:$0xf] %v4364_v27  ;;  %v767_v39 = vld [vmem:[#allocation2 + $0x14] sm:$0xff]  ;;  %v4411_v44 = vld [vmem:[#allocation2 + $0x1c] sm:$0xff]  ;;  %v1321_v60 = vcombine.high %v1289_v17, %v1289_v17  ;;  %v1322_v63 = vcombine.high %v4409_v62, %v4409_v62 }
 0x10b   : > { %1352 = vst [vmem:[#allocation3 + $0x3a0] sm:$0xf] %v4350_v1  ;;  %832 = vst [vmem:[#allocation3 + $0x18] sm:$0xf0] %v4366_v33  ;;  %v1811_v47 = vld [vmem:[#allocation2 + $0x24] sm:$0xff]  ;;  %v1812_v58 = vld [vmem:[#allocation2 + $0x2c] sm:$0xff]  ;;  %v799_v61 = vcombine.low %v767_v39, %v767_v39  ;;  %v800_v8 = vcombine.low %v4411_v44, %v4411_v44 }
 0x10c   : > { %829 = vst [vmem:[#allocation3 + $0x2b0] sm:$0xf0] %v4354_v2  ;;  %1375 = vst [vmem:[#allocation3 + $0x278] sm:$0xf] %v4371_v34  ;;  %638 = vrot.lane.b32.xlu0 %v4422_v48, %s3934_s10  ;;  %606 = vrot.lane.b32.xlu1 %v4342_v16, %s3934_s10  ;;  %v1291_v43 = vld [vmem:[#allocation2 + $0x28] sm:$0xff]  ;;  %v1813_v22 = vld [vmem:[#allocation2 + $0x34] sm:$0xff]  ;;  %v1843_v28 = vcombine.low %v1811_v47, %v1811_v47  ;;  %v1844_v3 = vcombine.low %v1812_v58, %v1812_v58 }
 0x10d   : > { %1875 = vst [vmem:[#allocation3 + $0x3c0] sm:$0xf0] %v4378_v4  ;;  %1877 = vst [vmem:[#allocation3 + $0x2e0] sm:$0xf0] %v4380_v38  ;;  %v1292_v50 = vld [vmem:[#allocation2 + $0x30] sm:$0xff]  ;;  %v1814_v55 = vld [vmem:[#allocation2 + $0x3c] sm:$0xff]  ;;  %v1323_v9 = vcombine.high %v1291_v43, %v1291_v43  ;;  %v1845_v7 = vcombine.low %v1813_v22, %v1813_v22 }
 0x10e   : > { %1872 = vst [vmem:[#allocation3 + $0x298] sm:$0xf0] %v4388_v15  ;;  %1354 = vst [vmem:[#allocation3 + $0x400] sm:$0xf] %v4384_v25  ;;  %v1293_v53 = vld [vmem:[#allocation2 + $0x38] sm:$0xff]  ;;  %v1815_v23 = vld [vmem:[#allocation2 + $0x44] sm:$0xff]  ;;  %v1324_v54 = vcombine.high %v1292_v50, %v1292_v50  ;;  %v1846_v10 = vcombine.low %v1814_v55, %v1814_v55 }
 0x10f   : > { %831 = vst [vmem:[#allocation3 + $0x4d8] sm:$0xf0] %v4388_v15  ;;  %1355 = vst [vmem:[#allocation3 + $0x228] sm:$0xf] %v1289_v17  ;;  %v1294_v24 = vld [vmem:[#allocation2 + $0x40] sm:$0xff]  ;;  %v1325_v12 = vcombine.high %v1293_v53, %v1293_v53  ;;  %v1847_v14 = vcombine.low %v1815_v23, %v1815_v23  ;;  %v598_v17 = vcombine.high %v564_v37, %v564_v37 }
 0x110   : > { %834 = vst [vmem:[#allocation3 + $0x328] sm:$0xf0] %v767_v39  ;;  %1357 = vst [vmem:[#allocation3 + $0x288] sm:$0xf] %v4409_v62  ;;  %642 = vrot.lane.b32.xlu0 %v4434_v49, %s3934_s10  ;;  %616 = vrot.lane.b32.xlu1 %v4432_v5, %s3934_s10  ;;  %v1326_v35 = vcombine.high %v1294_v24, %v1294_v24  ;;  %v1849_v39 = vcombine.low %v4252_v42, %v4252_v42 }
 0x111   : > { %836 = vst [vmem:[#allocation3 + $0x378] sm:$0xf0] %v4411_v44  ;;  %1377 = vst [vmem:[#allocation3 + $0x90] sm:$0xf] %v4413_v21  ;;  %v1327_v62 = vcombine.high %v4219_v36, %v4219_v36  ;;  %v1328_v44 = vcombine.high %v4262_v32, %v4262_v32  ;;  %v1330_v42 = vcombine.high %v4280_v52, %v4280_v52 }
 0x112   : > { %1874 = vst [vmem:[#allocation3 + $0x68] sm:$0xf0] %v4404_v41  ;;  %1879 = vst [vmem:[#allocation3 + $0x1c8] sm:$0xf0] %v1811_v47  ;;  %v1852_v36 = vcombine.low %v4360_v29, %v4360_v29  ;;  %v1853_v32 = vcombine.low %v4362_v31, %v4362_v31  ;;  %v1854_v52 = vcombine.low %v4440_v59, %v4440_v59 }
 0x113   : > { %838 = vst [vmem:[#allocation3 + $0x488] sm:$0xf0] %v1811_v47  ;;  %1876 = vst [vmem:[#allocation3 + $0x368] sm:$0xf0] %v4417_v30  ;;  %v1850_v47 = vcombine.low %v4265_v40, %v4265_v40  ;;  %v1331_v40 = vcombine.high %v4371_v34, %v4371_v34  ;;  %v1333_v29 = vcombine.high %v4303_v0, %v4303_v0  ;;  %v4510_v0 = vld [vmem:[#allocation2 + $0x54] sm:$0xff] }
 0x114   : > { %1881 = vst [vmem:[#allocation3 + $0x408] sm:$0xf0] %v1812_v58  ;;  %1359 = vst [vmem:[#allocation3 + $0x4b0] sm:$0xf] %v1291_v43  ;;  %650 = vrot.lane.b32.xlu0 %v564_v37, %s3934_s10  ;;  %640 = vrot.lane.b32.xlu1 %v4451_v19, %s3934_s10  ;;  %v4485_v43 = vld [vmem:[#allocation2 + $0x4c] sm:$0xff]  ;;  %v1334_v31 = vcombine.high %v4446_v20, %v4446_v20  ;;  %v1419_v34 = vcombine.low %v4376_v11, %v4376_v11 }
 0x115   : > { %840 = vst [vmem:[#allocation3 + $0x4f0] sm:$0xf0] %v1812_v58  ;;  %1883 = vst [vmem:[#allocation3 + $0x98] sm:$0xf0] %v1813_v22  ;;  %v1329_v58 = vcombine.high %v4267_v51, %v4267_v51  ;;  %v1332_v51 = vcombine.high %v4413_v21, %v4413_v21  ;;  %v4522_v21 = vld [vmem:[#allocation2 + $0x20] sm:$0xff]  ;;  %v1417_v37 = vcombine.low %v4342_v16, %v4342_v16 }
 0x116   : > { %1361 = vst [vmem:[#allocation3 + $0x200] sm:$0xf] %v1292_v50  ;;  %842 = vst [vmem:[#allocation3 + $0x2a8] sm:$0xf0] %v1813_v22  ;;  %v4527_v22 = vld [vmem:[#allocation2 + $0x38] sm:$0xff]  ;;  %v4533_v50 = vld [vmem:[#allocation2 + $0x68] sm:$0xff] }
 0x117   : > { %1885 = vst [vmem:[#allocation3 + $0xc8] sm:$0xf0] %v1814_v55  ;;  %1363 = vst [vmem:[#allocation3 + $0x1b0] sm:$0xf] %v1293_v53  ;;  %v590_v53 = vcombine.high %v4522_v21, %v4522_v21 }
 0x118   : > { %1887 = vst [vmem:[#allocation3 + $0x28] sm:$0xf0] %v1815_v23  ;;  %844 = vst [vmem:[#allocation3 + $0x60] sm:$0xf0] %v1814_v55  ;;  %1654 = vrot.lane.b32.xlu0 %v4376_v11, %s3934_s10  ;;  %644 = vrot.lane.b32.xlu1 %v4463_v46, %s3934_s10  ;;  %v4565_v11 = vcombine.high %v4485_v43, %v4485_v43  ;;  %v1425_v55 = vcombine.low %v4422_v48, %v4422_v48 }
 0x119   : > { %846 = vst [vmem:[#allocation3 + $0x388] sm:$0xf0] %v1815_v23  ;;  %1365 = vst [vmem:[#allocation3 + $0x4e8] sm:$0xf] %v1294_v24  ;;  %v4590_v23 = vld [vmem:[#allocation2 + $0x28] sm:$0xff]  ;;  %v4597_v24 = vcombine.high %v4527_v22, %v4527_v22 }
 0x11a   : > { %1901 = vst [vmem:[#allocation3 + $0x178] sm:$0xf0] %v4440_v59  ;;  %1903 = vst [vmem:[#allocation3 + $0x2f0] sm:$0xf0] %v4442_v57  ;;  %v4607_v57 = vcombine.high %v4533_v50, %v4533_v50 }
 0x11b   : > { %860 = vst [vmem:[#allocation3 + $0x2a0] sm:$0xf0] %v4440_v59  ;;  %1381 = vst [vmem:[#allocation3 + $0x3e0] sm:$0xf] %v4446_v20  ;;  %v4599_v59 = vld [vmem:[#allocation2 + $0x30] sm:$0xff]  ;;  %v1939_v20 = vcombine.high %v4378_v4, %v4378_v4 }
 0x11c   : > { %1356 = vst [vmem:[#allocation3 + $0x348] sm:$0xf] %v1321_v60  ;;  %833 = vst [vmem:[#allocation3 + $0x450] sm:$0xf0] %v799_v61  ;;  %1986 = vrot.lane.b32.xlu0 %v4485_v43, %s3935_s11  ;;  %652 = vrot.lane.b32.xlu1 %v598_v17, %s3934_s10  ;;  %v4609_v60 = vld [vmem:[#allocation2 + $0x40] sm:$0xff]  ;;  %v1938_v61 = vcombine.high %v4366_v33, %v4366_v33 }
 0x11d   : > { %1878 = vst [vmem:[#allocation3 + $0x3a8] sm:$0xf0] %v1843_v28  ;;  %837 = vst [vmem:[#allocation3 + $0x108] sm:$0xf0] %v1843_v28  ;;  %v1418_v28 = vcombine.low %v4364_v27, %v4364_v27 }
 0x11e   : > { %1358 = vst [vmem:[#allocation3 + $0x460] sm:$0xf] %v1322_v63  ;;  %835 = vst [vmem:[#allocation3 + $0x440] sm:$0xf0] %v800_v8 }
 0x11f   : > { %1880 = vst [vmem:[#allocation3 + $0x3d8] sm:$0xf0] %v1844_v3  ;;  %1360 = vst [vmem:[#allocation3 + $0x1d8] sm:$0xf] %v1323_v9  ;;  %v4656_v9 = vld [vmem:[#allocation2 + $0x24] sm:$0xff] }
 0x120   : > { %1882 = vst [vmem:[#allocation3 + $0xe8] sm:$0xf0] %v1845_v7  ;;  %839 = vst [vmem:[#allocation3 + $0x310] sm:$0xf0] %v1844_v3  ;;  %1678 = vrot.lane.b32.xlu0 %v4422_v48, %s3934_s10  ;;  %1958 = vrot.lane.b32.xlu1 %v4378_v4, %s3935_s11 }
 0x121   : > { %841 = vst [vmem:[#allocation3 + $0x308] sm:$0xf0] %v1845_v7  ;;  %1362 = vst [vmem:[#allocation3 + $0x50] sm:$0xf] %v1324_v54  ;;  %v4664_v54 = vld [vmem:[#allocation2 + $0x2c] sm:$0xff] }
 0x122   : > { %1884 = vst [vmem:[#allocation3 + $0x410] sm:$0xf0] %v1846_v10  ;;  %843 = vst [vmem:[#allocation3 + $0x398] sm:$0xf0] %v1846_v10 }
 0x123   : > { %1364 = vst [vmem:[#allocation3 + $0x150] sm:$0xf] %v1325_v12  ;;  %1886 = vst [vmem:[#allocation3 + $0x420] sm:$0xf0] %v1847_v14 }
 0x124   : > { %1366 = vst [vmem:[#allocation3 + $0x190] sm:$0xf] %v1326_v35  ;;  %845 = vst [vmem:[#allocation3 + $0xd8] sm:$0xf0] %v1847_v14  ;;  %1990 = vrot.lane.b32.xlu0 %v4510_v0, %s3935_s11  ;;  %1962 = vrot.lane.b32.xlu1 %v4380_v38, %s3935_s11 }
 0x125   : > { %1888 = vst [vmem:[#allocation3 + $0x290] sm:$0xf0] %v1848_v56  ;;  %847 = vst [vmem:[#allocation3 + $0x160] sm:$0xf0] %v1848_v56 }
 0x126   : > { %1890 = vst [vmem:[#allocation3 + $0x118] sm:$0xf0] %v1849_v39  ;;  %1368 = vst [vmem:[#allocation3 + $0x338] sm:$0xf] %v1327_v62 }
 0x127   : > { %1370 = vst [vmem:[#allocation3 + $0x158] sm:$0xf] %v1328_v44  ;;  %849 = vst [vmem:[#allocation3 + $0xa0] sm:$0xf0] %v1849_v39  ;;  %v1420_v39 = vcombine.low %v4522_v21, %v4522_v21 }
 0x128   : > { %1892 = vst [vmem:[#allocation3 + $0x4c8] sm:$0xf0] %v1850_v47  ;;  %1894 = vst [vmem:[#allocation3 + $0x1d0] sm:$0xf0] %v1851_v45  ;;  %610 = vrot.lane.b32.xlu0 %v4364_v27, %s3934_s10  ;;  %1646 = vrot.lane.b32.xlu1 %v4342_v16, %s3934_s10 }
 0x129   : > { %1372 = vst [vmem:[#allocation3 + $0x448] sm:$0xf] %v1329_v58  ;;  %1374 = vst [vmem:[#allocation3 + $0x2d0] sm:$0xf] %v1330_v42 }
 0x12a   : > { %851 = vst [vmem:[#allocation3 + $0x4f8] sm:$0xf0] %v1850_v47  ;;  %853 = vst [vmem:[#allocation3 + $0x458] sm:$0xf0] %v1851_v45 }
 0x12b   : > { %1896 = vst [vmem:[#allocation3 + $0xa8] sm:$0xf0] %v1852_v36  ;;  %1898 = vst [vmem:[#allocation3 + $0x268] sm:$0xf0] %v1853_v32 }
 0x12c   : > { %1376 = vst [vmem:[#allocation3 + $0x478] sm:$0xf] %v1331_v40  ;;  %1378 = vst [vmem:[#allocation3 + $0x138] sm:$0xf] %v1332_v51  ;;  %618 = vrot.lane.b32.xlu0 %v4522_v21, %s3934_s10  ;;  %1442 = vrot.lane.b32.xlu1 %v1419_v34, %s3935_s11  ;;  %v4707_v51 = vld [vmem:[#allocation2 + $0x34] sm:$0xff] }
 0x12d   : > { %855 = vst [vmem:[#allocation3 + $0x390] sm:$0xf0] %v1852_v36  ;;  %857 = vst [vmem:[#allocation3 + $0x270] sm:$0xf0] %v1853_v32 }
 0x12e   : > { %1900 = vst [vmem:[#allocation3 + $0x4b8] sm:$0xf0] %v1854_v52  ;;  %1902 = vst [vmem:[#allocation3 + $0x1e8] sm:$0xf0] %v1855_v26 }
 0x12f   : > { %1380 = vst [vmem:[#allocation3 + $0x2c8] sm:$0xf] %v1333_v29  ;;  %859 = vst [vmem:[#allocation3 + $0x1a8] sm:$0xf0] %v1854_v52  ;;  %v4717_v29 = vld [vmem:[#allocation2 + $0x3c] sm:$0xff] }
 0x130   : > { %1382 = vst [vmem:[#allocation3 + $0x130] sm:$0xf] %v1334_v31  ;;  %630 = vrot.lane.b32.xlu0 %v4527_v22, %s3934_s10  ;;  %1127 = vrot.lane.b32.xlu1 %v4344_v18, %s3934_s10 }
 0x134   : > { %654 = vrot.lane.b32.xlu0 %v4533_v50, %s3934_s10  ;;  %1131 = vrot.lane.b32.xlu1 %v4366_v33, %s3934_s10 }
 0x138   : > { %1954 = vrot.lane.b32.xlu0 %v4366_v33, %s3935_s11  ;;  %911 = vrot.lane.b32.xlu1 %v4344_v18, %s3935_s11 }
 0x13c   : > { %1650 = vrot.lane.b32.xlu0 %v4364_v27, %s3934_s10  ;;  %1656 = vrot.lane.b32.xlu1 %v4432_v5, %s3934_s10  ;;  %v4573_v5 = vcombine.high %v4510_v0, %v4510_v0 }
 0x140   : > { %1436 = vrot.lane.b32.xlu0 %v4342_v16, %s3935_s11  ;;  %1448 = vrot.lane.b32.xlu1 %v4522_v21, %s3935_s11 }
 0x144   : > { %1440 = vrot.lane.b32.xlu0 %v4364_v27, %s3935_s11  ;;  %1135 = vrot.lane.b32.xlu1 %v4378_v4, %s3934_s10 }
 0x148   : > { %915 = vrot.lane.b32.xlu0 %v4366_v33, %s3935_s11  ;;  %1139 = vrot.lane.b32.xlu1 %v4380_v38, %s3934_s10 }
 0x14c   : > { %919 = vrot.lane.b32.xlu0 %v4378_v4, %s3935_s11  ;;  %1460 = vrot.lane.b32.xlu1 %v4527_v22, %s3935_s11  ;;  %v895_v4 = vcombine.high %v4344_v18, %v4344_v18  ;;  %v1940_v18 = vcombine.high %v4380_v38, %v4380_v38 }
 0x150   : > { %1658 = vrot.lane.b32.xlu0 %v4522_v21, %s3934_s10  ;;  %1988 = vrot.lane.b32.xlu1 %v4565_v11, %s3935_s11 }
 0x154   : > { %923 = vrot.lane.b32.xlu0 %v4380_v38, %s3935_s11  ;;  %1992 = vrot.lane.b32.xlu1 %v4573_v5, %s3935_s11 }
 0x158   : > { %1670 = vrot.lane.b32.xlu0 %v4527_v22, %s3934_s10  ;;  %608 = vrot.lane.b32.xlu1 %v4350_v1, %s3934_s10 }
 0x15c   : > { %1466 = vrot.lane.b32.xlu0 %v1425_v55, %s3935_s11  ;;  %612 = vrot.lane.b32.xlu1 %v4384_v25, %s3934_s10  ;;  %v1423_v55 = vcombine.low %v4527_v22, %v4527_v22  ;;  %v591_v22 = vcombine.high %v4590_v23, %v4590_v23 }
 0x160   : > { %622 = vrot.lane.b32.xlu0 %v4590_v23, %s3934_s10  ;;  %620 = vrot.lane.b32.xlu1 %v590_v53, %s3934_s10 }
 0x164   : > { %626 = vrot.lane.b32.xlu0 %v4599_v59, %s3934_s10  ;;  %632 = vrot.lane.b32.xlu1 %v4597_v24, %s3934_s10 }
 0x168   : > { %634 = vrot.lane.b32.xlu0 %v4609_v60, %s3934_s10  ;;  %656 = vrot.lane.b32.xlu1 %v4607_v57, %s3934_s10 }
 0x169   : > { %v647_v33 = vpop.permute.xlu0 %646 }
 0x16c   : > { %1956 = vrot.lane.b32.xlu0 %v1938_v61, %s3935_s11  ;;  %1648 = vrot.lane.b32.xlu1 %v4350_v1, %s3934_s10 }
 0x170   : > { %1960 = vrot.lane.b32.xlu0 %v1939_v20, %s3935_s11  ;;  %1652 = vrot.lane.b32.xlu1 %v4384_v25, %s3934_s10 }
 0x173   : > { %v649_v1 = vpop.permute.xlu1 %648 }
 0x174   : > { %1434 = vrot.lane.b32.xlu0 %v1417_v37, %s3935_s11  ;;  %1438 = vrot.lane.b32.xlu1 %v1418_v28, %s3935_s11  ;;  %v691_v63 = vsel %vm668_vm1, %v647_v33, %v649_v1 }
 0x175   : > { %755 = vst [vmem:[#allocation3 + $0x4f8] sm:$0xf] %v691_v63 }
 0x178   : > { %1129 = vrot.lane.b32.xlu0 %v4388_v15, %s3934_s10  ;;  %913 = vrot.lane.b32.xlu1 %v895_v4, %s3935_s11  ;;  %v592_v4 = vcombine.high %v4599_v59, %v4599_v59 }
 0x17a   : > { %v4637_v16 = vpop.permute.xlu0 %614  ;;  %v4639_v27 = vpop.permute.xlu1 %1444 }
 0x17c   : > { %1133 = vrot.lane.b32.xlu0 %v4404_v41, %s3934_s10  ;;  %917 = vrot.lane.b32.xlu1 %v1938_v61, %s3935_s11 }
 0x17e   : > { %v4646_v25 = vpop.permute.xlu0 %638  ;;  %v4648_v8 = vpop.permute.xlu1 %606 }
 0x17f   : > { %v670_v15 = vsel %vm668_vm1, %v4032_v13, %v4648_v8 }
 0x180   : > { %1125 = vrot.lane.b32.xlu0 %v4354_v2, %s3934_s10  ;;  %734 = vst [vmem:[#allocation3 + $0x3b0] sm:$0xf] %v670_v15  ;;  %1964 = vrot.lane.b32.xlu1 %v1940_v18, %s3935_s11  ;;  %v4767_v15 = vld [vmem:[#allocation2 + $0x44] sm:$0xff] }
 0x182   : > { %v643_v41 = vpop.permute.xlu0 %642  ;;  %v617_v3 = vpop.permute.xlu1 %616 }
 0x183   : > { %v675_v38 = vsel %vm668_vm1, %v4637_v16, %v617_v3 }
 0x184   : > { %1966 = vrot.lane.b32.xlu0 %v4656_v9, %s3935_s11  ;;  %739 = vst [vmem:[#allocation3 + $0x440] sm:$0xf] %v675_v38  ;;  %1660 = vrot.lane.b32.xlu1 %v590_v53, %s3934_s10 }
 0x186   : > { %v651_v13 = vpop.permute.xlu0 %650  ;;  %v641_v7 = vpop.permute.xlu1 %640 }
 0x187   : > { %v692_v2 = vsel %vm668_vm1, %v649_v1, %v651_v13  ;;  %v687_v10 = vsel %vm668_vm1, %v4646_v25, %v641_v7  ;;  %v688_v12 = vsel %vm668_vm1, %v641_v7, %v643_v41  ;;  %v1941_v7 = vcombine.high %v4656_v9, %v4656_v9 }
 0x188   : > { %756 = vst [vmem:[#allocation3 + $0x380] sm:$0xf] %v692_v2  ;;  %1970 = vrot.lane.b32.xlu0 %v4664_v54, %s3935_s11  ;;  %751 = vst [vmem:[#allocation3 + $0x160] sm:$0xf] %v687_v10  ;;  %921 = vrot.lane.b32.xlu1 %v1939_v20, %s3935_s11 }
 0x189   : > { %752 = vst [vmem:[#allocation3 + $0x220] sm:$0xf] %v688_v12  ;;  %v1942_v12 = vcombine.high %v4664_v54, %v4664_v54 }
 0x18a   : > { %v4672_v14 = vpop.permute.xlu0 %1654  ;;  %v645_v35 = vpop.permute.xlu1 %644 }
 0x18b   : > { %v689_v56 = vsel %vm668_vm1, %v643_v41, %v645_v35  ;;  %v690_v17 = vsel %vm668_vm1, %v645_v35, %v647_v33  ;;  %v4774_v41 = vcombine.high %v4609_v60, %v4609_v60 }
 0x18c   : > { %1662 = vrot.lane.b32.xlu0 %v4590_v23, %s3934_s10  ;;  %753 = vst [vmem:[#allocation3 + $0xa0] sm:$0xf] %v689_v56  ;;  %754 = vst [vmem:[#allocation3 + $0x360] sm:$0xf] %v690_v17  ;;  %925 = vrot.lane.b32.xlu1 %v1940_v18, %s3935_s11  ;;  %v1421_v17 = vcombine.low %v4590_v23, %v4590_v23 }
 0x18e   : > { %v4681_v62 = vpop.permute.xlu0 %1986  ;;  %v653_v44 = vpop.permute.xlu1 %652 }
 0x18f   : > { %v693_v47 = vsel %vm668_vm1, %v651_v13, %v653_v44 }
 0x190   : > { %1446 = vrot.lane.b32.xlu0 %v1420_v39, %s3935_s11  ;;  %757 = vst [vmem:[#allocation3 + $0x458] sm:$0xf] %v693_v47  ;;  %1452 = vrot.lane.b32.xlu1 %v4590_v23, %s3935_s11  ;;  %v4808_v39 = vcombine.high %v4707_v51, %v4707_v51  ;;  %v1112_v23 = vcombine.low %v4656_v9, %v4656_v9 }
 0x192   : > { %v4687_v45 = vpop.permute.xlu0 %1678  ;;  %v4689_v58 = vpop.permute.xlu1 %1958 }
 0x194   : > { %927 = vrot.lane.b32.xlu0 %v4656_v9, %s3935_s11  ;;  %1456 = vrot.lane.b32.xlu1 %v4599_v59, %s3935_s11 }
 0x196   : > { %v4695_v42 = vpop.permute.xlu0 %1990  ;;  %v4697_v36 = vpop.permute.xlu1 %1962 }
 0x198   : > { %1137 = vrot.lane.b32.xlu0 %v4417_v30, %s3934_s10  ;;  %1143 = vrot.lane.b32.xlu1 %v4656_v9, %s3934_s10 }
 0x19a   : > { %v4703_v32 = vpop.permute.xlu0 %610  ;;  %v4705_v40 = vpop.permute.xlu1 %1646 }
 0x19c   : > { %1974 = vrot.lane.b32.xlu0 %v4707_v51, %s3935_s11  ;;  %1147 = vrot.lane.b32.xlu1 %v4664_v54, %s3934_s10 }
 0x19e   : > { %v4713_v52 = vpop.permute.xlu0 %618  ;;  %v1443_v26 = vpop.permute.xlu1 %1442 }
 0x19f   : > { %v676_v30 = vsel %vm668_vm1, %v617_v3, %v4713_v52  ;;  %v1504_v31 = vsel %vm977_vm8, %v1443_v26, %v4639_v27 }
 0x1a0   : > { %740 = vst [vmem:[#allocation3 + $0x378] sm:$0xf] %v676_v30  ;;  %1978 = vrot.lane.b32.xlu0 %v4717_v29, %s3935_s11  ;;  %1568 = vst [vmem:[#allocation3 + $0x228] sm:$0xf0] %v1504_v31  ;;  %1672 = vrot.lane.b32.xlu1 %v4597_v24, %s3934_s10 }
 0x1a2   : > { %v4725_v34 = vpop.permute.xlu0 %630  ;;  %v4727_v21 = vpop.permute.xlu1 %1127 }
 0x1a4   : > { %1666 = vrot.lane.b32.xlu0 %v4599_v59, %s3934_s10  ;;  %1464 = vrot.lane.b32.xlu1 %v4609_v60, %s3935_s11 }
 0x1a6   : > { %v4735_v53 = vpop.permute.xlu0 %654  ;;  %v4737_v61 = vpop.permute.xlu1 %1131 }
 0x1a7   : > { %v694_v24 = vsel %vm668_vm1, %v653_v44, %v4735_v53 }
 0x1a8   : > { %758 = vst [vmem:[#allocation3 + $0x4a0] sm:$0xf] %v694_v24  ;;  %1458 = vrot.lane.b32.xlu0 %v1423_v55, %s3935_s11  ;;  %1151 = vrot.lane.b32.xlu1 %v4707_v51, %s3934_s10 }
 0x1aa   : > { %v4744_v20 = vpop.permute.xlu0 %1954  ;;  %v4746_v37 = vpop.permute.xlu1 %911 }
 0x1ac   : > { %931 = vrot.lane.b32.xlu0 %v4664_v54, %s3935_s11  ;;  %1155 = vrot.lane.b32.xlu1 %v4717_v29, %s3934_s10 }
 0x1ae   : > { %v4754_v28 = vpop.permute.xlu0 %1650  ;;  %v1657_v33 = vpop.permute.xlu1 %1656 }
 0x1af   : > { %v1716_v1 = vsel %vm668_vm1, %v4672_v14, %v1657_v33 }
 0x1b0   : > { %935 = vrot.lane.b32.xlu0 %v4707_v51, %s3935_s11  ;;  %1780 = vst [vmem:[#allocation3 + $0x368] sm:$0xf] %v1716_v1  ;;  %624 = vrot.lane.b32.xlu1 %v591_v22, %s3934_s10  ;;  %v1422_v1 = vcombine.low %v4599_v59, %v4599_v59 }
 0x1b2   : > { %v4763_v63 = vpop.permute.xlu0 %1436  ;;  %v4765_v18 = vpop.permute.xlu1 %1448 }
 0x1b4   : > { %1982 = vrot.lane.b32.xlu0 %v4767_v15, %s3935_s11  ;;  %628 = vrot.lane.b32.xlu1 %v592_v4, %s3934_s10 }
 0x1b6   : > { %v4776_v3 = vpop.permute.xlu0 %1440  ;;  %v4778_v38 = vpop.permute.xlu1 %1135 }
 0x1b7   : > { %v1503_v13 = vsel %vm977_vm8, %v4776_v3, %v1443_v26 }
 0x1b8   : > { %1567 = vst [vmem:[#allocation3 + $0x400] sm:$0xf0] %v1503_v13  ;;  %1674 = vrot.lane.b32.xlu0 %v4609_v60, %s3934_s10  ;;  %636 = vrot.lane.b32.xlu1 %v4774_v41, %s3934_s10 }
 0x1ba   : > { %v4788_v2 = vpop.permute.xlu0 %915  ;;  %v4790_v10 = vpop.permute.xlu1 %1139 }
 0x1bc   : > { %939 = vrot.lane.b32.xlu0 %v4717_v29, %s3935_s11  ;;  %1968 = vrot.lane.b32.xlu1 %v1941_v7, %s3935_s11 }
 0x1be   : > { %v4797_v35 = vpop.permute.xlu0 %919  ;;  %v4799_v56 = vpop.permute.xlu1 %1460 }
 0x1c0   : > { %943 = vrot.lane.b32.xlu0 %v4767_v15, %s3935_s11  ;;  %1972 = vrot.lane.b32.xlu1 %v1942_v12, %s3935_s11 }
 0x1c2   : > { %v4810_v44 = vpop.permute.xlu0 %1658  ;;  %v1989_v47 = vpop.permute.xlu1 %1988 }
 0x1c3   : > { %v1717_v26 = vsel %vm668_vm1, %v1657_v33, %v4810_v44  ;;  %v2036_v30 = vsel %vm977_vm8, %v4681_v62, %v1989_v47  ;;  %v2037_v31 = vsel %vm977_vm8, %v1989_v47, %v4695_v42 }
 0x1c4   : > { %1781 = vst [vmem:[#allocation3 + $0x2e0] sm:$0xf] %v1717_v26  ;;  %1450 = vrot.lane.b32.xlu0 %v1421_v17, %s3935_s11  ;;  %2100 = vst [vmem:[#allocation3 + $0x468] sm:$0xf] %v2036_v30  ;;  %1976 = vrot.lane.b32.xlu1 %v4808_v39, %s3935_s11 }
 0x1c5   : > { %2101 = vst [vmem:[#allocation3 + $0xe0] sm:$0xf] %v2037_v31 }
 0x1c6   : > { %v4823_v55 = vpop.permute.xlu0 %923  ;;  %v4825_v24 = vpop.permute.xlu1 %1992 }
 0x1c7   : > { %v2038_v33 = vsel %vm977_vm8, %v4695_v42, %v4825_v24  ;;  %v1113_v42 = vcombine.low %v4664_v54, %v4664_v54 }
 0x1c8   : > { %1141 = vrot.lane.b32.xlu0 %v1112_v23, %s3934_s10  ;;  %2102 = vst [vmem:[#allocation3 + $0x58] sm:$0xf] %v2038_v33  ;;  %1664 = vrot.lane.b32.xlu1 %v591_v22, %s3934_s10  ;;  %v4876_v33 = vcombine.high %v4767_v15, %v4767_v15 }
 0x1ca   : > { %v4834_v13 = vpop.permute.xlu0 %1670  ;;  %v609_v17 = vpop.permute.xlu1 %608 }
 0x1cb   : > { %v671_v9 = vsel %vm668_vm1, %v4648_v8, %v609_v17  ;;  %v672_v47 = vsel %vm668_vm1, %v609_v17, %v4703_v32 }
 0x1cc   : > { %1454 = vrot.lane.b32.xlu0 %v1422_v1, %s3935_s11  ;;  %735 = vst [vmem:[#allocation3 + $0x4d8] sm:$0xf] %v671_v9  ;;  %736 = vst [vmem:[#allocation3 + $0x18] sm:$0xf] %v672_v47  ;;  %1668 = vrot.lane.b32.xlu1 %v592_v4, %s3934_s10  ;;  %v1114_v4 = vcombine.low %v4707_v51, %v4707_v51  ;;  %v1424_v51 = vcombine.low %v4609_v60, %v4609_v60 }
 0x1cd   : > { %v1116_v47 = vcombine.low %v4767_v15, %v4767_v15 }
 0x1ce   : > { %v4844_v22 = vpop.permute.xlu0 %1466  ;;  %v613_v59 = vpop.permute.xlu1 %612 }
 0x1cf   : > { %v673_v26 = vsel %vm668_vm1, %v4703_v32, %v613_v59  ;;  %v674_v8 = vsel %vm668_vm1, %v613_v59, %v4637_v16  ;;  %v1944_v16 = vcombine.high %v4717_v29, %v4717_v29 }
 0x1d0   : > { %1145 = vrot.lane.b32.xlu0 %v1113_v42, %s3934_s10  ;;  %737 = vst [vmem:[#allocation3 + $0x450] sm:$0xf] %v673_v26  ;;  %738 = vst [vmem:[#allocation3 + $0x328] sm:$0xf] %v674_v8  ;;  %929 = vrot.lane.b32.xlu1 %v1941_v7, %s3935_s11 }
 0x1d2   : > { %v4854_v30 = vpop.permute.xlu0 %622  ;;  %v621_v54 = vpop.permute.xlu1 %620 }
 0x1d3   : > { %v677_v31 = vsel %vm668_vm1, %v4713_v52, %v621_v54  ;;  %v678_v32 = vsel %vm668_vm1, %v621_v54, %v4854_v30 }
 0x1d4   : > { %1149 = vrot.lane.b32.xlu0 %v1114_v4, %s3934_s10  ;;  %741 = vst [vmem:[#allocation3 + $0x108] sm:$0xf] %v677_v31  ;;  %742 = vst [vmem:[#allocation3 + $0x488] sm:$0xf] %v678_v32  ;;  %933 = vrot.lane.b32.xlu1 %v1942_v12, %s3935_s11  ;;  %v1115_v12 = vcombine.low %v4717_v29, %v4717_v29  ;;  %v4907_v31 = vld [vmem:[#allocation2 + $0x5c] sm:$0xff] }
 0x1d6   : > { %v4866_v7 = vpop.permute.xlu0 %626  ;;  %v633_v23 = vpop.permute.xlu1 %632 }
 0x1d7   : > { %v683_v52 = vsel %vm668_vm1, %v4725_v34, %v633_v23 }
 0x1d8   : > { %1462 = vrot.lane.b32.xlu0 %v1424_v51, %s3935_s11  ;;  %747 = vst [vmem:[#allocation3 + $0x398] sm:$0xf] %v683_v52  ;;  %1980 = vrot.lane.b32.xlu1 %v1944_v16, %s3935_s11 }
 0x1da   : > { %v4878_v1 = vpop.permute.xlu0 %634  ;;  %v4880_v60 = vpop.permute.xlu1 %656 }
 0x1db   : > { %v684_v17 = vsel %vm668_vm1, %v633_v23, %v4878_v1  ;;  %v695_v9 = vsel %vm668_vm1, %v4735_v53, %v4880_v60 }
 0x1dc   : > { %748 = vst [vmem:[#allocation3 + $0x60] sm:$0xf] %v684_v17  ;;  %1153 = vrot.lane.b32.xlu0 %v1115_v12, %s3934_s10  ;;  %759 = vst [vmem:[#allocation3 + $0x390] sm:$0xf] %v695_v9  ;;  %1984 = vrot.lane.b32.xlu1 %v4876_v33, %s3935_s11 }
 0x1de   : > { %v1957_v29 = vpop.permute.xlu0 %1956  ;;  %v1649_v42 = vpop.permute.xlu1 %1648 }
 0x1df   : > { %v2020_v59 = vsel %vm977_vm8, %v4744_v20, %v1957_v29  ;;  %v2021_v26 = vsel %vm977_vm8, %v1957_v29, %v4689_v58  ;;  %v1712_v53 = vsel %vm668_vm1, %v4705_v40, %v1649_v42  ;;  %v1713_v8 = vsel %vm668_vm1, %v1649_v42, %v4754_v28 }
 0x1e0   : > { %2084 = vst [vmem:[#allocation3 + $0x3f0] sm:$0xf] %v2020_v59  ;;  %2085 = vst [vmem:[#allocation3 + $0x170] sm:$0xf] %v2021_v26  ;;  %1157 = vrot.lane.b32.xlu0 %v1116_v47, %s3934_s10  ;;  %1676 = vrot.lane.b32.xlu1 %v4774_v41, %s3934_s10 }
 0x1e1   : > { %1776 = vst [vmem:[#allocation3 + $0x298] sm:$0xf] %v1712_v53  ;;  %1777 = vst [vmem:[#allocation3 + $0x2f8] sm:$0xf] %v1713_v8 }
 0x1e2   : > { %v1961_v4 = vpop.permute.xlu0 %1960  ;;  %v1653_v20 = vpop.permute.xlu1 %1652 }
 0x1e3   : > { %v2022_v54 = vsel %vm977_vm8, %v4689_v58, %v1961_v4  ;;  %v2023_v40 = vsel %vm977_vm8, %v1961_v4, %v4697_v36  ;;  %v1714_v32 = vsel %vm668_vm1, %v4754_v28, %v1653_v20  ;;  %v1715_v51 = vsel %vm668_vm1, %v1653_v20, %v4672_v14 }
 0x1e4   : > { %2086 = vst [vmem:[#allocation3 + $0x198] sm:$0xf] %v2022_v54  ;;  %2087 = vst [vmem:[#allocation3 + $0x1b8] sm:$0xf] %v2023_v40  ;;  %1994 = vrot.lane.b32.xlu0 %v4907_v31, %s3935_s11  ;;  %937 = vrot.lane.b32.xlu1 %v4808_v39, %s3935_s11  ;;  %v1426_v4 = vcombine.low %v4434_v49, %v4434_v49 }
 0x1e5   : > { %1778 = vst [vmem:[#allocation3 + $0x68] sm:$0xf] %v1714_v32  ;;  %1779 = vst [vmem:[#allocation3 + $0x3c0] sm:$0xf] %v1715_v51  ;;  %v2184_v32 = vld [vmem:[#allocation3 + $0x400] sm:$0xff] }
 0x1e6   : > { %v1435_v58 = vpop.permute.xlu0 %1434  ;;  %v1439_v41 = vpop.permute.xlu1 %1438 }
 0x1e7   : > { %v1500_v23 = vsel %vm977_vm8, %v1435_v58, %v4763_v63  ;;  %v2246_v28 = vld [vmem:[#allocation3 + $0x170] sm:$0xf]  ;;  %v1501_v14 = vsel %vm977_vm8, %v4763_v63, %v1439_v41  ;;  %v1502_v52 = vsel %vm977_vm8, %v1439_v41, %v4776_v3 }
 0x1e8   : > { %v2245_v12 = vld [vmem:[#allocation3 + $0x3f0] sm:$0xf]  ;;  %v2214_v17 = vld [vmem:[#allocation3 + $0x2f8] sm:$0xff]  ;;  %1564 = vst [vmem:[#allocation3 + $0x318] sm:$0xf0] %v1500_v23  ;;  %1682 = vrot.lane.b32.xlu0 %v4434_v49, %s3934_s10  ;;  %3641 = vmatprep.subr.msk.mxu1 %vm2287_vm9, %v2246_v28 }
 0x1e9   : > { %1565 = vst [vmem:[#allocation3 + $0x3a0] sm:$0xf0] %v1501_v14  ;;  %1566 = vst [vmem:[#allocation3 + $0x80] sm:$0xf0] %v1502_v52  ;;  %v2213_v39 = vld [vmem:[#allocation3 + $0x298] sm:$0xff]  ;;  %3642 = vmatpush1.msk.msra.mxu1 %vm2287_vm9, %v2245_v12  ;;  %941 = vrot.lane.b32.xlu1 %v1944_v16, %s3935_s11  ;;  %v4936_v16 = vld [vmem:[#allocation2 + $0x58] sm:$0xff] }
 0x1ea   : > { %v1130_v9 = vpop.permute.xlu0 %1129  ;;  %2408 = vmatprep.subr.mxu1 %v2214_v17  ;;  %v914_v63 = vpop.permute.xlu1 %913 }
 0x1eb   : > { %v1192_v3 = vsel %vm668_vm1, %v4727_v21, %v1130_v9  ;;  %v1193_v29 = vsel %vm668_vm1, %v1130_v9, %v4737_v61  ;;  %2409 = vmatpush1.msra.mxu1 %v2213_v39  ;;  %v2248_v47 = vld [vmem:[#allocation3 + $0x1b8] sm:$0xf]  ;;  %v978_v42 = vsel %vm977_vm8, %v4746_v37, %v914_v63  ;;  %v979_v59 = vsel %vm977_vm8, %v914_v63, %v4788_v2 }
 0x1ec   : > { %v2247_v26 = vld [vmem:[#allocation3 + $0x198] sm:$0xf]  ;;  %v2216_v53 = vld [vmem:[#allocation3 + $0x3c0] sm:$0xff]  ;;  %1256 = vst [vmem:[#allocation3 + $0x3f8] sm:$0xf0] %v1192_v3  ;;  %1686 = vrot.lane.b32.xlu0 %v4936_v16, %s3934_s10  ;;  %3644 = vmatprep.subr.msk.mxu0 %vm2287_vm9, %v2248_v47  ;;  %v2215_v8 = vld [vmem:[#allocation3 + $0x68] sm:$0xff] }
 0x1ed   : > { %1257 = vst [vmem:[#allocation3 + $0xb0] sm:$0xf0] %v1193_v29  ;;  %1042 = vst [vmem:[#allocation3 + $0x38] sm:$0xf] %v978_v42  ;;  %3645 = vmatpush1.msk.msra.mxu0 %vm2287_vm9, %v2247_v26  ;;  %1680 = vrot.lane.b32.xlu1 %v4451_v19, %s3934_s10  ;;  %v2119_v29 = vld [vmem:[#allocation3 + $0x4d8] sm:$0xff] }
 0x1ee   : > { %1043 = vst [vmem:[#allocation3 + $0x3f8] sm:$0xf] %v979_v59  ;;  %v1134_v37 = vpop.permute.xlu0 %1133  ;;  %2479 = vmatprep.subr.mxu0 %v2216_v53  ;;  %v918_v20 = vpop.permute.xlu1 %917  ;;  %v4987_v59 = vld [vmem:[%s5676_s2] sm:$0xff]  ;;  %v1117_v53 = vcombine.low %v4485_v43, %v4485_v43 }
 0x1ef   : > { %v1194_v54 = vsel %vm668_vm1, %v4737_v61, %v1134_v37  ;;  %v1195_v40 = vsel %vm668_vm1, %v1134_v37, %v4778_v38  ;;  %2480 = vmatpush1.msra.mxu0 %v2215_v8  ;;  %v980_v51 = vsel %vm977_vm8, %v4788_v2, %v918_v20  ;;  %v981_v19 = vsel %vm977_vm8, %v918_v20, %v4797_v35  ;;  %v2181_v61 = vld [vmem:[#allocation3 + $0x318] sm:$0xff] }
 0x1f0   : > { %v2182_v58 = vld [vmem:[#allocation3 + $0x3a0] sm:$0xff]  ;;  %1258 = vst [vmem:[#allocation3 + $0x320] sm:$0xf0] %v1194_v54  ;;  %1259 = vst [vmem:[#allocation3 + $0x188] sm:$0xf0] %v1195_v40  ;;  %1470 = vrot.lane.b32.xlu0 %v1426_v4, %s3935_s11  ;;  %2481 = vmatprep.subr.mxu0 %v2184_v32  ;;  %v1427_v2 = vcombine.low %v4936_v16, %v4936_v16  ;;  %v2217_v32 = vld [vmem:[#allocation3 + $0x368] sm:$0xff] }
 0x1f1   : > { %v2183_v41 = vld [vmem:[#allocation3 + $0x80] sm:$0xff]  ;;  %1044 = vst [vmem:[#allocation3 + $0xb0] sm:$0xf] %v980_v51  ;;  %1045 = vst [vmem:[#allocation3 + $0x320] sm:$0xf] %v981_v19  ;;  %1684 = vrot.lane.b32.xlu1 %v4463_v46, %s3934_s10  ;;  %2410 = vmatprep.subr.mxu1 %v2182_v58  ;;  %v1118_v51 = vcombine.low %v4510_v0, %v4510_v0 }
 0x1f2   : > { %v1126_v23 = vpop.permute.xlu0 %1125  ;;  %2482 = vmatpush1.msra.mxu0 %v2183_v41  ;;  %2411 = vmatpush1.msra.mxu1 %v2181_v61  ;;  %v1965_v28 = vpop.permute.xlu1 %1964 }
 0x1f3   : > { %v1191_v14 = vsel %vm668_vm1, %v1126_v23, %v4727_v21  ;;  %v2024_v52 = vsel %vm977_vm8, %v4697_v36, %v1965_v28 }
 0x1f4   : > { %1255 = vst [vmem:[#allocation3 + $0x38] sm:$0xf0] %v1191_v14  ;;  %1474 = vrot.lane.b32.xlu0 %v1427_v2, %s3935_s11  ;;  %2088 = vst [vmem:[#allocation3 + $0xf0] sm:$0xf] %v2024_v52  ;;  %v5029_v2 = vld [vmem:[#allocation2 + $0x64] sm:$0xff] }
 0x1f5   : > { %v2150_v12 = vld [vmem:[#allocation3 + $0x3f8] sm:$0xff]  ;;  %1468 = vrot.lane.b32.xlu1 %v4422_v48, %s3935_s11 }
 0x1f6   : > { %2412 = vmatprep.subr.mxu1 %v2150_v12  ;;  %v4966_v46 = vpop.permute.xlu0 %1966  ;;  %v1661_v17 = vpop.permute.xlu1 %1660  ;;  %v2120_v48 = vld [vmem:[#allocation3 + $0x18] sm:$0xff] }
 0x1f7   : > { %v2025_v39 = vsel %vm977_vm8, %v1965_v28, %v4966_v46  ;;  %v1718_v21 = vsel %vm668_vm1, %v4810_v44, %v1661_v17  ;;  %v5045_v12 = vld [vmem:[#allocation2 + $0x6c] sm:$0xff] }
 0x1f8   : > { %v2152_v9 = vld [vmem:[#allocation3 + $0x320] sm:$0xff]  ;;  %v2151_v36 = vld [vmem:[#allocation3 + $0xb0] sm:$0xff]  ;;  %2089 = vst [vmem:[#allocation3 + $0x238] sm:$0xf] %v2025_v39  ;;  %947 = vrot.lane.b32.xlu0 %v4485_v43, %s3935_s11  ;;  %1782 = vst [vmem:[#allocation3 + $0x3a8] sm:$0xf] %v1718_v21  ;;  %v5057_v21 = vcombine.high %v5029_v2, %v5029_v2 }
 0x1f9   : > { %2483 = vmatprep.subr.mxu0 %v2152_v9  ;;  %1472 = vrot.lane.b32.xlu1 %v4434_v49, %s3935_s11  ;;  %v2118_v49 = vld [vmem:[#allocation3 + $0x3b0] sm:$0xff] }
 0x1fa   : > { %2484 = vmatpush1.msra.mxu0 %v2151_v36  ;;  %v4976_v63 = vpop.permute.xlu0 %1970  ;;  %v922_v3 = vpop.permute.xlu1 %921  ;;  %v1607_v9 = vld [vmem:[#allocation2 + $0x60] sm:$0xff] }
 0x1fb   : > { %2485 = vmatprep.subr.mxu0 %v2120_v48  ;;  %v2149_v47 = vld [vmem:[#allocation3 + $0x38] sm:$0xff]  ;;  %v982_v44 = vsel %vm977_vm8, %v4797_v35, %v922_v3  ;;  %v983_v42 = vsel %vm977_vm8, %v922_v3, %v4823_v55  ;;  %v2117_v35 = vld [vmem:[#allocation3 + $0x2b0] sm:$0xff] }
 0x1fc   : > { %2486 = vmatpush1.msra.mxu0 %v2119_v29  ;;  %951 = vrot.lane.b32.xlu0 %v4510_v0, %s3935_s11  ;;  %1046 = vst [vmem:[#allocation3 + $0x188] sm:$0xf] %v982_v44  ;;  %1047 = vst [vmem:[#allocation3 + $0x210] sm:$0xf] %v983_v42  ;;  %v2249_v54 = vld [vmem:[#allocation3 + $0xf0] sm:$0xf] }
 0x1fd   : > { %2413 = vmatpush1.msra.mxu1 %v2149_v47  ;;  %945 = vrot.lane.b32.xlu1 %v4876_v33, %s3935_s11  ;;  %v5003_v33 = vld [vmem:[#allocation2] sm:$0xff]  ;;  %v2122_v44 = vld [vmem:[#allocation3 + $0x328] sm:$0xff] }
 0x1fe   : > { %2414 = vmatprep.subr.mxu1 %v2118_v49  ;;  %v4991_v26 = vpop.permute.xlu0 %1662  ;;  %v926_v8 = vpop.permute.xlu1 %925  ;;  %3646 = vmatmul.mubr.msk.f32.vlgmr.msra.gmra.mxu0 %vm2283_vm10, %v4987_v59  ;;  %v2121_v49 = vld [vmem:[#allocation3 + $0x450] sm:$0xff] }
 0x1ff   : > { %2415 = vmatpush1.msra.mxu1 %v2117_v35  ;;  %v1719_v37 = vsel %vm668_vm1, %v1661_v17, %v4991_v26  ;;  %v2250_v4 = vld [vmem:[#allocation3 + $0x238] sm:$0xf]  ;;  %v984_v20 = vsel %vm977_vm8, %v4823_v55, %v926_v8  ;;  %2661 = vmatprep.mubr.f32.mxu0 %v5003_v33  ;;  %v2218_v55 = vld [vmem:[#allocation3 + $0x2e0] sm:$0xff]  ;;  %v1428_v35 = vcombine.low %v1607_v9, %v1607_v9 }
 0x200   : > { %3643 = vmatmul.mubr.msk.f32.vlgmr.msra.gmra.mxu1 %vm2283_vm10, %v4987_v59  ;;  %1783 = vst [vmem:[#allocation3 + $0x1c8] sm:$0xf] %v1719_v37  ;;  %1161 = vrot.lane.b32.xlu0 %v1117_v53, %s3934_s10  ;;  %1048 = vst [vmem:[#allocation3 + $0x78] sm:$0xf] %v984_v20  ;;  %v5077_v37 = vld [vmem:[#allocation2 + $0x68] sm:$0xff] }
 0x201   : > { %3647 = vmatprep.subr.msk.mxu1 %vm2287_vm9, %v2250_v4  ;;  %949 = vrot.lane.b32.xlu1 %v4565_v11, %s3935_s11  ;;  %v1429_v4 = vcombine.low %v5077_v37, %v5077_v37 }
 0x202   : > { %3648 = vmatpush1.msk.msra.mxu1 %vm2287_vm9, %v2249_v54  ;;  %v1447_v40 = vpop.permute.xlu0 %1446  ;;  %v5013_v19 = vpop.permute.xlu1 %1452  ;;  %2590 = vmatprep.mubr.f32.mxu1 %v5003_v33 }
 0x203   : > { %2550 = vmatprep.subr.mxu1 %v2218_v55  ;;  %v1505_v58 = vsel %vm977_vm8, %v4639_v27, %v1447_v40  ;;  %v1506_v41 = vsel %vm977_vm8, %v1447_v40, %v4765_v18  ;;  %v2153_v47 = vld [vmem:[#allocation3 + $0x188] sm:$0xff] }
 0x204   : > { %2551 = vmatpush1.msra.mxu1 %v2217_v32  ;;  %1569 = vst [vmem:[#allocation3 + $0x348] sm:$0xf0] %v1505_v58  ;;  %1570 = vst [vmem:[#allocation3 + $0x288] sm:$0xf0] %v1506_v41  ;;  %1165 = vrot.lane.b32.xlu0 %v1118_v51, %s3934_s10 }
 0x205   : > { %1159 = vrot.lane.b32.xlu1 %v4767_v15, %s3934_s10  ;;  %v5039_v15 = vcombine.high %v4907_v31, %v4907_v31 }
 0x206   : > { %v5023_v11 = vpop.permute.xlu0 %927  ;;  %v5025_v61 = vpop.permute.xlu1 %1456 }
 0x207   : > { %v985_v23 = vsel %vm977_vm8, %v926_v8, %v5023_v11  ;;  %v1641_v8 = vcombine.high %v1607_v9, %v1607_v9 }
 0x208   : > { %1049 = vst [vmem:[#allocation3 + $0x20] sm:$0xf] %v985_v23  ;;  %1998 = vrot.lane.b32.xlu0 %v5029_v2, %s3935_s11 }
 0x209   : > { %1163 = vrot.lane.b32.xlu1 %v4485_v43, %s3934_s10  ;;  %v2185_v43 = vld [vmem:[#allocation3 + $0x228] sm:$0xff] }
 0x20a   : > { %v1138_v27 = vpop.permute.xlu0 %1137  ;;  %v5035_v28 = vpop.permute.xlu1 %1143 }
 0x20b   : > { %v1196_v14 = vsel %vm668_vm1, %v4778_v38, %v1138_v27  ;;  %v1197_v52 = vsel %vm668_vm1, %v1138_v27, %v4790_v10  ;;  %v2186_v17 = vld [vmem:[#allocation3 + $0x348] sm:$0xff]  ;;  %v1119_v27 = vcombine.low %v4907_v31, %v4907_v31 }
 0x20c   : > { %1260 = vst [vmem:[#allocation3 + $0x210] sm:$0xf0] %v1196_v14  ;;  %1261 = vst [vmem:[#allocation3 + $0x78] sm:$0xf0] %v1197_v52  ;;  %2002 = vrot.lane.b32.xlu0 %v5045_v12, %s3935_s11  ;;  %2552 = vmatprep.subr.mxu1 %v2186_v17  ;;  %v1120_v17 = vcombine.low %v5029_v2, %v5029_v2 }
 0x20d   : > { %2553 = vmatpush1.msra.mxu1 %v2185_v43  ;;  %1996 = vrot.lane.b32.xlu1 %v5039_v15, %s3935_s11 }
 0x20e   : > { %v5051_v39 = vpop.permute.xlu0 %1974  ;;  %v5053_v38 = vpop.permute.xlu1 %1147 }
 0x210   : > { %1690 = vrot.lane.b32.xlu0 %v1607_v9, %s3934_s10 }
 0x211   : > { %2000 = vrot.lane.b32.xlu1 %v5057_v21, %s3935_s11 }
 0x212   : > { %v5062_v36 = vpop.permute.xlu0 %1978  ;;  %v1673_v48 = vpop.permute.xlu1 %1672 }
 0x213   : > { %v2154_v3 = vld [vmem:[#allocation3 + $0x210] sm:$0xff]  ;;  %v1724_v29 = vsel %vm668_vm1, %v4834_v13, %v1673_v48 }
 0x214   : > { %1694 = vrot.lane.b32.xlu0 %v4533_v50, %s3934_s10  ;;  %2554 = vmatprep.subr.mxu1 %v2154_v3  ;;  %1788 = vst [vmem:[#allocation3 + $0x410] sm:$0xf] %v1724_v29  ;;  %v5138_v29 = vld [vmem:[#allocation2 + $0x74] sm:$0xff] }
 0x215   : > { %2555 = vmatpush1.msra.mxu1 %v2153_v47  ;;  %1688 = vrot.lane.b32.xlu1 %v4318_v6, %s3934_s10  ;;  %v5152_v47 = vcombine.high %v5045_v12, %v5045_v12 }
 0x216   : > { %v5070_v42 = vpop.permute.xlu0 %1666  ;;  %2556 = vmatprep.subr.mxu1 %v2122_v44  ;;  %v5072_v53 = vpop.permute.xlu1 %1464  ;;  %v5154_v44 = vld [vmem:[#allocation2 + $0x7c] sm:$0xff] }
 0x217   : > { %2557 = vmatpush1.msra.mxu1 %v2121_v49  ;;  %v1515_v50 = vsel %vm977_vm8, %v5072_v53, %v4844_v22 }
 0x218   : > { %1478 = vrot.lane.b32.xlu0 %v1428_v35, %s3935_s11  ;;  %1579 = vst [vmem:[#allocation3 + $0x190] sm:$0xf0] %v1515_v50  ;;  %3649 = vmatmul.mubr.msk.f32.vlgmr.msra.gmra.mxu1 %vm2283_vm10, %v4987_v59 }
 0x219   : > { %1692 = vrot.lane.b32.xlu1 %v1641_v8, %s3934_s10  ;;  %2732 = vmatprep.mubr.f32.mxu1 %v5003_v33 }
 0x21a   : > { %v1459_v6 = vpop.permute.xlu0 %1458  ;;  %v5086_v20 = vpop.permute.xlu1 %1151 }
 0x21b   : > { %v1511_v54 = vsel %vm977_vm8, %v5025_v61, %v1459_v6  ;;  %v1512_v55 = vsel %vm977_vm8, %v1459_v6, %v4799_v56  ;;  %v5172_v6 = vld [vmem:[#allocation2 + $0x70] sm:$0xff] }
 0x21c   : > { %1575 = vst [vmem:[#allocation3 + $0x50] sm:$0xf0] %v1511_v54  ;;  %1576 = vst [vmem:[#allocation3 + $0x1b0] sm:$0xf0] %v1512_v55  ;;  %1482 = vrot.lane.b32.xlu0 %v1429_v4, %s3935_s11 }
 0x21d   : > { %1476 = vrot.lane.b32.xlu1 %v4936_v16, %s3935_s11 }
 0x21e   : > { %v5095_v40 = vpop.permute.xlu0 %931  ;;  %v5097_v32 = vpop.permute.xlu1 %1155 }
 0x220   : > { %955 = vrot.lane.b32.xlu0 %v4907_v31, %s3935_s11 }
 0x221   : > { %1480 = vrot.lane.b32.xlu1 %v1607_v9, %s3935_s11 }
 0x222   : > { %v5102_v51 = vpop.permute.xlu0 %935  ;;  %v625_v58 = vpop.permute.xlu1 %624 }
 0x223   : > { %v679_v41 = vsel %vm668_vm1, %v4854_v30, %v625_v58  ;;  %v680_v23 = vsel %vm668_vm1, %v625_v58, %v4866_v7 }
 0x224   : > { %959 = vrot.lane.b32.xlu0 %v5029_v2, %s3935_s11  ;;  %743 = vst [vmem:[#allocation3 + $0x310] sm:$0xf] %v679_v41  ;;  %744 = vst [vmem:[#allocation3 + $0x4f0] sm:$0xf] %v680_v23  ;;  %v2219_v23 = vld [vmem:[#allocation3 + $0x3a8] sm:$0xff] }
 0x225   : > { %953 = vrot.lane.b32.xlu1 %v4573_v5, %s3935_s11 }
 0x226   : > { %v5112_v16 = vpop.permute.xlu0 %1982  ;;  %v629_v14 = vpop.permute.xlu1 %628 }
 0x227   : > { %v681_v30 = vsel %vm668_vm1, %v4866_v7, %v629_v14  ;;  %v682_v52 = vsel %vm668_vm1, %v629_v14, %v4725_v34 }
 0x228   : > { %1169 = vrot.lane.b32.xlu0 %v1119_v27, %s3934_s10  ;;  %745 = vst [vmem:[#allocation3 + $0x308] sm:$0xf] %v681_v30  ;;  %746 = vst [vmem:[#allocation3 + $0x2a8] sm:$0xf] %v682_v52  ;;  %v5188_v30 = vld [vmem:[#allocation2 + $0x78] sm:$0xff] }
 0x229   : > { %957 = vrot.lane.b32.xlu1 %v5039_v15, %s3935_s11 }
 0x22a   : > { %v5123_v5 = vpop.permute.xlu0 %1674  ;;  %v637_v43 = vpop.permute.xlu1 %636 }
 0x22b   : > { %v1725_v9 = vsel %vm668_vm1, %v1673_v48, %v5123_v5  ;;  %v685_v7 = vsel %vm668_vm1, %v4878_v1, %v637_v43  ;;  %v686_v34 = vsel %vm668_vm1, %v637_v43, %v4646_v25 }
 0x22c   : > { %1789 = vst [vmem:[#allocation3 + $0xc8] sm:$0xf] %v1725_v9  ;;  %1173 = vrot.lane.b32.xlu0 %v1120_v17, %s3934_s10  ;;  %749 = vst [vmem:[#allocation3 + $0xd8] sm:$0xf] %v685_v7  ;;  %v1430_v7 = vcombine.low %v5172_v6, %v5172_v6 }
 0x22d   : > { %750 = vst [vmem:[#allocation3 + $0x388] sm:$0xf] %v686_v34  ;;  %1167 = vrot.lane.b32.xlu1 %v4510_v0, %s3934_s10 }
 0x22e   : > { %v5136_v15 = vpop.permute.xlu0 %939  ;;  %v1969_v3 = vpop.permute.xlu1 %1968 }
 0x22f   : > { %v2026_v48 = vsel %vm977_vm8, %v4966_v46, %v1969_v3  ;;  %v2027_v1 = vsel %vm977_vm8, %v1969_v3, %v4976_v63 }
 0x230   : > { %2006 = vrot.lane.b32.xlu0 %v5138_v29, %s3935_s11  ;;  %2090 = vst [vmem:[#allocation3 + $0x248] sm:$0xf] %v2026_v48  ;;  %2091 = vst [vmem:[#allocation3 + $0x4d0] sm:$0xf] %v2027_v1 }
 0x231   : > { %1171 = vrot.lane.b32.xlu1 %v4907_v31, %s3934_s10  ;;  %v5166_v31 = vcombine.high %v5138_v29, %v5138_v29 }
 0x232   : > { %v5148_v0 = vpop.permute.xlu0 %943  ;;  %v1973_v25 = vpop.permute.xlu1 %1972 }
 0x233   : > { %v2028_v46 = vsel %vm977_vm8, %v4976_v63, %v1973_v25  ;;  %v2029_v49 = vsel %vm977_vm8, %v1973_v25, %v5051_v39 }
 0x234   : > { %2010 = vrot.lane.b32.xlu0 %v5154_v44, %s3935_s11  ;;  %2092 = vst [vmem:[#allocation3 + $0x498] sm:$0xf] %v2028_v46  ;;  %2093 = vst [vmem:[#allocation3 + $0x240] sm:$0xf] %v2029_v49  ;;  %v2187_v46 = vld [vmem:[#allocation3 + $0x288] sm:$0xff] }
 0x235   : > { %2004 = vrot.lane.b32.xlu1 %v5152_v47, %s3935_s11 }
 0x236   : > { %v1451_v35 = vpop.permute.xlu0 %1450  ;;  %v1977_v8 = vpop.permute.xlu1 %1976 }
 0x237   : > { %v1507_v63 = vsel %vm977_vm8, %v4765_v18, %v1451_v35  ;;  %v1508_v50 = vsel %vm977_vm8, %v1451_v35, %v5013_v19  ;;  %v2030_v4 = vsel %vm977_vm8, %v5051_v39, %v1977_v8  ;;  %v2031_v54 = vsel %vm977_vm8, %v1977_v8, %v5062_v36  ;;  %v2252_v55 = vld [vmem:[#allocation3 + $0x4d0] sm:$0xf]  ;;  %v2251_v58 = vld [vmem:[#allocation3 + $0x248] sm:$0xf] }
 0x238   : > { %1571 = vst [vmem:[#allocation3 + $0x460] sm:$0xf0] %v1507_v63  ;;  %1572 = vst [vmem:[#allocation3 + $0x4b0] sm:$0xf0] %v1508_v50  ;;  %1698 = vrot.lane.b32.xlu0 %v5172_v6, %s3934_s10  ;;  %3650 = vmatprep.subr.msk.mxu0 %vm2287_vm9, %v2252_v55  ;;  %v2220_v18 = vld [vmem:[#allocation3 + $0x1c8] sm:$0xff] }
 0x239   : > { %2094 = vst [vmem:[#allocation3 + $0x100] sm:$0xf] %v2030_v4  ;;  %2095 = vst [vmem:[#allocation3 + $0x2d8] sm:$0xf] %v2031_v54  ;;  %2008 = vrot.lane.b32.xlu1 %v5166_v31, %s3935_s11  ;;  %3651 = vmatpush1.msk.msra.mxu0 %vm2287_vm9, %v2251_v58  ;;  %v2155_v4 = vld [vmem:[#allocation3 + $0x78] sm:$0xff] }
 0x23a   : > { %v1142_v39 = vpop.permute.xlu0 %1141  ;;  %2621 = vmatprep.subr.mxu0 %v2220_v18  ;;  %v1665_v41 = vpop.permute.xlu1 %1664  ;;  %v2124_v54 = vld [vmem:[#allocation3 + $0x378] sm:$0xff] }
 0x23b   : > { %v1198_v27 = vsel %vm668_vm1, %v4790_v10, %v1142_v39  ;;  %v1199_v14 = vsel %vm668_vm1, %v1142_v39, %v5035_v28  ;;  %v1720_v52 = vsel %vm668_vm1, %v4991_v26, %v1665_v41  ;;  %v1721_v17 = vsel %vm668_vm1, %v1665_v41, %v5070_v42  ;;  %2622 = vmatpush1.msra.mxu0 %v2219_v23  ;;  %v2254_v43 = vld [vmem:[#allocation3 + $0x240] sm:$0xf]  ;;  %v2253_v9 = vld [vmem:[#allocation3 + $0x498] sm:$0xf] }
 0x23c   : > { %1262 = vst [vmem:[#allocation3 + $0x20] sm:$0xf0] %v1198_v27  ;;  %1263 = vst [vmem:[#allocation3 + $0x3c8] sm:$0xf0] %v1199_v14  ;;  %1702 = vrot.lane.b32.xlu0 %v5188_v30, %s3934_s10  ;;  %3653 = vmatprep.subr.msk.mxu1 %vm2287_vm9, %v2254_v43  ;;  %v5202_v10 = vcombine.high %v5172_v6, %v5172_v6 }
 0x23d   : > { %1784 = vst [vmem:[#allocation3 + $0x3d8] sm:$0xf] %v1720_v52  ;;  %1785 = vst [vmem:[#allocation3 + $0x408] sm:$0xf] %v1721_v17  ;;  %1696 = vrot.lane.b32.xlu1 %v4607_v57, %s3934_s10  ;;  %3654 = vmatpush1.msk.msra.mxu1 %vm2287_vm9, %v2253_v9 }
 0x23e   : > { %v1455_v26 = vpop.permute.xlu0 %1454  ;;  %v1669_v34 = vpop.permute.xlu1 %1668 }
 0x23f   : > { %v1509_v3 = vsel %vm977_vm8, %v5013_v19, %v1455_v26  ;;  %v1510_v48 = vsel %vm977_vm8, %v1455_v26, %v5025_v61  ;;  %v2188_v1 = vld [vmem:[#allocation3 + $0x460] sm:$0xff]  ;;  %v1722_v57 = vsel %vm668_vm1, %v5070_v42, %v1669_v34  ;;  %v1723_v25 = vsel %vm668_vm1, %v1669_v34, %v4834_v13  ;;  %v2189_v14 = vld [vmem:[#allocation3 + $0x4b0] sm:$0xff] }
 0x240   : > { %1573 = vst [vmem:[#allocation3 + $0x1d8] sm:$0xf0] %v1509_v3  ;;  %1574 = vst [vmem:[#allocation3 + $0x200] sm:$0xf0] %v1510_v48  ;;  %1486 = vrot.lane.b32.xlu0 %v1430_v7, %s3935_s11  ;;  %2623 = vmatprep.subr.mxu0 %v2188_v1  ;;  %v1431_v61 = vcombine.low %v5188_v30, %v5188_v30  ;;  %v2192_v48 = vld [vmem:[#allocation3 + $0x50] sm:$0xff] }
 0x241   : > { %1786 = vst [vmem:[#allocation3 + $0xe8] sm:$0xf] %v1722_v57  ;;  %1787 = vst [vmem:[#allocation3 + $0x98] sm:$0xf] %v1723_v25  ;;  %2624 = vmatpush1.msra.mxu0 %v2187_v46  ;;  %1700 = vrot.lane.b32.xlu1 %v5202_v10, %s3934_s10  ;;  %v2126_v57 = vld [vmem:[#allocation3 + $0x488] sm:$0xff] }
 0x242   : > { %v1146_v19 = vpop.permute.xlu0 %1145  ;;  %v930_v42 = vpop.permute.xlu1 %929 }
 0x243   : > { %v1200_v13 = vsel %vm668_vm1, %v5035_v28, %v1146_v19  ;;  %v1201_v49 = vsel %vm668_vm1, %v1146_v19, %v5053_v38  ;;  %v2156_v35 = vld [vmem:[#allocation3 + $0x20] sm:$0xff]  ;;  %v986_v8 = vsel %vm977_vm8, %v5023_v11, %v930_v42  ;;  %v987_v63 = vsel %vm977_vm8, %v930_v42, %v5095_v40  ;;  %v2125_v42 = vld [vmem:[#allocation3 + $0x108] sm:$0xff] }
 0x244   : > { %v2222_v50 = vld [vmem:[#allocation3 + $0x408] sm:$0xff]  ;;  %1264 = vst [vmem:[#allocation3 + $0x280] sm:$0xf0] %v1200_v13  ;;  %1265 = vst [vmem:[#allocation3 + $0x3b8] sm:$0xf0] %v1201_v49  ;;  %1490 = vrot.lane.b32.xlu0 %v1431_v61, %s3935_s11  ;;  %2625 = vmatprep.subr.mxu0 %v2156_v35  ;;  %v2221_v28 = vld [vmem:[#allocation3 + $0x3d8] sm:$0xff] }
 0x245   : > { %1050 = vst [vmem:[#allocation3 + $0x3c8] sm:$0xf] %v986_v8  ;;  %1051 = vst [vmem:[#allocation3 + $0x280] sm:$0xf] %v987_v63  ;;  %2626 = vmatpush1.msra.mxu0 %v2155_v4  ;;  %1484 = vrot.lane.b32.xlu1 %v5077_v37, %s3935_s11  ;;  %v2123_v11 = vld [vmem:[#allocation3 + $0x440] sm:$0xff]  ;;  %v2128_v35 = vld [vmem:[#allocation3 + $0x4f0] sm:$0xff] }
 0x246   : > { %v1150_v55 = vpop.permute.xlu0 %1149  ;;  %2627 = vmatprep.subr.mxu0 %v2124_v54  ;;  %2692 = vmatprep.subr.mxu1 %v2222_v50  ;;  %v934_v58 = vpop.permute.xlu1 %933  ;;  %v2256_v37 = vld [vmem:[#allocation3 + $0x2d8] sm:$0xf]  ;;  %v2127_v4 = vld [vmem:[#allocation3 + $0x310] sm:$0xff] }
 0x247   : > { %v1202_v18 = vsel %vm668_vm1, %v5053_v38, %v1150_v55  ;;  %v1203_v39 = vsel %vm668_vm1, %v1150_v55, %v5086_v20  ;;  %2628 = vmatpush1.msra.mxu0 %v2123_v11  ;;  %2693 = vmatpush1.msra.mxu1 %v2221_v28  ;;  %v2190_v41 = vld [vmem:[#allocation3 + $0x1d8] sm:$0xff]  ;;  %v988_v23 = vsel %vm977_vm8, %v5095_v40, %v934_v58  ;;  %v2255_v40 = vld [vmem:[#allocation3 + $0x100] sm:$0xf] }
 0x248   : > { %1266 = vst [vmem:[#allocation3 + $0x8] sm:$0xf0] %v1202_v18  ;;  %1267 = vst [vmem:[#allocation3 + $0x48] sm:$0xf0] %v1203_v39  ;;  %963 = vrot.lane.b32.xlu0 %v5045_v12, %s3935_s11  ;;  %2694 = vmatprep.subr.mxu1 %v2190_v41  ;;  %v989_v27 = vsel %vm977_vm8, %v934_v58, %v5102_v51  ;;  %v2224_v38 = vld [vmem:[#allocation3 + $0x98] sm:$0xff]  ;;  %v2223_v52 = vld [vmem:[#allocation3 + $0xe8] sm:$0xff] }
 0x249   : > { %1052 = vst [vmem:[#allocation3 + $0x3b8] sm:$0xf] %v988_v23  ;;  %3656 = vmatprep.subr.msk.mxu0 %vm2287_vm9, %v2256_v37  ;;  %1053 = vst [vmem:[#allocation3 + $0x8] sm:$0xf] %v989_v27  ;;  %3652 = vmatmul.mubr.msk.f32.vlgmr.msra.gmra.mxu0 %vm2283_vm10, %v4987_v59  ;;  %v2225_v39 = vld [vmem:[#allocation3 + $0x410] sm:$0xff] }
 0x24a   : > { %2695 = vmatpush1.msra.mxu1 %v2189_v14  ;;  %3657 = vmatpush1.msk.msra.mxu0 %vm2287_vm9, %v2255_v40  ;;  %v1463_v17 = vpop.permute.xlu0 %1462  ;;  %v1981_v43 = vpop.permute.xlu1 %1980  ;;  %v1919_v23 = vld [vmem:[#allocation2 + $0x84] sm:$0xff] }
 0x24b   : > { %v1513_v9 = vsel %vm977_vm8, %v4799_v56, %v1463_v17  ;;  %v1514_v26 = vsel %vm977_vm8, %v1463_v17, %v5072_v53  ;;  %1488 = vrot.lane.b32.xlu1 %v5172_v6, %s3935_s11  ;;  %2763 = vmatprep.subr.mxu0 %v2224_v38  ;;  %v2032_v7 = vsel %vm977_vm8, %v5062_v36, %v1981_v43  ;;  %v2191_v53 = vld [vmem:[#allocation3 + $0x200] sm:$0xff] }
 0x24c   : > { %v2158_v34 = vld [vmem:[#allocation3 + $0x280] sm:$0xff]  ;;  %v2157_v3 = vld [vmem:[#allocation3 + $0x3c8] sm:$0xff]  ;;  %1577 = vst [vmem:[#allocation3 + $0x150] sm:$0xf0] %v1513_v9  ;;  %1578 = vst [vmem:[#allocation3 + $0x4e8] sm:$0xf0] %v1514_v26  ;;  %2764 = vmatpush1.msra.mxu0 %v2223_v52  ;;  %967 = vrot.lane.b32.xlu0 %v5138_v29, %s3935_s11  ;;  %v2033_v56 = vsel %vm977_vm8, %v1981_v43, %v5112_v16  ;;  %v1121_v36 = vcombine.low %v5045_v12, %v5045_v12 }
 0x24d   : > { %2096 = vst [vmem:[#allocation3 + $0x4e0] sm:$0xf] %v2032_v7  ;;  %2765 = vmatprep.subr.mxu0 %v2192_v48  ;;  %2097 = vst [vmem:[#allocation3 + $0x30] sm:$0xf] %v2033_v56  ;;  %2696 = vmatprep.subr.mxu1 %v2158_v34  ;;  %v1953_v27 = vcombine.high %v1919_v23, %v1919_v23  ;;  %v2196_v43 = vld [vmem:[#allocation3 + $0x190] sm:$0xff] }
 0x24e   : > { %2766 = vmatpush1.msra.mxu0 %v2191_v53  ;;  %v1154_v1 = vpop.permute.xlu0 %1153  ;;  %2697 = vmatpush1.msra.mxu1 %v2157_v3  ;;  %v1985_v25 = vpop.permute.xlu1 %1984  ;;  %v5326_v3 = vld [vmem:[#allocation2 + $0x80] sm:$0xff]  ;;  %v2130_v53 = vld [vmem:[#allocation3 + $0x2a8] sm:$0xff] }
 0x24f   : > { %v1204_v46 = vsel %vm668_vm1, %v5086_v20, %v1154_v1  ;;  %v1205_v19 = vsel %vm668_vm1, %v1154_v1, %v5097_v32  ;;  %961 = vrot.lane.b32.xlu1 %v5057_v21, %s3935_s11  ;;  %2698 = vmatprep.subr.mxu1 %v2126_v57  ;;  %v2034_v61 = vsel %vm977_vm8, %v5112_v16, %v1985_v25 }
 0x250   : > { %v2159_v13 = vld [vmem:[#allocation3 + $0x3b8] sm:$0xff]  ;;  %1268 = vst [vmem:[#allocation3 + $0x300] sm:$0xf0] %v1204_v46  ;;  %1269 = vst [vmem:[#allocation3 + $0x4a8] sm:$0xf0] %v1205_v19  ;;  %1177 = vrot.lane.b32.xlu0 %v1121_v36, %s3934_s10  ;;  %v2035_v49 = vsel %vm977_vm8, %v1985_v25, %v4681_v62  ;;  %2699 = vmatpush1.msra.mxu1 %v2125_v42  ;;  %v2160_v20 = vld [vmem:[#allocation3 + $0x8] sm:$0xff]  ;;  %v1122_v16 = vcombine.low %v5138_v29, %v5138_v29 }
 0x251   : > { %2098 = vst [vmem:[#allocation3 + $0x2b8] sm:$0xf] %v2034_v61  ;;  %2099 = vst [vmem:[#allocation3 + $0x1c0] sm:$0xf] %v2035_v49  ;;  %2767 = vmatprep.subr.mxu0 %v2160_v20  ;;  %3655 = vmatmul.mubr.msk.f32.vlgmr.msra.gmra.mxu1 %vm2283_vm10, %v4987_v59  ;;  %v1645_v1 = vcombine.high %v5326_v3, %v5326_v3  ;;  %v2129_v36 = vld [vmem:[#allocation3 + $0x308] sm:$0xff]  ;;  %v2132_v20 = vld [vmem:[#allocation3 + $0x60] sm:$0xff] }
 0x252   : > { %v5271_v21 = vpop.permute.xlu0 %1157  ;;  %2768 = vmatpush1.msra.mxu0 %v2159_v13  ;;  %v1677_v8 = vpop.permute.xlu1 %1676  ;;  %2803 = vmatprep.mubr.f32.mxu0 %v5003_v33  ;;  %v2262_v25 = vld [vmem:[#allocation3 + $0xe0] sm:$0xf]  ;;  %v1920_v19 = vld [vmem:[#allocation2 + $0x8c] sm:$0xf]  ;;  %v2261_v13 = vld [vmem:[#allocation3 + $0x468] sm:$0xf] }
 0x253   : > { %v1206_v62 = vsel %vm668_vm1, %v5097_v32, %v5271_v21  ;;  %965 = vrot.lane.b32.xlu1 %v5152_v47, %s3935_s11  ;;  %2769 = vmatprep.subr.mxu0 %v2128_v35  ;;  %v1726_v63 = vsel %vm668_vm1, %v5123_v5, %v1677_v8  ;;  %v1727_v50 = vsel %vm668_vm1, %v1677_v8, %v4687_v45  ;;  %v2226_v47 = vld [vmem:[#allocation3 + $0xc8] sm:$0xff]  ;;  %v2131_v35 = vld [vmem:[#allocation3 + $0x398] sm:$0xff] }
 0x254   : > { %v2257_v28 = vld [vmem:[#allocation3 + $0x4e0] sm:$0xf]  ;;  %1270 = vst [vmem:[#allocation3 + $0x218] sm:$0xf0] %v1206_v62  ;;  %1181 = vrot.lane.b32.xlu0 %v1122_v16, %s3934_s10  ;;  %1790 = vst [vmem:[#allocation3 + $0x420] sm:$0xf] %v1726_v63  ;;  %2770 = vmatpush1.msra.mxu0 %v2127_v4  ;;  %v5291_v32 = vcombine.high %v5154_v44, %v5154_v44 }
 0x255   : > { %1791 = vst [vmem:[#allocation3 + $0x28] sm:$0xf] %v1727_v50  ;;  %v2258_v54 = vld [vmem:[#allocation3 + $0x30] sm:$0xf]  ;;  %3658 = vmatmul.mubr.msk.f32.vlgmr.msra.gmra.mxu0 %vm2283_vm10, %v4987_v59  ;;  %2874 = vmatprep.mubr.f32.mxu1 %v5003_v33  ;;  %v2195_v26 = vld [vmem:[#allocation3 + $0x4e8] sm:$0xff] }
 0x256   : > { %3659 = vmatprep.subr.msk.mxu1 %vm2287_vm9, %v2258_v54  ;;  %v5293_v5 = vpop.permute.xlu0 %1994  ;;  %v938_v55 = vpop.permute.xlu1 %937  ;;  %2945 = vmatprep.mubr.f32.mxu0 %v5003_v33  ;;  %v2263_v54 = vld [vmem:[#allocation3 + $0x58] sm:$0xf] }
 0x257   : > { %3660 = vmatpush1.msk.msra.mxu1 %vm2287_vm9, %v2257_v28  ;;  %v2039_v11 = vsel %vm977_vm8, %v4825_v24, %v5293_v5  ;;  %1175 = vrot.lane.b32.xlu1 %v5029_v2, %s3934_s10  ;;  %v990_v58 = vsel %vm977_vm8, %v5102_v51, %v938_v55  ;;  %v991_v18 = vsel %vm977_vm8, %v938_v55, %v5136_v15  ;;  %v2194_v24 = vld [vmem:[#allocation3 + $0x150] sm:$0xff] }
 0x258   : > { %2834 = vmatprep.subr.mxu1 %v2226_v47  ;;  %v2259_v41 = vld [vmem:[#allocation3 + $0x2b8] sm:$0xf]  ;;  %2103 = vst [vmem:[#allocation3 + $0x3d0] sm:$0xf] %v2039_v11  ;;  %2012 = vrot.lane.b32.xlu0 %v5291_v32, %s3935_s11  ;;  %1054 = vst [vmem:[#allocation3 + $0x48] sm:$0xf] %v990_v58 }
 0x259   : > { %1055 = vst [vmem:[#allocation3 + $0x300] sm:$0xf] %v991_v18  ;;  %2835 = vmatpush1.msra.mxu1 %v2225_v39  ;;  %v2260_v37 = vld [vmem:[#allocation3 + $0x1c0] sm:$0xf]  ;;  %v2193_v2 = vld [vmem:[#allocation3 + $0x1b0] sm:$0xff] }
 0x25a   : > { %2836 = vmatprep.subr.mxu1 %v2194_v24  ;;  %3662 = vmatprep.subr.msk.mxu0 %vm2287_vm9, %v2260_v37  ;;  %v1683_v51 = vpop.permute.xlu0 %1682  ;;  %v1612_v11 = vld [vmem:[#allocation2 + $0x88] sm:$0xf] }
 0x25b   : > { %2837 = vmatpush1.msra.mxu1 %v2193_v2  ;;  %3663 = vmatpush1.msk.msra.mxu0 %vm2287_vm9, %v2259_v41  ;;  %v942_v38 = vpop.permute.xlu1 %941  ;;  %v2227_v40 = vld [vmem:[#allocation3 + $0x420] sm:$0xff] }
 0x25c   : > { %1179 = vrot.lane.b32.xlu1 %v5045_v12, %s3934_s10  ;;  %v2228_v14 = vld [vmem:[#allocation3 + $0x28] sm:$0xff]  ;;  %2016 = vrot.lane.b32.xlu0 %v1953_v27, %s3935_s11  ;;  %v992_v52 = vsel %vm977_vm8, %v5136_v15, %v942_v38  ;;  %v993_v17 = vsel %vm977_vm8, %v942_v38, %v5148_v0  ;;  %v5320_v12 = vcombine.high %v5188_v30, %v5188_v30 }
 0x25d   : > { %2905 = vmatprep.subr.mxu0 %v2228_v14  ;;  %1056 = vst [vmem:[#allocation3 + $0x4a8] sm:$0xf] %v992_v52  ;;  %1057 = vst [vmem:[#allocation3 + $0x218] sm:$0xf] %v993_v17  ;;  %v3851_v14 = vld [vmem:[#allocation2 + $0x88] ss:$0 sps:$4 sm:$0xff]  }
 0x25e   : > { %2906 = vmatpush1.msra.mxu0 %v2227_v40  ;;  %v5322_v9 = vpop.permute.xlu0 %1686 }
 0x25f   : > { %2907 = vmatprep.subr.mxu0 %v2196_v43  ;;  %v1681_v15 = vpop.permute.xlu1 %1680  ;;  %v2161_v34 = vld [vmem:[#allocation3 + $0x48] sm:$0xff]  ;;  %v2264_v50 = vld [vmem:[#allocation3 + $0x3d0] sm:$0xf] }
 0x260   : > { %658 = vrot.lane.b32.xlu1 %v5172_v6, %s3934_s10  ;;  %2908 = vmatpush1.msra.mxu0 %v2195_v26  ;;  %v2162_v7 = vld [vmem:[#allocation3 + $0x300] sm:$0xff]  ;;  %v1728_v48 = vsel %vm668_vm1, %v4687_v45, %v1681_v15  ;;  %v1729_v56 = vsel %vm668_vm1, %v1681_v15, %v1683_v51 }
 0x261   : > { %1704 = vrot.lane.b32.xlu0 %v5320_v12, %s3934_s10  ;;  %2838 = vmatprep.subr.mxu1 %v2162_v7  ;;  %1792 = vst [vmem:[#allocation3 + $0x290] sm:$0xf] %v1728_v48  ;;  %1793 = vst [vmem:[#allocation3 + $0x330] sm:$0xf] %v1729_v56 }
 0x262   : > { %2839 = vmatpush1.msra.mxu1 %v2161_v34  ;;  %v1471_v6 = vpop.permute.xlu0 %1470 }
 0x263   : > { %2840 = vmatprep.subr.mxu1 %v2130_v53  ;;  %v1685_v57 = vpop.permute.xlu1 %1684 }
 0x264   : > { %2014 = vrot.lane.b32.xlu1 %v1919_v23, %s3935_s11  ;;  %2841 = vmatpush1.msra.mxu1 %v2129_v36  ;;  %v1730_v45 = vsel %vm668_vm1, %v1683_v51, %v1685_v57  ;;  %v1731_v46 = vsel %vm668_vm1, %v1685_v57, %v5322_v9  ;;  %v2164_v61 = vld [vmem:[#allocation3 + $0x218] sm:$0xff]  ;;  %v2163_v42 = vld [vmem:[#allocation3 + $0x4a8] sm:$0xff]  ;;  %v1432_v51 = vcombine.low %v5326_v3, %v5326_v3 }
 0x265   : > { %1708 = vrot.lane.b32.xlu0 %v1645_v1, %s3934_s10  ;;  %3665 = vmatprep.subr.msk.mxu1 %vm2287_vm9, %v2262_v25  ;;  %1794 = vst [vmem:[#allocation3 + $0x118] sm:$0xf] %v1730_v45  ;;  %1795 = vst [vmem:[#allocation3 + $0x490] sm:$0xf] %v1731_v46  ;;  %v1123_v36 = vcombine.low %v5154_v44, %v5154_v44  ;;  %v2134_v25 = vld [vmem:[#allocation3 + $0x388] sm:$0xff]  ;;  %v2133_v45 = vld [vmem:[#allocation3 + $0xd8] sm:$0xff] }
 0x266   : > { %2909 = vmatprep.subr.mxu0 %v2164_v61  ;;  %3661 = vmatmul.mubr.msk.f32.vlgmr.msra.gmra.mxu1 %vm2283_vm10, %v4987_v59  ;;  %v5343_v49 = vpop.permute.xlu0 %1474  ;;  %v3854_v61 = vld [vmem:[#allocation2 + $0x84] ss:$0 sps:$4 sm:$0xff]  }
 0x267   : > { %2910 = vmatpush1.msra.mxu0 %v2163_v42  ;;  %3666 = vmatpush1.msk.msra.mxu1 %vm2287_vm9, %v2261_v13  ;;  %v1469_v16 = vpop.permute.xlu1 %1468  ;;  %v2136_v13 = vld [vmem:[#allocation3 + $0x220] sm:$0xff] }
 0x268   : > { %2018 = vrot.lane.b32.xlu1 %v1920_v19, %s3935_s11  ;;  %2911 = vmatprep.subr.mxu0 %v2132_v20  ;;  %v1516_v8 = vsel %vm977_vm8, %v4844_v22, %v1469_v16  ;;  %v1517_v62 = vsel %vm977_vm8, %v1469_v16, %v1471_v6  ;;  %v2230_v63 = vld [vmem:[#allocation3 + $0x330] sm:$0xff]  ;;  %v2135_v20 = vld [vmem:[#allocation3 + $0x160] sm:$0xff] }
 0x269   : > { %1492 = vrot.lane.b32.xlu0 %v5188_v30, %s3935_s11  ;;  %2912 = vmatpush1.msra.mxu0 %v2131_v35  ;;  %v2229_v4 = vld [vmem:[#allocation3 + $0x290] sm:$0xff]  ;;  %1580 = vst [vmem:[#allocation3 + $0x418] sm:$0xf0] %v1516_v8  ;;  %1581 = vst [vmem:[#allocation3 + $0x338] sm:$0xf0] %v1517_v62 }
 0x26a   : > { %2976 = vmatprep.subr.mxu1 %v2230_v63  ;;  %3668 = vmatprep.subr.msk.mxu0 %vm2287_vm9, %v2264_v50  ;;  %v948_v28 = vpop.permute.xlu0 %947 }
 0x26b   : > { %3664 = vmatmul.mubr.msk.f32.vlgmr.msra.gmra.mxu0 %vm2283_vm10, %v4987_v59  ;;  %2977 = vmatpush1.msra.mxu1 %v2229_v4  ;;  %v1473_v22 = vpop.permute.xlu1 %1472 }
 0x26c   : > { %1706 = vrot.lane.b32.xlu1 %v5326_v3, %s3934_s10  ;;  %3669 = vmatpush1.msk.msra.mxu0 %vm2287_vm9, %v2263_v54  ;;  %v1518_v47 = vsel %vm977_vm8, %v1471_v6, %v1473_v22  ;;  %v1519_v55 = vsel %vm977_vm8, %v1473_v22, %v5343_v49  ;;  %v2232_v58 = vld [vmem:[#allocation3 + $0x490] sm:$0xff]  ;;  %v2231_v18 = vld [vmem:[#allocation3 + $0x118] sm:$0xff]  ;;  %v3936_v22 = vmov 0  }
 0x26d   : > { %1496 = vrot.lane.b32.xlu0 %v5326_v3, %s3935_s11  ;;  %3016 = vmatprep.mubr.f32.mxu1 %v5003_v33  ;;  %1582 = vst [vmem:[#allocation3 + $0x358] sm:$0xf0] %v1518_v47  ;;  %1583 = vst [vmem:[#allocation3 + $0x158] sm:$0xf0] %v1519_v55  ;;  %v877_v3 = vld [vmem:[#allocation2 + $0x84] sm:$0xf] }
 0x26e   : > { %3047 = vmatprep.subr.mxu0 %v2232_v58  ;;  %3087 = vmatprep.mubr.f32.mxu0 %v5003_v33  ;;  %v5365_v39 = vpop.permute.xlu0 %951  ;;  %v2277_v47 = vld [vmem:[%s5677_s3] sm:$0xff] }
 0x26f   : > { %3048 = vmatpush1.msra.mxu0 %v2231_v18  ;;  %v946_v41 = vpop.permute.xlu1 %945  ;;  %3769 = vset.pattern.permute.xlu0 %v3936_v22 }
 0x270   : > { %1710 = vrot.lane.b32.xlu1 %v1612_v11, %s3934_s10  ;;  %v994_v23 = vsel %vm977_vm8, %v5148_v0, %v946_v41  ;;  %v995_v24 = vsel %vm977_vm8, %v946_v41, %v948_v28  ;;  %v2198_v37 = vld [vmem:[#allocation3 + $0x338] sm:$0xff] }
 0x271   : > { %969 = vrot.lane.b32.xlu0 %v5166_v31, %s3935_s11  ;;  %v2197_v2 = vld [vmem:[#allocation3 + $0x418] sm:$0xff]  ;;  %1058 = vst [vmem:[#allocation3 + $0x168] sm:$0xf] %v994_v23  ;;  %1059 = vst [vmem:[#allocation3 + $0x1f0] sm:$0xf] %v995_v24  ;;  %2978 = vmatprep.subr.mxu1 %v2198_v37 }
 0x272   : > { %v1162_v27 = vpop.permute.xlu0 %1161  ;;  %2979 = vmatpush1.msra.mxu1 %v2197_v2 }
 0x273   : > { %v950_v38 = vpop.permute.xlu1 %949 }
 0x274   : > { %1494 = vrot.lane.b32.xlu1 %v1432_v51, %s3935_s11  ;;  %v996_v0 = vsel %vm977_vm8, %v948_v28, %v950_v38  ;;  %v997_v31 = vsel %vm977_vm8, %v950_v38, %v5365_v39  ;;  %v2200_v40 = vld [vmem:[#allocation3 + $0x158] sm:$0xff] }
 0x275   : > { %973 = vrot.lane.b32.xlu0 %v5291_v32, %s3935_s11  ;;  %v2199_v52 = vld [vmem:[#allocation3 + $0x358] sm:$0xff]  ;;  %1060 = vst [vmem:[#allocation3 + $0x10] sm:$0xf] %v996_v0  ;;  %1061 = vst [vmem:[#allocation3 + $0x1f8] sm:$0xf] %v997_v31  ;;  %3049 = vmatprep.subr.mxu0 %v2200_v40 }
 0x276   : > { %v5381_v17 = vpop.permute.xlu0 %1165  ;;  %3050 = vmatpush1.msra.mxu0 %v2199_v52 }
 0x277   : > { %v1160_v43 = vpop.permute.xlu1 %1159 }
 0x278   : > { %1498 = vrot.lane.b32.xlu1 %v3851_v14, %s3935_s11  ;;  %v1207_v32 = vsel %vm668_vm1, %v5271_v21, %v1160_v43  ;;  %v1208_v26 = vsel %vm668_vm1, %v1160_v43, %v1162_v27 }
 0x279   : > { %1183 = vrot.lane.b32.xlu0 %v5138_v29, %s3934_s10  ;;  %1271 = vst [vmem:[#allocation3 + $0x168] sm:$0xf0] %v1207_v32  ;;  %1272 = vst [vmem:[#allocation3 + $0x1f0] sm:$0xf0] %v1208_v26 }
 0x27a   : > { %v1999_v15 = vpop.permute.xlu0 %1998 }
 0x27b   : > { %v1164_v7 = vpop.permute.xlu1 %1163 }
 0x27c   : > { %971 = vrot.lane.b32.xlu1 %v5154_v44, %s3935_s11  ;;  %v1209_v34 = vsel %vm668_vm1, %v1162_v27, %v1164_v7  ;;  %v1210_v29 = vsel %vm668_vm1, %v1164_v7, %v5381_v17 }
 0x27d   : > { %1187 = vrot.lane.b32.xlu0 %v5154_v44, %s3934_s10  ;;  %1273 = vst [vmem:[#allocation3 + $0x10] sm:$0xf0] %v1209_v34  ;;  %1274 = vst [vmem:[#allocation3 + $0x1f8] sm:$0xf0] %v1210_v29 }
 0x27e   : > { %v5396_v21 = vpop.permute.xlu0 %2002 }
 0x27f   : > { %v1997_v48 = vpop.permute.xlu1 %1996 }
 0x280   : > { %975 = vrot.lane.b32.xlu1 %v877_v3, %s3935_s11  ;;  %v2040_v56 = vsel %vm977_vm8, %v5293_v5, %v1997_v48  ;;  %v2041_v53 = vsel %vm977_vm8, %v1997_v48, %v1999_v15  ;;  %v2166_v6 = vld [vmem:[#allocation3 + $0x1f0] sm:$0xff]  ;;  %v2165_v1 = vld [vmem:[#allocation3 + $0x168] sm:$0xff]  ;;  %s3875_s11 = sshll.u32 %s3937_s19, 4  ;;  %s3876_s11 = int_to_ptr.vmem [resolvable:$false] %s3875_s11 }
 0x281   : > { %660 = vrot.lane.b32.xlu0 %v5202_v10, %s3934_s10  ;;  %2104 = vst [vmem:[#allocation3 + $0x340] sm:$0xf] %v2040_v56  ;;  %2105 = vst [vmem:[#allocation3 + $0x3e8] sm:$0xf] %v2041_v53  ;;  %2980 = vmatprep.subr.mxu1 %v2166_v6  ;;  %s3877_s12 = scalar_lea.vmem %s3876_s11, 8192  ;;  %p3878_p0 = scmp.lt.s32.totalorder %s3568_s5, %s3876_s11 }
 0x282   : > { %v1691_v57 = vpop.permute.xlu0 %1690  ;;  %2981 = vmatpush1.msra.mxu1 %v2165_v1 }
 0x283   : > { %2982 = vmatprep.subr.mxu1 %v2134_v25  ;;  %v2001_v10 = vpop.permute.xlu1 %2000 }
 0x284   : > { %1185 = vrot.lane.b32.xlu1 %v1123_v36, %s3934_s10  ;;  %v2042_v5 = vsel %vm977_vm8, %v1999_v15, %v2001_v10  ;;  %v2043_v46 = vsel %vm977_vm8, %v2001_v10, %v5396_v21  ;;  %2983 = vmatpush1.msra.mxu1 %v2133_v45  ;;  %v2168_v44 = vld [vmem:[#allocation3 + $0x1f8] sm:$0xff]  ;;  %v2167_v19 = vld [vmem:[#allocation3 + $0x10] sm:$0xff] }
 0x285   : > { %664 = vrot.lane.b32.xlu0 %v5320_v12, %s3934_s10  ;;  %2106 = vst [vmem:[#allocation3 + $0x128] sm:$0xf] %v2042_v5  ;;  %2107 = vst [vmem:[#allocation3 + $0x470] sm:$0xf] %v2043_v46  ;;  %3051 = vmatprep.subr.mxu0 %v2168_v44  ;;  %v2138_v5 = vld [vmem:[#allocation3 + $0x360] sm:$0xff] }
 0x286   : > { %3667 = vmatmul.mubr.msk.f32.vlgmr.msra.gmra.mxu1 %vm2283_vm10, %v4987_v59  ;;  %v5414_v42 = vpop.permute.xlu0 %1694  ;;  %3052 = vmatpush1.msra.mxu0 %v2167_v19  ;;  %v5425_v59 = vld [vmem:[%s5676_s2] sm:$0xff]  ;;  %v2137_v44 = vld [vmem:[#allocation3 + $0xa0] sm:$0xff] }
 0x287   : > { %3158 = vmatprep.mubr.f32.mxu1 %v5003_v33  ;;  %3053 = vmatprep.subr.mxu0 %v2136_v13  ;;  %v1689_v12 = vpop.permute.xlu1 %1688 }
 0x288   : > { %1189 = vrot.lane.b32.xlu1 %v3854_v61, %s3934_s10  ;;  %v1732_v16 = vsel %vm668_vm1, %v5322_v9, %v1689_v12  ;;  %v1733_v35 = vsel %vm668_vm1, %v1689_v12, %v1691_v57  ;;  %3054 = vmatpush1.msra.mxu0 %v2135_v20  ;;  %v2266_v8 = vld [vmem:[#allocation3 + $0x3e8] sm:$0xf]  ;;  %v2265_v62 = vld [vmem:[#allocation3 + $0x340] sm:$0xf] }
 0x289   : > { %1796 = vst [vmem:[#allocation3 + $0x4c8] sm:$0xf] %v1732_v16  ;;  %1797 = vst [vmem:[#allocation3 + $0x120] sm:$0xf] %v1733_v35  ;;  %3671 = vmatprep.subr.msk.mxu1 %vm2287_vm9, %v2266_v8  ;;  %3670 = vmatmul.mubr.msk.f32.vlgmr.msra.gmra.mxu0 %vm2283_vm10, %v5425_v59  ;;  %v2140_v20 = vld [vmem:[#allocation3 + $0x380] sm:$0xff]  ;;  %v5478_v16 = vld [vmem:[#allocation2] sm:$0xff] }
 0x28a   : > { %v1479_v63 = vpop.permute.xlu0 %1478  ;;  %3672 = vmatpush1.msk.msra.mxu1 %vm2287_vm9, %v2265_v62  ;;  %3229 = vmatprep.mubr.f32.mxu0 %v5003_v33  ;;  %v2139_v8 = vld [vmem:[#allocation3 + $0x4f8] sm:$0xff] }
 0x28b   : > { %v1693_v9 = vpop.permute.xlu1 %1692  ;;  %2280 = vperm.xlu0 %3769, %v2277_v47  }
 0x28c   : > { %662 = vrot.lane.b32.xlu1 %v5188_v30, %s3934_s10  ;;  %v1734_v50 = vsel %vm668_vm1, %v1691_v57, %v1693_v9  ;;  %v1735_v4 = vsel %vm668_vm1, %v1693_v9, %v5414_v42  ;;  %v2268_v28 = vld [vmem:[#allocation3 + $0x470] sm:$0xf]  ;;  %v2267_v54 = vld [vmem:[#allocation3 + $0x128] sm:$0xf] }
 0x28d   : > { %1798 = vst [vmem:[#allocation3 + $0x1d0] sm:$0xf] %v1734_v50  ;;  %1799 = vst [vmem:[#allocation3 + $0x208] sm:$0xf] %v1735_v4  ;;  %3674 = vmatprep.subr.msk.mxu0 %vm2287_vm9, %v2268_v28  ;;  %v568_v30 = vld [vmem:[#allocation2 + $0x80] sm:$0xf] }
 0x28e   : > { %v5440_v33 = vpop.permute.xlu0 %1482  ;;  %3675 = vmatpush1.msk.msra.mxu0 %vm2287_vm9, %v2267_v54 }
 0x28f   : > { %v1477_v55 = vpop.permute.xlu1 %1476 }
 0x290   : > { %666 = vrot.lane.b32.xlu1 %v568_v30, %s3934_s10  ;;  %v1520_v11 = vsel %vm977_vm8, %v5343_v49, %v1477_v55  ;;  %v1521_v58 = vsel %vm977_vm8, %v1477_v55, %v1479_v63  ;;  %v2234_v18 = vld [vmem:[#allocation3 + $0x120] sm:$0xff]  ;;  %v2233_v41 = vld [vmem:[#allocation3 + $0x4c8] sm:$0xff]  ;;  %s3871_s10 = scalar_lea.vmem %s3568_s5, 4096 }
 0x291   : > { %1584 = vst [vmem:[#allocation3 + $0x88] sm:$0xf0] %v1520_v11  ;;  %1585 = vst [vmem:[#allocation3 + $0x448] sm:$0xf0] %v1521_v58  ;;  %3118 = vmatprep.subr.mxu1 %v2234_v18  ;;  %p3872_p11 = scmp.ne.s32.totalorder %s3568_s5, %s3871_s10  ;;  %p3879_p1 = scmp.lt.s32.totalorder %s3877_s12, %s3871_s10 }
 0x292   : > { %v956_v23 = vpop.permute.xlu0 %955  ;;  %3119 = vmatpush1.msra.mxu1 %v2233_v41 }
 0x293   : > { %v1481_v24 = vpop.permute.xlu1 %1480  ;;  %p3873_p12 = pnand %p3872_p11, %p4001_p5  ;;  %p3880_p2 = por %p3879_p1, %p3878_p0 }
 0x294   : > { %v1522_v37 = vsel %vm977_vm8, %v1479_v63, %v1481_v24  ;;  %v1523_v2 = vsel %vm977_vm8, %v1481_v24, %v5440_v33  ;;  %v2236_v51 = vld [vmem:[#allocation3 + $0x208] sm:$0xff]  ;;  %v2235_v27 = vld [vmem:[#allocation3 + $0x1d0] sm:$0xff] }
 0x295   : > { %1586 = vst [vmem:[#allocation3] sm:$0xf0] %v1522_v37  ;;  %1587 = vst [vmem:[#allocation3 + $0x2d0] sm:$0xf0] %v1523_v2  ;;  %3189 = vmatprep.subr.mxu0 %v2236_v51  ;;  %p3874_p13 = pneg %p3873_p12 }
 0x296   : > { %v5450_v49 = vpop.permute.xlu0 %959  ;;  %3190 = vmatpush1.msra.mxu0 %v2235_v27 }
 0x297   : > { %v954_v38 = vpop.permute.xlu1 %953  ;;  %p3881_p3 = pnand %p3880_p2, %p3874_p13 }
 0x298   : > { %v998_v14 = vsel %vm977_vm8, %v5365_v39, %v954_v38  ;;  %v999_v0 = vsel %vm977_vm8, %v954_v38, %v956_v23  ;;  %v2202_v31 = vld [vmem:[#allocation3 + $0x448] sm:$0xff] }
 0x299   : > { %v2201_v40 = vld [vmem:[#allocation3 + $0x88] sm:$0xff]  ;;  %1062 = vst [vmem:[#allocation3 + $0x2e8] sm:$0xf] %v998_v14  ;;  %1063 = vst [vmem:[#allocation3 + $0x258] sm:$0xf] %v999_v0  ;;  %3120 = vmatprep.subr.mxu1 %v2202_v31 }
 0x29a   : > { %v1170_v52 = vpop.permute.xlu0 %1169  ;;  %3121 = vmatpush1.msra.mxu1 %v2201_v40 }
 0x29b   : > { %v958_v43 = vpop.permute.xlu1 %957 }
 0x29c   : > { %v1000_v32 = vsel %vm977_vm8, %v956_v23, %v958_v43  ;;  %v1001_v26 = vsel %vm977_vm8, %v958_v43, %v5450_v49  ;;  %v2204_v15 = vld [vmem:[#allocation3 + $0x2d0] sm:$0xff]  ;;  %v2203_v7 = vld [vmem:[#allocation3] sm:$0xff] }
 0x29d   : > { %1064 = vst [vmem:[#allocation3 + $0x260] sm:$0xf] %v1000_v32  ;;  %1065 = vst [vmem:[#allocation3 + $0x2c0] sm:$0xf] %v1001_v26  ;;  %3191 = vmatprep.subr.mxu0 %v2204_v15 }
 0x29e   : > { %v5458_v39 = vpop.permute.xlu0 %1173  ;;  %3192 = vmatpush1.msra.mxu0 %v2203_v7 }
 0x29f   : > { %v1168_v34 = vpop.permute.xlu1 %1167 }
 0x2a0   : > { %v1211_v29 = vsel %vm668_vm1, %v5381_v17, %v1168_v34  ;;  %v1212_v3 = vsel %vm668_vm1, %v1168_v34, %v1170_v52 }
 0x2a1   : > { %1275 = vst [vmem:[#allocation3 + $0x2e8] sm:$0xf0] %v1211_v29  ;;  %1276 = vst [vmem:[#allocation3 + $0x258] sm:$0xf0] %v1212_v3 }
 0x2a2   : > { %v2007_v48 = vpop.permute.xlu0 %2006 }
 0x2a3   : > { %v1172_v56 = vpop.permute.xlu1 %1171 }
 0x2a4   : > { %v1213_v53 = vsel %vm668_vm1, %v1170_v52, %v1172_v56  ;;  %v1214_v6 = vsel %vm668_vm1, %v1172_v56, %v5458_v39 }
 0x2a5   : > { %1277 = vst [vmem:[#allocation3 + $0x260] sm:$0xf0] %v1213_v53  ;;  %1278 = vst [vmem:[#allocation3 + $0x2c0] sm:$0xf0] %v1214_v6 }
 0x2a6   : > { %v5466_v1 = vpop.permute.xlu0 %2010 }
 0x2a7   : > { %v2005_v36 = vpop.permute.xlu1 %2004 }
 0x2a8   : > { %v2044_v57 = vsel %vm977_vm8, %v5396_v21, %v2005_v36  ;;  %v2045_v17 = vsel %vm977_vm8, %v2005_v36, %v2007_v48  ;;  %v2170_v25 = vld [vmem:[#allocation3 + $0x258] sm:$0xff]  ;;  %v2169_v10 = vld [vmem:[#allocation3 + $0x2e8] sm:$0xff] }
 0x2a9   : > { %2108 = vst [vmem:[#allocation3 + $0x148] sm:$0xf] %v2044_v57  ;;  %2109 = vst [vmem:[#allocation3 + $0xd0] sm:$0xf] %v2045_v17  ;;  %3122 = vmatprep.subr.mxu1 %v2170_v25 }
 0x2aa   : > { %v1699_v45 = vpop.permute.xlu0 %1698  ;;  %3123 = vmatpush1.msra.mxu1 %v2169_v10 }
 0x2ab   : > { %3124 = vmatprep.subr.mxu1 %v2138_v5  ;;  %v2009_v46 = vpop.permute.xlu1 %2008  ;;  %v2142_v5 = vld [vmem:[#allocation3 + $0x4a0] sm:$0xff] }
 0x2ac   : > { %v2046_v19 = vsel %vm977_vm8, %v2007_v48, %v2009_v46  ;;  %v2047_v61 = vsel %vm977_vm8, %v2009_v46, %v5466_v1  ;;  %3125 = vmatpush1.msra.mxu1 %v2137_v44  ;;  %v2172_v21 = vld [vmem:[#allocation3 + $0x2c0] sm:$0xff]  ;;  %v2141_v44 = vld [vmem:[#allocation3 + $0x458] sm:$0xff] }
 0x2ad   : > { %v2171_v13 = vld [vmem:[#allocation3 + $0x260] sm:$0xff]  ;;  %2110 = vst [vmem:[#allocation3 + $0x230] sm:$0xf] %v2046_v19  ;;  %2111 = vst [vmem:[#allocation3 + $0x430] sm:$0xf] %v2047_v61  ;;  %3193 = vmatprep.subr.mxu0 %v2172_v21  ;;  %3673 = vmatmul.mubr.msk.f32.vlgmr.msra.gmra.mxu1 %vm2283_vm10, %v5425_v59 }
 0x2ae   : > { %v5476_v12 = vpop.permute.xlu0 %1702  ;;  %3194 = vmatpush1.msra.mxu0 %v2171_v13  ;;  %3300 = vmatprep.mubr.f32.mxu1 %v5478_v16 }
 0x2af   : > { %3195 = vmatprep.subr.mxu0 %v2140_v20  ;;  %v1697_v35 = vpop.permute.xlu1 %1696 }
 0x2b0   : > { %v1736_v62 = vsel %vm668_vm1, %v5414_v42, %v1697_v35  ;;  %v1737_v63 = vsel %vm668_vm1, %v1697_v35, %v1699_v45  ;;  %3196 = vmatpush1.msra.mxu0 %v2139_v8  ;;  %v2270_v9 = vld [vmem:[#allocation3 + $0xd0] sm:$0xf]  ;;  %v2269_v50 = vld [vmem:[#allocation3 + $0x148] sm:$0xf] }
 0x2b1   : > { %1800 = vst [vmem:[#allocation3 + $0xa8] sm:$0xf] %v1736_v62  ;;  %1801 = vst [vmem:[#allocation3 + $0x428] sm:$0xf] %v1737_v63  ;;  %3677 = vmatprep.subr.msk.mxu1 %vm2287_vm9, %v2270_v9  ;;  %3676 = vmatmul.mubr.msk.f32.vlgmr.msra.gmra.mxu0 %vm2283_vm10, %v5425_v59  ;;  %v2143_v63 = vld [vmem:[#allocation3 + $0x390] sm:$0xff] }
 0x2b2   : > { %v1487_v4 = vpop.permute.xlu0 %1486  ;;  %3678 = vmatpush1.msk.msra.mxu1 %vm2287_vm9, %v2269_v50  ;;  %3371 = vmatprep.mubr.f32.mxu0 %v5478_v16 }
 0x2b3   : > { %v1701_v28 = vpop.permute.xlu1 %1700 }
 0x2b4   : > { %v1738_v42 = vsel %vm668_vm1, %v1699_v45, %v1701_v28  ;;  %v1739_v54 = vsel %vm668_vm1, %v1701_v28, %v5476_v12  ;;  %v2272_v22 = vld [vmem:[#allocation3 + $0x430] sm:$0xf] }
 0x2b5   : > { %v2271_v47 = vld [vmem:[#allocation3 + $0x230] sm:$0xf]  ;;  %1802 = vst [vmem:[#allocation3 + $0x268] sm:$0xf] %v1738_v42  ;;  %1803 = vst [vmem:[#allocation3 + $0x180] sm:$0xf] %v1739_v54  ;;  %3680 = vmatprep.subr.msk.mxu0 %vm2287_vm9, %v2272_v22 }
 0x2b6   : > { %v5493_v30 = vpop.permute.xlu0 %1490  ;;  %3681 = vmatpush1.msk.msra.mxu0 %vm2287_vm9, %v2271_v47 }
 0x2b7   : > { %v1485_v55 = vpop.permute.xlu1 %1484 }
 0x2b8   : > { %v1524_v11 = vsel %vm977_vm8, %v5440_v33, %v1485_v55  ;;  %v1525_v58 = vsel %vm977_vm8, %v1485_v55, %v1487_v4  ;;  %v2238_v18 = vld [vmem:[#allocation3 + $0x428] sm:$0xff] }
 0x2b9   : > { %v2237_v41 = vld [vmem:[#allocation3 + $0xa8] sm:$0xff]  ;;  %1588 = vst [vmem:[#allocation3 + $0x278] sm:$0xf0] %v1524_v11  ;;  %1589 = vst [vmem:[#allocation3 + $0x478] sm:$0xf0] %v1525_v58  ;;  %3260 = vmatprep.subr.mxu1 %v2238_v18 }
 0x2ba   : > { %v964_v23 = vpop.permute.xlu0 %963  ;;  %3261 = vmatpush1.msra.mxu1 %v2237_v41 }
 0x2bc   : > { %v2240_v24 = vld [vmem:[#allocation3 + $0x180] sm:$0xff]  ;;  %v2239_v37 = vld [vmem:[#allocation3 + $0x268] sm:$0xff] }
 0x2bd   : > { %v1489_v2 = vpop.permute.xlu1 %1488  ;;  %3331 = vmatprep.subr.mxu0 %v2240_v24 }
 0x2be   : > { %v1526_v51 = vsel %vm977_vm8, %v1487_v4, %v1489_v2  ;;  %v1527_v27 = vsel %vm977_vm8, %v1489_v2, %v5493_v30  ;;  %v5502_v38 = vpop.permute.xlu0 %967  ;;  %3332 = vmatpush1.msra.mxu0 %v2239_v37 }
 0x2bf   : > { %1590 = vst [vmem:[#allocation3 + $0x90] sm:$0xf0] %v1526_v51  ;;  %1591 = vst [vmem:[#allocation3 + $0x138] sm:$0xf0] %v1527_v27 }
 0x2c0   : > { %v2206_v33 = vld [vmem:[#allocation3 + $0x478] sm:$0xff] }
 0x2c1   : > { %v2205_v14 = vld [vmem:[#allocation3 + $0x278] sm:$0xff]  ;;  %v962_v0 = vpop.permute.xlu1 %961  ;;  %3262 = vmatprep.subr.mxu1 %v2206_v33 }
 0x2c2   : > { %v1002_v31 = vsel %vm977_vm8, %v5450_v49, %v962_v0  ;;  %v1003_v40 = vsel %vm977_vm8, %v962_v0, %v964_v23  ;;  %v1178_v52 = vpop.permute.xlu0 %1177  ;;  %3263 = vmatpush1.msra.mxu1 %v2205_v14 }
 0x2c3   : > { %1066 = vst [vmem:[#allocation3 + $0x140] sm:$0xf] %v1002_v31  ;;  %1067 = vst [vmem:[#allocation3 + $0xf8] sm:$0xf] %v1003_v40 }
 0x2c5   : > { %v966_v43 = vpop.permute.xlu1 %965 }
 0x2c6   : > { %v1004_v32 = vsel %vm977_vm8, %v964_v23, %v966_v43  ;;  %v1005_v26 = vsel %vm977_vm8, %v966_v43, %v5502_v38  ;;  %v5510_v15 = vpop.permute.xlu0 %1181  ;;  %v2208_v7 = vld [vmem:[#allocation3 + $0x138] sm:$0xff]  ;;  %v2207_v34 = vld [vmem:[#allocation3 + $0x90] sm:$0xff] }
 0x2c7   : > { %1068 = vst [vmem:[#allocation3 + $0x70] sm:$0xf] %v1004_v32  ;;  %1069 = vst [vmem:[#allocation3 + $0x4c0] sm:$0xf] %v1005_v26  ;;  %3333 = vmatprep.subr.mxu0 %v2208_v7 }
 0x2c8   : > { %3334 = vmatpush1.msra.mxu0 %v2207_v34 }
 0x2c9   : > { %v1176_v49 = vpop.permute.xlu1 %1175 }
 0x2ca   : > { %v1215_v29 = vsel %vm668_vm1, %v5458_v39, %v1176_v49  ;;  %v1216_v3 = vsel %vm668_vm1, %v1176_v49, %v1178_v52  ;;  %v2013_v48 = vpop.permute.xlu0 %2012 }
 0x2cb   : > { %1279 = vst [vmem:[#allocation3 + $0x140] sm:$0xf0] %v1215_v29  ;;  %1280 = vst [vmem:[#allocation3 + $0xf8] sm:$0xf0] %v1216_v3  ;;  %v2048_v56 = vsel %vm977_vm8, %v5466_v1, %v2013_v48 }
 0x2cc   : > { %2112 = vst [vmem:[#allocation3 + $0x370] sm:$0xf] %v2048_v56 }
 0x2ce   : > { %v1180_v53 = vpop.permute.xlu1 %1179  ;;  %v2017_v57 = vpop.permute.xlu0 %2016 }
 0x2cf   : > { %v1217_v6 = vsel %vm668_vm1, %v1178_v52, %v1180_v53  ;;  %v1218_v36 = vsel %vm668_vm1, %v1180_v53, %v5510_v15 }
 0x2d0   : > { %1281 = vst [vmem:[#allocation3 + $0x70] sm:$0xf0] %v1217_v6  ;;  %1282 = vst [vmem:[#allocation3 + $0x4c0] sm:$0xf0] %v1218_v36  ;;  %v2450_v36 = vpop.f32.mrf.mxu1 }
 0x2d2   : > { %v5520_v17 = vpop.permute.xlu1 %658  ;;  %v2174_v10 = vld [vmem:[#allocation3 + $0xf8] sm:$0xff]  ;;  %v2173_v45 = vld [vmem:[#allocation3 + $0x140] sm:$0xff] }
 0x2d3   : > { %v696_v39 = vsel %vm668_vm1, %v4880_v60, %v5520_v17  ;;  %v1705_v25 = vpop.permute.xlu0 %1704  ;;  %3264 = vmatprep.subr.mxu1 %v2174_v10  ;;  %v2273_v54 = vld [vmem:[#allocation3 + $0x370] sm:$0xf] }
 0x2d4   : > { %760 = vst [vmem:[#allocation3 + $0xb8] sm:$0xf] %v696_v39  ;;  %v1740_v1 = vsel %vm668_vm1, %v5476_v12, %v1705_v25  ;;  %3265 = vmatpush1.msra.mxu1 %v2173_v45 }
 0x2d5   : > { %1804 = vst [vmem:[#allocation3 + $0x4b8] sm:$0xf] %v1740_v1  ;;  %3266 = vmatprep.subr.mxu1 %v2142_v5  ;;  %v2452_v5 = vpop.f32.mrf.mxu1 }
 0x2d6   : > { %v2015_v46 = vpop.permute.xlu1 %2014  ;;  %3267 = vmatpush1.msra.mxu1 %v2141_v44 }
 0x2d7   : > { %v2049_v19 = vsel %vm977_vm8, %v2013_v48, %v2015_v46  ;;  %v2050_v61 = vsel %vm977_vm8, %v2015_v46, %v2017_v57  ;;  %v1709_v60 = vpop.permute.xlu0 %1708  ;;  %v2176_v21 = vld [vmem:[#allocation3 + $0x4c0] sm:$0xff]  ;;  %v2175_v13 = vld [vmem:[#allocation3 + $0x70] sm:$0xff]  ;;  %3679 = vmatmul.mubr.msk.f32.vlgmr.msra.gmra.mxu1 %vm2283_vm10, %v5425_v59 }
 0x2d8   : > { %2113 = vst [vmem:[#allocation3 + $0xc0] sm:$0xf] %v2049_v19  ;;  %2114 = vst [vmem:[#allocation3 + $0x110] sm:$0xf] %v2050_v61  ;;  %3335 = vmatprep.subr.mxu0 %v2176_v21  ;;  %3442 = vmatprep.mubr.f32.mxu1 %v5478_v16  ;;  %v2521_v19 = vpop.f32.mrf.mxu0 }
 0x2d9   : > { %3336 = vmatpush1.msra.mxu0 %v2175_v13 }
 0x2da   : > { %v2019_v12 = vpop.permute.xlu1 %2018  ;;  %v2523_v13 = vpop.f32.mrf.mxu0 }
 0x2db   : > { %v2051_v20 = vsel %vm977_vm8, %v2017_v57, %v2019_v12  ;;  %v1493_v35 = vpop.permute.xlu0 %1492  ;;  %v2144_v8 = vld [vmem:[#allocation3 + $0xb8] sm:$0xff] }
 0x2dc   : > { %2115 = vst [vmem:[#allocation3 + $0x1a0] sm:$0xf] %v2051_v20  ;;  %v1528_v62 = vsel %vm977_vm8, %v5493_v30, %v1493_v35  ;;  %3337 = vmatprep.subr.mxu0 %v2144_v8  ;;  %v2241_v37 = vld [vmem:[#allocation3 + $0x4b8] sm:$0xff] }
 0x2dd   : > { %1592 = vst [vmem:[#allocation3 + $0x438] sm:$0xf0] %v1528_v62  ;;  %3338 = vmatpush1.msra.mxu0 %v2143_v63 }
 0x2de   : > { %v1707_v9 = vpop.permute.xlu1 %1706  ;;  %3682 = vmatmul.mubr.msk.f32.vlgmr.msra.gmra.mxu0 %vm2283_vm10, %v5425_v59 }
 0x2df   : > { %v1741_v50 = vsel %vm668_vm1, %v1705_v25, %v1707_v9  ;;  %v1742_v4 = vsel %vm668_vm1, %v1707_v9, %v1709_v60  ;;  %v1497_v28 = vpop.permute.xlu0 %1496  ;;  %v2274_v42 = vld [vmem:[#allocation3 + $0xc0] sm:$0xf]  ;;  %3513 = vmatprep.mubr.f32.mxu0 %v5478_v16  ;;  %v2275_v58 = vld [vmem:[#allocation3 + $0x110] sm:$0xf] }
 0x2e0   : > { %1805 = vst [vmem:[#allocation3 + $0x178] sm:$0xf] %v1741_v50  ;;  %1806 = vst [vmem:[#allocation3 + $0x1e8] sm:$0xf] %v1742_v4  ;;  %3683 = vmatprep.subr.msk.mxu1 %vm2287_vm9, %v2274_v42 }
 0x2e1   : > { %3684 = vmatpush1.msk.msra.mxu1 %vm2287_vm9, %v2273_v54 }
 0x2e2   : > { %v1711_v22 = vpop.permute.xlu1 %1710 }
 0x2e3   : > { %v1743_v47 = vsel %vm668_vm1, %v1709_v60, %v1711_v22  ;;  %v970_v30 = vpop.permute.xlu0 %969  ;;  %v2276_v55 = vld [vmem:[#allocation3 + $0x1a0] sm:$0xf]  ;;  %v2592_v60 = vpop.f32.mrf.mxu1 }
 0x2e4   : > { %1807 = vst [vmem:[#allocation3 + $0x2f0] sm:$0xf] %v1743_v47  ;;  %v1006_v11 = vsel %vm977_vm8, %v5502_v38, %v970_v30  ;;  %3686 = vmatprep.subr.msk.mxu0 %vm2287_vm9, %v2276_v55  ;;  %v2209_v32 = vld [vmem:[#allocation3 + $0x438] sm:$0xff] }
 0x2e5   : > { %1070 = vst [vmem:[#allocation3 + $0x40] sm:$0xf] %v1006_v11  ;;  %3687 = vmatpush1.msk.msra.mxu0 %vm2287_vm9, %v2275_v58  ;;  %v2594_v20 = vpop.f32.mrf.mxu1 }
 0x2e6   : > { %v1495_v16 = vpop.permute.xlu1 %1494 }
 0x2e7   : > { %v1529_v18 = vsel %vm977_vm8, %v1493_v35, %v1495_v16  ;;  %v1530_v41 = vsel %vm977_vm8, %v1495_v16, %v1497_v28  ;;  %v974_v23 = vpop.permute.xlu0 %973  ;;  %v2242_v24 = vld [vmem:[#allocation3 + $0x178] sm:$0xff]  ;;  %v2243_v14 = vld [vmem:[#allocation3 + $0x1e8] sm:$0xff] }
 0x2e8   : > { %1593 = vst [vmem:[#allocation3 + $0x2c8] sm:$0xf0] %v1529_v18  ;;  %1594 = vst [vmem:[#allocation3 + $0x3e0] sm:$0xf0] %v1530_v41  ;;  %3402 = vmatprep.subr.mxu1 %v2242_v24 }
 0x2e9   : > { %3403 = vmatpush1.msra.mxu1 %v2241_v37 }
 0x2ea   : > { %v1499_v2 = vpop.permute.xlu1 %1498 }
 0x2eb   : > { %v1531_v51 = vsel %vm977_vm8, %v1497_v28, %v1499_v2  ;;  %v1184_v27 = vpop.permute.xlu0 %1183  ;;  %v2244_v38 = vld [vmem:[#allocation3 + $0x2f0] sm:$0xff] }
 0x2ec   : > { %1595 = vst [vmem:[#allocation3 + $0x130] sm:$0xf0] %v1531_v51  ;;  %v1219_v33 = vsel %vm668_vm1, %v5510_v15, %v1184_v27  ;;  %3473 = vmatprep.subr.mxu0 %v2244_v38 }
 0x2ed   : > { %1283 = vst [vmem:[#allocation3 + $0x40] sm:$0xf0] %v1219_v33  ;;  %3474 = vmatpush1.msra.mxu0 %v2243_v14 }
 0x2ee   : > { %v972_v0 = vpop.permute.xlu1 %971 }
 0x2ef   : > { %v1007_v31 = vsel %vm977_vm8, %v970_v30, %v972_v0  ;;  %v1008_v40 = vsel %vm977_vm8, %v972_v0, %v974_v23  ;;  %v1188_v52 = vpop.permute.xlu0 %1187  ;;  %v2210_v43 = vld [vmem:[#allocation3 + $0x2c8] sm:$0xff]  ;;  %v2211_v29 = vld [vmem:[#allocation3 + $0x3e0] sm:$0xff] }
 0x2f0   : > { %1071 = vst [vmem:[#allocation3 + $0x350] sm:$0xf] %v1007_v31  ;;  %1072 = vst [vmem:[#allocation3 + $0x250] sm:$0xf] %v1008_v40  ;;  %3404 = vmatprep.subr.mxu1 %v2210_v43 }
 0x2f1   : > { %3405 = vmatpush1.msra.mxu1 %v2209_v32 }
 0x2f2   : > { %v976_v26 = vpop.permute.xlu1 %975 }
 0x2f3   : > { %v1009_v7 = vsel %vm977_vm8, %v974_v23, %v976_v26  ;;  %v661_v15 = vpop.permute.xlu0 %660  ;;  %v2212_v34 = vld [vmem:[#allocation3 + $0x130] sm:$0xff] }
 0x2f4   : > { %1073 = vst [vmem:[#allocation3 + $0x1e0] sm:$0xf] %v1009_v7  ;;  %v697_v49 = vsel %vm668_vm1, %v5520_v17, %v661_v15  ;;  %3475 = vmatprep.subr.mxu0 %v2212_v34  ;;  %v2177_v45 = vld [vmem:[#allocation3 + $0x40] sm:$0xff] }
 0x2f5   : > { %761 = vst [vmem:[#allocation3 + $0x270] sm:$0xf] %v697_v49  ;;  %3476 = vmatpush1.msra.mxu0 %v2211_v29 }
 0x2f6   : > { %v1186_v3 = vpop.permute.xlu1 %1185 }
 0x2f7   : > { %v1220_v48 = vsel %vm668_vm1, %v1184_v27, %v1186_v3  ;;  %v1221_v56 = vsel %vm668_vm1, %v1186_v3, %v1188_v52  ;;  %v665_v57 = vpop.permute.xlu0 %664 }
 0x2f8   : > { %1284 = vst [vmem:[#allocation3 + $0x350] sm:$0xf0] %v1220_v48  ;;  %1285 = vst [vmem:[#allocation3 + $0x250] sm:$0xf0] %v1221_v56 }
 0x2fa   : > { %v1190_v53 = vpop.permute.xlu1 %1189 }
 0x2fb   : > { %v1222_v6 = vsel %vm668_vm1, %v1188_v52, %v1190_v53 }
 0x2fc   : > { %1286 = vst [vmem:[#allocation3 + $0x1e0] sm:$0xf0] %v1222_v6  ;;  %v2145_v12 = vld [vmem:[#allocation3 + $0x270] sm:$0xff] }
 0x2fe   : > { %v663_v39 = vpop.permute.xlu1 %662 }
 0x2ff   : > { %v698_v17 = vsel %vm668_vm1, %v661_v15, %v663_v39  ;;  %v699_v25 = vsel %vm668_vm1, %v663_v39, %v665_v57  ;;  %v2178_v10 = vld [vmem:[#allocation3 + $0x350] sm:$0xff] }
 0x300   : > { %762 = vst [vmem:[#allocation3 + $0x480] sm:$0xf] %v698_v17  ;;  %763 = vst [vmem:[#allocation3 + $0x1a8] sm:$0xf] %v699_v25  ;;  %3406 = vmatprep.subr.mxu1 %v2178_v10  ;;  %v2179_v61 = vld [vmem:[#allocation3 + $0x250] sm:$0xff] }
 0x301   : > { %3407 = vmatpush1.msra.mxu1 %v2177_v45 }
 0x302   : > { %v667_v1 = vpop.permute.xlu1 %666 }
 0x303   : > { %v700_v46 = vsel %vm668_vm1, %v665_v57, %v667_v1  ;;  %v2180_v44 = vld [vmem:[#allocation3 + $0x1e0] sm:$0xff] }
 0x304   : > { %764 = vst [vmem:[#allocation3 + $0x2a0] sm:$0xf] %v700_v46  ;;  %3477 = vmatprep.subr.mxu0 %v2180_v44 }
 0x305   : > { %3478 = vmatpush1.msra.mxu0 %v2179_v61 }
 0x306   : > { %v5566_v35 = vpop.permute.xlu0 %2280 }
 0x307   : > { %v2146_v21 = vld [vmem:[#allocation3 + $0x480] sm:$0xff]  ;;  %v2451_v8 = vadd.f32 %v2450_v36, %v5566_v35  ;;  %v2522_v62 = vadd.f32 %v2521_v19, %v5566_v35  ;;  %v2453_v63 = vadd.f32 %v2452_v5, %v5566_v35  ;;  %v2524_v9 = vadd.f32 %v2523_v13, %v5566_v35  ;;  %v2147_v22 = vld [vmem:[#allocation3 + $0x1a8] sm:$0xff] }
 0x308   : > { %3408 = vmatprep.subr.mxu1 %v2146_v21  ;;  %v2593_v28 = vadd.f32 %v2592_v60, %v5566_v35  ;;  %v2595_v54 = vadd.f32 %v2594_v20, %v5566_v35 }
 0x309   : > { %3409 = vmatpush1.msra.mxu1 %v2145_v12  ;;  %v2663_v50 = vpop.f32.mrf.mxu0  ;;  %3520 = vst [vmem:[%s5577_s29] sm:$0xff] %v2451_v8  ;;  %3522 = vst [vmem:[%s5577_s29 + $0x10] sm:$0xff] %v2522_v62 }
 0x30a   : > { %3685 = vmatmul.mubr.msk.f32.vlgmr.msra.gmra.mxu1 %vm2283_vm10, %v5425_v59  ;;  %v2664_v42 = vadd.f32 %v2663_v50, %v5566_v35  ;;  %3521 = vst [vmem:[%s5577_s29 + $0x8] sm:$0xff] %v2453_v63  ;;  %3523 = vst [vmem:[%s5577_s29 + $0x18] sm:$0xff] %v2524_v9 }
 0x30b   : > { %v2148_v4 = vld [vmem:[#allocation3 + $0x2a0] sm:$0xff]  ;;  %v2665_v47 = vpop.f32.mrf.mxu0  ;;  %3524 = vst [vmem:[%s5577_s29 + $0x20] sm:$0xff] %v2593_v28  ;;  %3525 = vst [vmem:[%s5577_s29 + $0x28] sm:$0xff] %v2595_v54 }
 0x30c   : > { %3479 = vmatprep.subr.mxu0 %v2148_v4  ;;  %3526 = vst [vmem:[%s5577_s29 + $0x30] sm:$0xff] %v2664_v42  ;;  %v2666_v30 = vadd.f32 %v2665_v47, %v5566_v35 }
 0x30d   : > { %3480 = vmatpush1.msra.mxu0 %v2147_v22 }
 0x30e   : > { %3688 = vmatmul.mubr.msk.f32.vlgmr.msra.gmra.mxu0 %vm2283_vm10, %v5425_v59  ;;  %3527 = vst [vmem:[%s5577_s29 + $0x38] sm:$0xff] %v2666_v30 }
 0x311   : > { %v2734_v55 = vpop.f32.mrf.mxu1 }
 0x312   : > { %v2735_v11 = vadd.f32 %v2734_v55, %v5566_v35 }
 0x313   : > { %v2736_v58 = vpop.f32.mrf.mxu1 }
 0x314   : > { %3528 = vst [vmem:[%s5577_s29 + $0x40] sm:$0xff] %v2735_v11  ;;  %v2737_v16 = vadd.f32 %v2736_v58, %v5566_v35 }
 0x315   : > { %v2805_v18 = vpop.f32.mrf.mxu0 }
 0x316   : > { %v2806_v41 = vadd.f32 %v2805_v18, %v5566_v35  ;;  %3529 = vst [vmem:[%s5577_s29 + $0x48] sm:$0xff] %v2737_v16 }
 0x317   : > { %v2807_v23 = vpop.f32.mrf.mxu0 }
 0x318   : > { %3530 = vst [vmem:[%s5577_s29 + $0x50] sm:$0xff] %v2806_v41  ;;  %v2808_v59 = vadd.f32 %v2807_v23, %v5566_v35 }
 0x31a   : > { %3531 = vst [vmem:[%s5577_s29 + $0x58] sm:$0xff] %v2808_v59 }
 0x326   : > { %v2876_v24 = vpop.f32.mrf.mxu1 }
 0x327   : > { %v2877_v37 = vadd.f32 %v2876_v24, %v5566_v35 }
 0x328   : > { %v2878_v2 = vpop.f32.mrf.mxu1 }
 0x329   : > { %3532 = vst [vmem:[%s5577_s29 + $0x60] sm:$0xff] %v2877_v37  ;;  %v2879_v51 = vadd.f32 %v2878_v2, %v5566_v35 }
 0x32b   : > { %v2947_v27 = vpop.f32.mrf.mxu0  ;;  %3533 = vst [vmem:[%s5577_s29 + $0x68] sm:$0xff] %v2879_v51 }
 0x32c   : > { %v2948_v38 = vadd.f32 %v2947_v27, %v5566_v35 }
 0x32d   : > { %v2949_v33 = vpop.f32.mrf.mxu0 }
 0x32e   : > { %3534 = vst [vmem:[%s5577_s29 + $0x70] sm:$0xff] %v2948_v38  ;;  %v2950_v14 = vadd.f32 %v2949_v33, %v5566_v35 }
 0x330   : > { %3535 = vst [vmem:[%s5577_s29 + $0x78] sm:$0xff] %v2950_v14 }
 0x346   : > { %v3018_v0 = vpop.f32.mrf.mxu1 }
 0x347   : > { %v3019_v31 = vadd.f32 %v3018_v0, %v5566_v35 }
 0x348   : > { %v3020_v40 = vpop.f32.mrf.mxu1 }
 0x349   : > { %3536 = vst [vmem:[%s5577_s29 + $0x80] sm:$0xff] %v3019_v31  ;;  %v3021_v52 = vadd.f32 %v3020_v40, %v5566_v35  ;;  %v3089_v43 = vpop.f32.mrf.mxu0 }
 0x34a   : > { %v3090_v32 = vadd.f32 %v3089_v43, %v5566_v35 }
 0x34b   : > { %3537 = vst [vmem:[%s5577_s29 + $0x88] sm:$0xff] %v3021_v52  ;;  %v3091_v26 = vpop.f32.mrf.mxu0 }
 0x34c   : > { %3538 = vst [vmem:[%s5577_s29 + $0x90] sm:$0xff] %v3090_v32  ;;  %v3092_v7 = vadd.f32 %v3091_v26, %v5566_v35 }
 0x34e   : > { %3539 = vst [vmem:[%s5577_s29 + $0x98] sm:$0xff] %v3092_v7 }
 0x36d   : > { %v3160_v15 = vpop.f32.mrf.mxu1 }
 0x36e   : > { %v3161_v34 = vadd.f32 %v3160_v15, %v5566_v35 }
 0x36f   : > { %v3162_v49 = vpop.f32.mrf.mxu1 }
 0x370   : > { %3540 = vst [vmem:[%s5577_s29 + $0xa0] sm:$0xff] %v3161_v34  ;;  %v3163_v29 = vadd.f32 %v3162_v49, %v5566_v35 }
 0x371   : > { %v3231_v3 = vpop.f32.mrf.mxu0 }
 0x372   : > { %v3232_v48 = vadd.f32 %v3231_v3, %v5566_v35  ;;  %3541 = vst [vmem:[%s5577_s29 + $0xa8] sm:$0xff] %v3163_v29 }
 0x373   : > { %v3233_v56 = vpop.f32.mrf.mxu0 }
 0x374   : > { %3542 = vst [vmem:[%s5577_s29 + $0xb0] sm:$0xff] %v3232_v48  ;;  %v3234_v53 = vadd.f32 %v3233_v56, %v5566_v35 }
 0x376   : > { %3543 = vst [vmem:[%s5577_s29 + $0xb8] sm:$0xff] %v3234_v53 }
 0x397   : > { %v3302_v6 = vpop.f32.mrf.mxu1 }
 0x398   : > { %v3303_v36 = vadd.f32 %v3302_v6, %v5566_v35 }
 0x399   : > { %v3304_v57 = vpop.f32.mrf.mxu1 }
 0x39a   : > { %3544 = vst [vmem:[%s5577_s29 + $0xc0] sm:$0xff] %v3303_v36  ;;  %v3305_v39 = vadd.f32 %v3304_v57, %v5566_v35 }
 0x39c   : > { %3545 = vst [vmem:[%s5577_s29 + $0xc8] sm:$0xff] %v3305_v39 }
 0x39e   : > { %v3373_v17 = vpop.f32.mrf.mxu0 }
 0x39f   : > { %v3374_v25 = vadd.f32 %v3373_v17, %v5566_v35 }
 0x3a0   : > { %v3375_v10 = vpop.f32.mrf.mxu0 }
 0x3a1   : > { %3546 = vst [vmem:[%s5577_s29 + $0xd0] sm:$0xff] %v3374_v25  ;;  %v3376_v45 = vadd.f32 %v3375_v10, %v5566_v35 }
 0x3a3   : > { %3547 = vst [vmem:[%s5577_s29 + $0xd8] sm:$0xff] %v3376_v45 }
 0x3ca   : > { %v3444_v1 = vpop.f32.mrf.mxu1 }
 0x3cb   : > { %v3445_v5 = vadd.f32 %v3444_v1, %v5566_v35 }
 0x3cc   : > { %v3446_v46 = vpop.f32.mrf.mxu1 }
 0x3cd   : > { %3548 = vst [vmem:[%s5577_s29 + $0xe0] sm:$0xff] %v3445_v5  ;;  %v3447_v44 = vadd.f32 %v3446_v46, %v5566_v35 }
 0x3ce   : > { %v3515_v19 = vpop.f32.mrf.mxu0 }
 0x3cf   : > { %3549 = vst [vmem:[%s5577_s29 + $0xe8] sm:$0xff] %v3447_v44  ;;  %v3516_v61 = vadd.f32 %v3515_v19, %v5566_v35 }
 0x3d0   : > { %v3517_v60 = vpop.f32.mrf.mxu0 }
 0x3d1   : > { %3550 = vst [vmem:[%s5577_s29 + $0xf0] sm:$0xff] %v3516_v61  ;;  %v3518_v21 = vadd.f32 %v3517_v60, %v5566_v35 }
 0x3d3   : > { %3551 = vst [vmem:[%s5577_s29 + $0xf8] sm:$0xff] %v3518_v21 }
 0x3d4   : > { %3884 = shalt.err (!%p3881_p3)
}
 0x3d5   : > { %s3885_s13 = scalar_lea.hbm %s3565_s8, 4096  ;;  %s3889_s22 = scalar_lea.hbm %s5678_s4, 8192 }
 0x3d6   : > { %p3886_p4 = scmp.ne.s32.totalorder %s3565_s8, %s3885_s13  ;;  %p3890_p9 = scmp.lt.s32.totalorder %s3565_s8, %s5678_s4 }
 0x3d7   : > { %p3891_p10 = scmp.lt.s32.totalorder %s3889_s22, %s3885_s13 }
 0x3d8   : > { %p3887_p7 = pnand %p3886_p4, %p4001_p5 }
 0x3d9   : > { %p3892_p11 = por %p3891_p10, %p3890_p9 }
 0x3da   : > { %p3888_p8 = pneg %p3887_p7 }
 0x3dc   : > { %p3893_p12 = pnand %p3892_p11, %p3888_p8 }
 0x3de   : > { %3896 = shalt.err (!%p3893_p12)
}
 0x3df   : > { %3726 = dma.vmem_to_hbm [thread:$0]  (%p4001_p5), %s3568_s5, 4096, %s3565_s8, %s3553_s9  }
 0x3e0 PF: > { %p3732_p13 = scmp.ge.s32.totalorder %s3931_s18, 2  ;;  %s3579_s28 = sand.u32 1, %s3919_s15  }
 0x3e1   : > { %s3580_s29 = scalar_lea.sflag [#allocation5], %s3579_s28 }
 0x3e2   : > { %p3729_p0 = pnand %p3732_p13, %p4005_p6 }
 0x3e4   : > { %p3730_p1 = pneg %p3729_p0 }
 0x3e6   : > { %3914 = dma.done.wait (%p3730_p1), %s3580_s29, 4096  }
 0x3e7   : > { %3916 = vsyncadd (%p3730_p1), %s3580_s29, 4294963200  ;;  %p14_p2 = scmp.ge.s32.totalorder %s3988_s21, 4   ;;  %s5681_s15 = smov %s3923_s16 }
 0x3e8   : > { %s5682_s16 = smov %s3927_s17  ;;  %s5683_s17 = smov %s3999_s24 }
 0x3e9   : > { %s5684_s18 = smov %s3988_s21  ;;  %16 = sbr.rel (!%p14_p2) target bundleno = 3 (0x3), region = 71 }
 0x3ee   :  { %3585 = vsyncpa [#allocation5], 1 }
 0x3ef   :  { %3587 = vsyncpa [#allocation5 + $0x1], 1 }

</bundles_post_ra>
